<compile_context>
chip_gen: v7x
topology: tpu7x:2x2x1
jax: 0.10.0
libtpu: 0.0.40
codegen_flags: <defaults>
</compile_context>

<pallas_src>
import functools

import jax
import jax.numpy as jnp
from jax import lax
from jax.experimental import pallas as pl
from jax.experimental.pallas import tpu as pltpu


_DMAX = 5           # largest dilation used by the block -> column-halo width
_DROW = _DMAX + 1   # row-halo width (one extra row so every tap slice start >= 0)


# ------------------------------------------------------------------ fused Pallas kernel

def _dac_kernel(H, W, x_ref, cm_ref, w_in_ref, b_in_ref, w33_ref, b33_ref,
                w11_ref, b11_ref, w_out_ref, b_out_ref, o_ref,
                pad_a, pad_b, pad_c):
    Wp = W + 2 * _DMAX          # working-grid row width (keeps the column halo)
    G = H * Wp                  # flattened working grid (on the lane axis)
    Hd = w_in_ref.shape[0]
    lo = _DROW * Wp             # flat offset of the interior rows in a pad buffer
    hi = lo + G

    # Column-validity mask: halo columns must be stored as zeros into the pad
    # buffers so every dilated conv sees "same" zero padding.  Hoisted once.
    cmask = jnp.broadcast_to(cm_ref[...], (Hd, G))

    # Row halos of the pads are never written below -> zero only them each step
    # (interior rows incl. their column halos are fully rewritten before use).
    for pad in (pad_a, pad_b, pad_c):
        pad[:, 0:lo] = jnp.zeros((Hd, lo), jnp.float32)
        pad[:, hi:pad.shape[1]] = jnp.zeros((Hd, pad.shape[1] - hi), jnp.float32)

    def conv1x1(inp, w, b, relu):
        y = jnp.dot(w, inp, preferred_element_type=jnp.float32) + b
        return jnp.maximum(y, 0.0) if relu else y

    def conv3x3(src_pad, ci, d, relu):
        # im2col: the 9 shifted taps are contiguous lane-slices of the flat
        # padded buffer; stack them on sublanes and do ONE (Hd,9Hd)x(9Hd,G)
        # MXU matmul.  Halo columns of the result are garbage; they are either
        # masked before re-padding or dropped by the wrapper at the very end.
        taps = []
        for ky in range(3):
            for kx in range(3):
                base = (_DROW + (ky - 1) * d) * Wp + (kx - 1) * d
                taps.append(src_pad[:, base:base + G])
        xcol = jnp.concatenate(taps, axis=0)                        # (9*Hd, G)
        y = jnp.dot(w33_ref[ci], xcol,
                    preferred_element_type=jnp.float32) + b33_ref[:, ci:ci + 1]
        return jnp.maximum(y, 0.0) if relu else y

    # in_conv (1x1) + folded BN + ReLU; park masked result in pad_a for taps.
    h = conv1x1(x_ref[0], w_in_ref[...], b_in_ref[...], relu=True) * cmask
    pad_a[:, lo:hi] = h

    # Branches, accumulated into the running sum as soon as each one finishes.
    s = h                                                           # b_3 identity
    s = s + conv3x3(pad_a, 0, 1, relu=False)                        # b_1
    s = s + conv1x1(conv3x3(pad_a, 1, 3, relu=True),                # b_2
                    w11_ref[0], b11_ref[:, 0:1], relu=True)
    t = conv3x3(pad_a, 2, 1, relu=True) * cmask                     # b_4
    pad_b[:, lo:hi] = t
    s = s + conv1x1(conv3x3(pad_b, 3, 3, relu=True),
                    w11_ref[1], b11_ref[:, 1:2], relu=True)
    t = conv3x3(pad_a, 4, 1, relu=True) * cmask                     # b_5
    pad_b[:, lo:hi] = t
    t = conv3x3(pad_b, 5, 3, relu=True) * cmask
    pad_c[:, lo:hi] = t
    s = s + conv1x1(conv3x3(pad_c, 6, 5, relu=True),
                    w11_ref[2], b11_ref[:, 2:3], relu=True)

    # out_conv (1x1) + ReLU; lane-dense (Cout, H*Wp) store.
    y = conv1x1(s, w_out_ref[...], b_out_ref[...], relu=True)
    o_ref[0] = y.astype(o_ref.dtype)


def _full_spec(shape):
    return pl.BlockSpec(shape, lambda n, _s=shape: (0,) * len(_s))


# ------------------------------------------------------------------ forward wrapper

def dac_forward(params, x_nchw):
    N, Cin, H, W = x_nchw.shape
    Hd = params['b1_w'].shape[-1]
    Cout = params['out_w'].shape[-1]
    Wp = W + 2 * _DMAX
    G = H * Wp

    # Column-halo pad once in XLA so the kernel's spatial axis is a flat,
    # lane-dense (C, H*Wp) vector per image (NCHW in, NCHW out -> no transposes).
    xp = jnp.pad(x_nchw.astype(jnp.float32),
                 ((0, 0), (0, 0), (0, 0), (_DMAX, _DMAX))).reshape(N, Cin, G)

    # Column-validity mask over the working grid (1.0 on real image columns).
    col = jnp.arange(G, dtype=jnp.int32) % Wp
    cmask = ((col >= _DMAX) & (col < _DMAX + W)).astype(jnp.float32).reshape(1, G)

    # Fold eval-mode BatchNorm into the 1x1 in_conv.
    scale = params['bn_gamma'] / jnp.sqrt(params['bn_var'] + 1e-5)
    w_in = (params['in_w'][0, 0] * scale[None, :]).T                 # (Hd, Cin)
    b_in = ((params['in_b'] - params['bn_mean']) * scale
            + params['bn_beta']).reshape(Hd, 1)

    def w9(w):   # HWIO (3,3,Ci,Co) -> (Co, 9*Ci), tap-major index (ky*3+kx)*Ci+ci
        return jnp.transpose(w, (3, 0, 1, 2)).reshape(Hd, 9 * Hd)

    w33 = jnp.stack([w9(params['b1_w']), w9(params['b2_w1']),
                     w9(params['b4_w1']), w9(params['b4_w2']),
                     w9(params['b5_w1']), w9(params['b5_w2']),
                     w9(params['b5_w3'])])                            # (7,Hd,9Hd)
    b33 = jnp.stack([params['b1_b'], params['b2_b1'], params['b4_b1'],
                     params['b4_b2'], params['b5_b1'], params['b5_b2'],
                     params['b5_b3']], axis=1)                        # (Hd, 7)
    w11 = jnp.stack([params['b2_w2'][0, 0].T, params['b4_w3'][0, 0].T,
                     params['b5_w4'][0, 0].T])                        # (3,Hd,Hd)
    b11 = jnp.stack([params['b2_b2'], params['b4_b3'], params['b5_b4']],
                    axis=1)                                           # (Hd, 3)
    w_out = params['out_w'][0, 0].T                                   # (Cout,Hd)
    b_out = params['out_b'].reshape(Cout, 1)

    pad_cols = (H + 2 * _DROW) * Wp

    out = pl.pallas_call(
        functools.partial(_dac_kernel, H, W),
        out_shape=jax.ShapeDtypeStruct((N, Cout, G), jnp.float32),
        grid_spec=pltpu.PrefetchScalarGridSpec(
            num_scalar_prefetch=0,
            grid=(N,),                                    # one image per step
            in_specs=[
                pl.BlockSpec((1, Cin, G), lambda n: (n, 0, 0)),
                _full_spec((1, G)),
                _full_spec((Hd, Cin)), _full_spec((Hd, 1)),
                _full_spec((7, Hd, 9 * Hd)), _full_spec((Hd, 7)),
                _full_spec((3, Hd, Hd)), _full_spec((Hd, 3)),
                _full_spec((Cout, Hd)), _full_spec((Cout, 1)),
            ],
            out_specs=pl.BlockSpec((1, Cout, G), lambda n: (n, 0, 0)),
            scratch_shapes=[pltpu.VMEM((Hd, pad_cols), jnp.float32)] * 3,
        ),
        compiler_params=pltpu.CompilerParams(
            dimension_semantics=("parallel",),            # batch -> both v7x TCs
            # Above v5e/v6e's scoped default, still below v7x's 64 MiB physical.
            vmem_limit_bytes=48 * 1024 * 1024,
        ),
    )(xp, cmask, w_in, b_in, w33, b33, w11, b11, w_out, b_out)

    # Drop the column halo of the working grid -> NCHW output, no transposes.
    return out.reshape(N, Cout, H, Wp)[:, :, :, _DMAX:_DMAX + W]


# ------------------------------------------------------------------ pure-JAX reference

def _conv_ref(x, w, b, dilation=1):
    kh = w.shape[0]
    pad = dilation * (kh - 1) // 2
    y = lax.conv_general_dilated(
        x, w, (1, 1), ((pad, pad), (pad, pad)),
        rhs_dilation=(dilation, dilation),
        dimension_numbers=('NHWC', 'HWIO', 'NHWC'))
    return y + b.reshape(1, 1, 1, -1)


def dac_reference(params, x_nchw):
    relu = jax.nn.relu
    x = jnp.transpose(x_nchw, (0, 2, 3, 1))
    scale = params['bn_gamma'] / jnp.sqrt(params['bn_var'] + 1e-5)
    h = _conv_ref(x, params['in_w'], params['in_b'])
    h = relu((h - params['bn_mean']) * scale + params['bn_beta'])

    x1 = _conv_ref(h, params['b1_w'], params['b1_b'], 1)
    x2 = relu(_conv_ref(relu(_conv_ref(h, params['b2_w1'], params['b2_b1'], 3)),
                        params['b2_w2'], params['b2_b2']))
    x3 = h
    t = relu(_conv_ref(h, params['b4_w1'], params['b4_b1'], 1))
    t = relu(_conv_ref(t, params['b4_w2'], params['b4_b2'], 3))
    x4 = relu(_conv_ref(t, params['b4_w3'], params['b4_b3']))
    t = relu(_conv_ref(h, params['b5_w1'], params['b5_b1'], 1))
    t = relu(_conv_ref(t, params['b5_w2'], params['b5_b2'], 3))
    t = relu(_conv_ref(t, params['b5_w3'], params['b5_b3'], 5))
    x5 = relu(_conv_ref(t, params['b5_w4'], params['b5_b4']))

    s = x1 + x2 + x3 + x4 + x5
    y = relu(_conv_ref(s, params['out_w'], params['out_b']))
    return jnp.transpose(y, (0, 3, 1, 2))


# ------------------------------------------------------------------ deterministic init

def init_params(in_dim, hidden_dim, out_dim, key):
    ks = iter(jax.random.split(key, 48))

    def w_conv(kh, kw, ci, co):  # HWIO, PyTorch-like uniform(+-1/sqrt(fan_in))
        bnd = 1.0 / float((kh * kw * ci) ** 0.5)
        return jax.random.uniform(next(ks), (kh, kw, ci, co), jnp.float32, -bnd, bnd)

    def b_conv(kh, kw, ci, co):
        bnd = 1.0 / float((kh * kw * ci) ** 0.5)
        return jax.random.uniform(next(ks), (co,), jnp.float32, -bnd, bnd)

    Hd = hidden_dim
    return dict(
        in_w=w_conv(1, 1, in_dim, Hd), in_b=b_conv(1, 1, in_dim, Hd),
        bn_gamma=jax.random.uniform(next(ks), (Hd,), jnp.float32, 0.5, 1.5),
        bn_beta=jax.random.uniform(next(ks), (Hd,), jnp.float32, -0.5, 0.5),
        bn_mean=jnp.zeros((Hd,), jnp.float32),
        bn_var=jnp.ones((Hd,), jnp.float32),
        b1_w=w_conv(3, 3, Hd, Hd), b1_b=b_conv(3, 3, Hd, Hd),
        b2_w1=w_conv(3, 3, Hd, Hd), b2_b1=b_conv(3, 3, Hd, Hd),
        b2_w2=w_conv(1, 1, Hd, Hd), b2_b2=b_conv(1, 1, Hd, Hd),
        b4_w1=w_conv(3, 3, Hd, Hd), b4_b1=b_conv(3, 3, Hd, Hd),
        b4_w2=w_conv(3, 3, Hd, Hd), b4_b2=b_conv(3, 3, Hd, Hd),
        b4_w3=w_conv(1, 1, Hd, Hd), b4_b3=b_conv(1, 1, Hd, Hd),
        b5_w1=w_conv(3, 3, Hd, Hd), b5_b1=b_conv(3, 3, Hd, Hd),
        b5_w2=w_conv(3, 3, Hd, Hd), b5_b2=b_conv(3, 3, Hd, Hd),
        b5_w3=w_conv(3, 3, Hd, Hd), b5_b3=b_conv(3, 3, Hd, Hd),
        b5_w4=w_conv(1, 1, Hd, Hd), b5_b4=b_conv(1, 1, Hd, Hd),
        out_w=w_conv(1, 1, Hd, out_dim), out_b=b_conv(1, 1, Hd, out_dim),
    )


# ------------------------------------------------------------------ main

if __name__ == "__main__":
    N, Cin, H, W = 2, 4, 16, 16
    hidden, Cout = 8, 4

    root = jax.random.PRNGKey(0)
    kx, kp = jax.random.split(root)
    x = jax.random.normal(kx, (N, Cin, H, W), jnp.float32)   # NCHW like PyTorch
    params = init_params(Cin, hidden, Cout, kp)

    y = jax.jit(dac_forward)(params, x)
    y = jax.block_until_ready(y)
    assert y.shape == (N, Cout, H, W), y.shape

    y_ref = dac_reference(params, x)
    err = float(jnp.max(jnp.abs(y - y_ref)))
    assert err < 1e-2, f"mismatch vs reference: {err}"

    print("KERNEL_OK")
</pallas_src>

<mosaic_0001>
module attributes {stable_mosaic.version = 11 : i64} {
  func.func @_dac_kernel(%arg0: i32, %arg1: memref<1x4x416xf32, #tpu.memory_space<vmem>>, %arg2: memref<1x416xf32, #tpu.memory_space<vmem>>, %arg3: memref<8x4xf32, #tpu.memory_space<vmem>>, %arg4: memref<8x1xf32, #tpu.memory_space<vmem>>, %arg5: memref<7x8x72xf32, #tpu.memory_space<vmem>>, %arg6: memref<8x7xf32, #tpu.memory_space<vmem>>, %arg7: memref<3x8x8xf32, #tpu.memory_space<vmem>>, %arg8: memref<8x3xf32, #tpu.memory_space<vmem>>, %arg9: memref<4x8xf32, #tpu.memory_space<vmem>>, %arg10: memref<4x1xf32, #tpu.memory_space<vmem>>, %arg11: memref<1x4x416xf32, #tpu.memory_space<vmem>>, %arg12: memref<8x728xf32, #tpu.memory_space<vmem>>, %arg13: memref<8x728xf32, #tpu.memory_space<vmem>>, %arg14: memref<8x728xf32, #tpu.memory_space<vmem>>) attributes {dimension_semantics = [#tpu.dimension_semantics<parallel>], iteration_bounds = array<i64: 2>, scalar_prefetch = 0 : i64, scratch_operands = 3 : i64, tpu.core_type = #tpu.core_type<tc>, window_params = [{transform_indices = @transform_0, window_bounds = array<i64: 1, 4, 416>}, {pipeline_mode = #tpu.pipeline_mode<synchronous>, transform_indices = @transform_1, window_bounds = array<i64: 1, 416>}, {pipeline_mode = #tpu.pipeline_mode<synchronous>, transform_indices = @transform_2, window_bounds = array<i64: 8, 4>}, {pipeline_mode = #tpu.pipeline_mode<synchronous>, transform_indices = @transform_3, window_bounds = array<i64: 8, 1>}, {pipeline_mode = #tpu.pipeline_mode<synchronous>, transform_indices = @transform_4, window_bounds = array<i64: 7, 8, 72>}, {pipeline_mode = #tpu.pipeline_mode<synchronous>, transform_indices = @transform_5, window_bounds = array<i64: 8, 7>}, {pipeline_mode = #tpu.pipeline_mode<synchronous>, transform_indices = @transform_6, window_bounds = array<i64: 3, 8, 8>}, {pipeline_mode = #tpu.pipeline_mode<synchronous>, transform_indices = @transform_7, window_bounds = array<i64: 8, 3>}, {pipeline_mode = #tpu.pipeline_mode<synchronous>, transform_indices = @transform_8, window_bounds = array<i64: 4, 8>}, {pipeline_mode = #tpu.pipeline_mode<synchronous>, transform_indices = @transform_9, window_bounds = array<i64: 4, 1>}, {transform_indices = @transform_10, window_bounds = array<i64: 1, 4, 416>}]} {
    %c0 = arith.constant 0 : index
    %c0_0 = arith.constant 0 : index
    %0 = vector.load %arg2[%c0, %c0_0] : memref<1x416xf32, #tpu.memory_space<vmem>>, vector<1x416xf32>
    %1 = vector.shape_cast %0 : vector<1x416xf32> to vector<1x416xf32>
    %2 = vector.broadcast %1 : vector<1x416xf32> to vector<8x416xf32>
    %cst = arith.constant 0.000000e+00 : f32
    %3 = vector.broadcast %cst : f32 to vector<8x156xf32>
    %c0_1 = arith.constant 0 : index
    %c0_2 = arith.constant 0 : index
    %4 = vector.load %arg12[%c0_1, %c0_2] : memref<8x728xf32, #tpu.memory_space<vmem>>, vector<8x156xf32>
    tpu.vector_store %arg12[%c0_1, %c0_2], %3 {strides = array<i32>} : memref<8x728xf32, #tpu.memory_space<vmem>>, vector<8x156xf32>,
    %cst_3 = arith.constant 0.000000e+00 : f32
    %5 = vector.broadcast %cst_3 : f32 to vector<8x156xf32>
    %c0_4 = arith.constant 0 : index
    %c572 = arith.constant 572 : index
    %6 = vector.load %arg12[%c0_4, %c572] : memref<8x728xf32, #tpu.memory_space<vmem>>, vector<8x156xf32>
    tpu.vector_store %arg12[%c0_4, %c572], %5 {strides = array<i32>} : memref<8x728xf32, #tpu.memory_space<vmem>>, vector<8x156xf32>,
    %cst_5 = arith.constant 0.000000e+00 : f32
    %7 = vector.broadcast %cst_5 : f32 to vector<8x156xf32>
    %c0_6 = arith.constant 0 : index
    %c0_7 = arith.constant 0 : index
    %8 = vector.load %arg13[%c0_6, %c0_7] : memref<8x728xf32, #tpu.memory_space<vmem>>, vector<8x156xf32>
    tpu.vector_store %arg13[%c0_6, %c0_7], %7 {strides = array<i32>} : memref<8x728xf32, #tpu.memory_space<vmem>>, vector<8x156xf32>,
    %cst_8 = arith.constant 0.000000e+00 : f32
    %9 = vector.broadcast %cst_8 : f32 to vector<8x156xf32>
    %c0_9 = arith.constant 0 : index
    %c572_10 = arith.constant 572 : index
    %10 = vector.load %arg13[%c0_9, %c572_10] : memref<8x728xf32, #tpu.memory_space<vmem>>, vector<8x156xf32>
    tpu.vector_store %arg13[%c0_9, %c572_10], %9 {strides = array<i32>} : memref<8x728xf32, #tpu.memory_space<vmem>>, vector<8x156xf32>,
    %cst_11 = arith.constant 0.000000e+00 : f32
    %11 = vector.broadcast %cst_11 : f32 to vector<8x156xf32>
    %c0_12 = arith.constant 0 : index
    %c0_13 = arith.constant 0 : index
    %12 = vector.load %arg14[%c0_12, %c0_13] : memref<8x728xf32, #tpu.memory_space<vmem>>, vector<8x156xf32>
    tpu.vector_store %arg14[%c0_12, %c0_13], %11 {strides = array<i32>} : memref<8x728xf32, #tpu.memory_space<vmem>>, vector<8x156xf32>,
    %cst_14 = arith.constant 0.000000e+00 : f32
    %13 = vector.broadcast %cst_14 : f32 to vector<8x156xf32>
    %c0_15 = arith.constant 0 : index
    %c572_16 = arith.constant 572 : index
    %14 = vector.load %arg14[%c0_15, %c572_16] : memref<8x728xf32, #tpu.memory_space<vmem>>, vector<8x156xf32>
    tpu.vector_store %arg14[%c0_15, %c572_16], %13 {strides = array<i32>} : memref<8x728xf32, #tpu.memory_space<vmem>>, vector<8x156xf32>,
    %c0_17 = arith.constant 0 : index
    %c0_18 = arith.constant 0 : index
    %c0_19 = arith.constant 0 : index
    %15 = vector.load %arg1[%c0_17, %c0_18, %c0_19] : memref<1x4x416xf32, #tpu.memory_space<vmem>>, vector<1x4x416xf32>
    %16 = vector.shape_cast %15 : vector<1x4x416xf32> to vector<4x416xf32>
    %c0_20 = arith.constant 0 : index
    %c0_21 = arith.constant 0 : index
    %17 = vector.load %arg3[%c0_20, %c0_21] : memref<8x4xf32, #tpu.memory_space<vmem>>, vector<8x4xf32>
    %c0_22 = arith.constant 0 : index
    %c0_23 = arith.constant 0 : index
    %18 = vector.load %arg4[%c0_22, %c0_23] : memref<8x1xf32, #tpu.memory_space<vmem>>, vector<8x1xf32>
    %cst_24 = arith.constant dense<0.000000e+00> : vector<8x416xf32>
    %19 = tpu.matmul %17, %16, %cst_24 {dimension_numbers = #tpu.dot_dimension_numbers<[1], [0], [0], [1], [0, 0, 1, 1], [], []>} : vector<8x4xf32>, vector<4x416xf32>, vector<8x416xf32> -> vector<8x416xf32>
    %20 = vector.broadcast %18 : vector<8x1xf32> to vector<8x416xf32>
    %21 = arith.addf %19, %20 : vector<8x416xf32>
    %cst_25 = arith.constant 0.000000e+00 : f32
    %22 = vector.broadcast %cst_25 : f32 to vector<8x416xf32>
    %23 = arith.maximumf %21, %22 : vector<8x416xf32>
    %24 = arith.mulf %23, %2 : vector<8x416xf32>
    %c0_26 = arith.constant 0 : index
    %c156 = arith.constant 156 : index
    %25 = vector.load %arg12[%c0_26, %c156] : memref<8x728xf32, #tpu.memory_space<vmem>>, vector<8x416xf32>
    tpu.vector_store %arg12[%c0_26, %c156], %24 {strides = array<i32>} : memref<8x728xf32, #tpu.memory_space<vmem>>, vector<8x416xf32>,
    %c0_27 = arith.constant 0 : index
    %c129 = arith.constant 129 : index
    %26 = vector.load %arg12[%c0_27, %c129] : memref<8x728xf32, #tpu.memory_space<vmem>>, vector<8x416xf32>
    %c0_28 = arith.constant 0 : index
    %c130 = arith.constant 130 : index
    %27 = vector.load %arg12[%c0_28, %c130] : memref<8x728xf32, #tpu.memory_space<vmem>>, vector<8x416xf32>
    %c0_29 = arith.constant 0 : index
    %c131 = arith.constant 131 : index
    %28 = vector.load %arg12[%c0_29, %c131] : memref<8x728xf32, #tpu.memory_space<vmem>>, vector<8x416xf32>
    %c0_30 = arith.constant 0 : index
    %c155 = arith.constant 155 : index
    %29 = vector.load %arg12[%c0_30, %c155] : memref<8x728xf32, #tpu.memory_space<vmem>>, vector<8x416xf32>
    %c0_31 = arith.constant 0 : index
    %c156_32 = arith.constant 156 : index
    %30 = vector.load %arg12[%c0_31, %c156_32] : memref<8x728xf32, #tpu.memory_space<vmem>>, vector<8x416xf32>
    %c0_33 = arith.constant 0 : index
    %c157 = arith.constant 157 : index
    %31 = vector.load %arg12[%c0_33, %c157] : memref<8x728xf32, #tpu.memory_space<vmem>>, vector<8x416xf32>
    %c0_34 = arith.constant 0 : index
    %c181 = arith.constant 181 : index
    %32 = vector.load %arg12[%c0_34, %c181] : memref<8x728xf32, #tpu.memory_space<vmem>>, vector<8x416xf32>
    %c0_35 = arith.constant 0 : index
    %c182 = arith.constant 182 : index
    %33 = vector.load %arg12[%c0_35, %c182] : memref<8x728xf32, #tpu.memory_space<vmem>>, vector<8x416xf32>
    %c0_36 = arith.constant 0 : index
    %c183 = arith.constant 183 : index
    %34 = vector.load %arg12[%c0_36, %c183] : memref<8x728xf32, #tpu.memory_space<vmem>>, vector<8x416xf32>
    %35 = tpu.concatenate %26, %27, %28, %29, %30, %31, %32, %33, %34 in 0 : vector<8x416xf32>, vector<8x416xf32>, vector<8x416xf32>, vector<8x416xf32>, vector<8x416xf32>, vector<8x416xf32>, vector<8x416xf32>, vector<8x416xf32>, vector<8x416xf32> -> vector<72x416xf32>
    %c0_37 = arith.constant 0 : index
    %c0_38 = arith.constant 0 : index
    %c0_39 = arith.constant 0 : index
    %36 = vector.load %arg5[%c0_37, %c0_38, %c0_39] : memref<7x8x72xf32, #tpu.memory_space<vmem>>, vector<1x8x72xf32>
    %37 = vector.shape_cast %36 : vector<1x8x72xf32> to vector<8x72xf32>
    %cst_40 = arith.constant dense<0.000000e+00> : vector<8x416xf32>
    %38 = tpu.matmul %37, %35, %cst_40 {dimension_numbers = #tpu.dot_dimension_numbers<[1], [0], [0], [1], [0, 0, 1, 1], [], []>} : vector<8x72xf32>, vector<72x416xf32>, vector<8x416xf32> -> vector<8x416xf32>
    %c0_41 = arith.constant 0 : index
    %c0_42 = arith.constant 0 : index
    %39 = vector.load %arg6[%c0_41, %c0_42] : memref<8x7xf32, #tpu.memory_space<vmem>>, vector<8x1xf32>
    %40 = vector.broadcast %39 : vector<8x1xf32> to vector<8x416xf32>
    %41 = arith.addf %38, %40 : vector<8x416xf32>
    %42 = arith.addf %24, %41 : vector<8x416xf32>
    %c0_43 = arith.constant 0 : index
    %c75 = arith.constant 75 : index
    %43 = vector.load %arg12[%c0_43, %c75] : memref<8x728xf32, #tpu.memory_space<vmem>>, vector<8x416xf32>
    %c0_44 = arith.constant 0 : index
    %c78 = arith.constant 78 : index
    %44 = vector.load %arg12[%c0_44, %c78] : memref<8x728xf32, #tpu.memory_space<vmem>>, vector<8x416xf32>
    %c0_45 = arith.constant 0 : index
    %c81 = arith.constant 81 : index
    %45 = vector.load %arg12[%c0_45, %c81] : memref<8x728xf32, #tpu.memory_space<vmem>>, vector<8x416xf32>
    %c0_46 = arith.constant 0 : index
    %c153 = arith.constant 153 : index
    %46 = vector.load %arg12[%c0_46, %c153] : memref<8x728xf32, #tpu.memory_space<vmem>>, vector<8x416xf32>
    %c0_47 = arith.constant 0 : index
    %c156_48 = arith.constant 156 : index
    %47 = vector.load %arg12[%c0_47, %c156_48] : memref<8x728xf32, #tpu.memory_space<vmem>>, vector<8x416xf32>
    %c0_49 = arith.constant 0 : index
    %c159 = arith.constant 159 : index
    %48 = vector.load %arg12[%c0_49, %c159] : memref<8x728xf32, #tpu.memory_space<vmem>>, vector<8x416xf32>
    %c0_50 = arith.constant 0 : index
    %c231 = arith.constant 231 : index
    %49 = vector.load %arg12[%c0_50, %c231] : memref<8x728xf32, #tpu.memory_space<vmem>>, vector<8x416xf32>
    %c0_51 = arith.constant 0 : index
    %c234 = arith.constant 234 : index
    %50 = vector.load %arg12[%c0_51, %c234] : memref<8x728xf32, #tpu.memory_space<vmem>>, vector<8x416xf32>
    %c0_52 = arith.constant 0 : index
    %c237 = arith.constant 237 : index
    %51 = vector.load %arg12[%c0_52, %c237] : memref<8x728xf32, #tpu.memory_space<vmem>>, vector<8x416xf32>
    %52 = tpu.concatenate %43, %44, %45, %46, %47, %48, %49, %50, %51 in 0 : vector<8x416xf32>, vector<8x416xf32>, vector<8x416xf32>, vector<8x416xf32>, vector<8x416xf32>, vector<8x416xf32>, vector<8x416xf32>, vector<8x416xf32>, vector<8x416xf32> -> vector<72x416xf32>
    %c1 = arith.constant 1 : index
    %c0_53 = arith.constant 0 : index
    %c0_54 = arith.constant 0 : index
    %53 = vector.load %arg5[%c1, %c0_53, %c0_54] : memref<7x8x72xf32, #tpu.memory_space<vmem>>, vector<1x8x72xf32>
    %54 = vector.shape_cast %53 : vector<1x8x72xf32> to vector<8x72xf32>
    %cst_55 = arith.constant dense<0.000000e+00> : vector<8x416xf32>
    %55 = tpu.matmul %54, %52, %cst_55 {dimension_numbers = #tpu.dot_dimension_numbers<[1], [0], [0], [1], [0, 0, 1, 1], [], []>} : vector<8x72xf32>, vector<72x416xf32>, vector<8x416xf32> -> vector<8x416xf32>
    %c0_56 = arith.constant 0 : index
    %c1_57 = arith.constant 1 : index
    %56 = vector.load %arg6[%c0_56, %c1_57] : memref<8x7xf32, #tpu.memory_space<vmem>>, vector<8x1xf32>
    %57 = vector.broadcast %56 : vector<8x1xf32> to vector<8x416xf32>
    %58 = arith.addf %55, %57 : vector<8x416xf32>
    %cst_58 = arith.constant 0.000000e+00 : f32
    %59 = vector.broadcast %cst_58 : f32 to vector<8x416xf32>
    %60 = arith.maximumf %58, %59 : vector<8x416xf32>
    %c0_59 = arith.constant 0 : index
    %c0_60 = arith.constant 0 : index
    %c0_61 = arith.constant 0 : index
    %61 = vector.load %arg7[%c0_59, %c0_60, %c0_61] : memref<3x8x8xf32, #tpu.memory_space<vmem>>, vector<1x8x8xf32>
    %62 = vector.shape_cast %61 : vector<1x8x8xf32> to vector<8x8xf32>
    %c0_62 = arith.constant 0 : index
    %c0_63 = arith.constant 0 : index
    %63 = vector.load %arg8[%c0_62, %c0_63] : memref<8x3xf32, #tpu.memory_space<vmem>>, vector<8x1xf32>
    %cst_64 = arith.constant dense<0.000000e+00> : vector<8x416xf32>
    %64 = tpu.matmul %62, %60, %cst_64 {dimension_numbers = #tpu.dot_dimension_numbers<[1], [0], [0], [1], [0, 0, 1, 1], [], []>} : vector<8x8xf32>, vector<8x416xf32>, vector<8x416xf32> -> vector<8x416xf32>
    %65 = vector.broadcast %63 : vector<8x1xf32> to vector<8x416xf32>
    %66 = arith.addf %64, %65 : vector<8x416xf32>
    %cst_65 = arith.constant 0.000000e+00 : f32
    %67 = vector.broadcast %cst_65 : f32 to vector<8x416xf32>
    %68 = arith.maximumf %66, %67 : vector<8x416xf32>
    %69 = arith.addf %42, %68 : vector<8x416xf32>
    %c0_66 = arith.constant 0 : index
    %c129_67 = arith.constant 129 : index
    %70 = vector.load %arg12[%c0_66, %c129_67] : memref<8x728xf32, #tpu.memory_space<vmem>>, vector<8x416xf32>
    %c0_68 = arith.constant 0 : index
    %c130_69 = arith.constant 130 : index
    %71 = vector.load %arg12[%c0_68, %c130_69] : memref<8x728xf32, #tpu.memory_space<vmem>>, vector<8x416xf32>
    %c0_70 = arith.constant 0 : index
    %c131_71 = arith.constant 131 : index
    %72 = vector.load %arg12[%c0_70, %c131_71] : memref<8x728xf32, #tpu.memory_space<vmem>>, vector<8x416xf32>
    %c0_72 = arith.constant 0 : index
    %c155_73 = arith.constant 155 : index
    %73 = vector.load %arg12[%c0_72, %c155_73] : memref<8x728xf32, #tpu.memory_space<vmem>>, vector<8x416xf32>
    %c0_74 = arith.constant 0 : index
    %c156_75 = arith.constant 156 : index
    %74 = vector.load %arg12[%c0_74, %c156_75] : memref<8x728xf32, #tpu.memory_space<vmem>>, vector<8x416xf32>
    %c0_76 = arith.constant 0 : index
    %c157_77 = arith.constant 157 : index
    %75 = vector.load %arg12[%c0_76, %c157_77] : memref<8x728xf32, #tpu.memory_space<vmem>>, vector<8x416xf32>
    %c0_78 = arith.constant 0 : index
    %c181_79 = arith.constant 181 : index
    %76 = vector.load %arg12[%c0_78, %c181_79] : memref<8x728xf32, #tpu.memory_space<vmem>>, vector<8x416xf32>
    %c0_80 = arith.constant 0 : index
    %c182_81 = arith.constant 182 : index
    %77 = vector.load %arg12[%c0_80, %c182_81] : memref<8x728xf32, #tpu.memory_space<vmem>>, vector<8x416xf32>
    %c0_82 = arith.constant 0 : index
    %c183_83 = arith.constant 183 : index
    %78 = vector.load %arg12[%c0_82, %c183_83] : memref<8x728xf32, #tpu.memory_space<vmem>>, vector<8x416xf32>
    %79 = tpu.concatenate %70, %71, %72, %73, %74, %75, %76, %77, %78 in 0 : vector<8x416xf32>, vector<8x416xf32>, vector<8x416xf32>, vector<8x416xf32>, vector<8x416xf32>, vector<8x416xf32>, vector<8x416xf32>, vector<8x416xf32>, vector<8x416xf32> -> vector<72x416xf32>
    %c2 = arith.constant 2 : index
    %c0_84 = arith.constant 0 : index
    %c0_85 = arith.constant 0 : index
    %80 = vector.load %arg5[%c2, %c0_84, %c0_85] : memref<7x8x72xf32, #tpu.memory_space<vmem>>, vector<1x8x72xf32>
    %81 = vector.shape_cast %80 : vector<1x8x72xf32> to vector<8x72xf32>
    %cst_86 = arith.constant dense<0.000000e+00> : vector<8x416xf32>
    %82 = tpu.matmul %81, %79, %cst_86 {dimension_numbers = #tpu.dot_dimension_numbers<[1], [0], [0], [1], [0, 0, 1, 1], [], []>} : vector<8x72xf32>, vector<72x416xf32>, vector<8x416xf32> -> vector<8x416xf32>
    %c0_87 = arith.constant 0 : index
    %c2_88 = arith.constant 2 : index
    %83 = vector.load %arg6[%c0_87, %c2_88] : memref<8x7xf32, #tpu.memory_space<vmem>>, vector<8x1xf32>
    %84 = vector.broadcast %83 : vector<8x1xf32> to vector<8x416xf32>
    %85 = arith.addf %82, %84 : vector<8x416xf32>
    %cst_89 = arith.constant 0.000000e+00 : f32
    %86 = vector.broadcast %cst_89 : f32 to vector<8x416xf32>
    %87 = arith.maximumf %85, %86 : vector<8x416xf32>
    %88 = arith.mulf %87, %2 : vector<8x416xf32>
    %c0_90 = arith.constant 0 : index
    %c156_91 = arith.constant 156 : index
    %89 = vector.load %arg13[%c0_90, %c156_91] : memref<8x728xf32, #tpu.memory_space<vmem>>, vector<8x416xf32>
    tpu.vector_store %arg13[%c0_90, %c156_91], %88 {strides = array<i32>} : memref<8x728xf32, #tpu.memory_space<vmem>>, vector<8x416xf32>,
    %c0_92 = arith.constant 0 : index
    %c75_93 = arith.constant 75 : index
    %90 = vector.load %arg13[%c0_92, %c75_93] : memref<8x728xf32, #tpu.memory_space<vmem>>, vector<8x416xf32>
    %c0_94 = arith.constant 0 : index
    %c78_95 = arith.constant 78 : index
    %91 = vector.load %arg13[%c0_94, %c78_95] : memref<8x728xf32, #tpu.memory_space<vmem>>, vector<8x416xf32>
    %c0_96 = arith.constant 0 : index
    %c81_97 = arith.constant 81 : index
    %92 = vector.load %arg13[%c0_96, %c81_97] : memref<8x728xf32, #tpu.memory_space<vmem>>, vector<8x416xf32>
    %c0_98 = arith.constant 0 : index
    %c153_99 = arith.constant 153 : index
    %93 = vector.load %arg13[%c0_98, %c153_99] : memref<8x728xf32, #tpu.memory_space<vmem>>, vector<8x416xf32>
    %c0_100 = arith.constant 0 : index
    %c156_101 = arith.constant 156 : index
    %94 = vector.load %arg13[%c0_100, %c156_101] : memref<8x728xf32, #tpu.memory_space<vmem>>, vector<8x416xf32>
    %c0_102 = arith.constant 0 : index
    %c159_103 = arith.constant 159 : index
    %95 = vector.load %arg13[%c0_102, %c159_103] : memref<8x728xf32, #tpu.memory_space<vmem>>, vector<8x416xf32>
    %c0_104 = arith.constant 0 : index
    %c231_105 = arith.constant 231 : index
    %96 = vector.load %arg13[%c0_104, %c231_105] : memref<8x728xf32, #tpu.memory_space<vmem>>, vector<8x416xf32>
    %c0_106 = arith.constant 0 : index
    %c234_107 = arith.constant 234 : index
    %97 = vector.load %arg13[%c0_106, %c234_107] : memref<8x728xf32, #tpu.memory_space<vmem>>, vector<8x416xf32>
    %c0_108 = arith.constant 0 : index
    %c237_109 = arith.constant 237 : index
    %98 = vector.load %arg13[%c0_108, %c237_109] : memref<8x728xf32, #tpu.memory_space<vmem>>, vector<8x416xf32>
    %99 = tpu.concatenate %90, %91, %92, %93, %94, %95, %96, %97, %98 in 0 : vector<8x416xf32>, vector<8x416xf32>, vector<8x416xf32>, vector<8x416xf32>, vector<8x416xf32>, vector<8x416xf32>, vector<8x416xf32>, vector<8x416xf32>, vector<8x416xf32> -> vector<72x416xf32>
    %c3 = arith.constant 3 : index
    %c0_110 = arith.constant 0 : index
    %c0_111 = arith.constant 0 : index
    %100 = vector.load %arg5[%c3, %c0_110, %c0_111] : memref<7x8x72xf32, #tpu.memory_space<vmem>>, vector<1x8x72xf32>
    %101 = vector.shape_cast %100 : vector<1x8x72xf32> to vector<8x72xf32>
    %cst_112 = arith.constant dense<0.000000e+00> : vector<8x416xf32>
    %102 = tpu.matmul %101, %99, %cst_112 {dimension_numbers = #tpu.dot_dimension_numbers<[1], [0], [0], [1], [0, 0, 1, 1], [], []>} : vector<8x72xf32>, vector<72x416xf32>, vector<8x416xf32> -> vector<8x416xf32>
    %c0_113 = arith.constant 0 : index
    %c3_114 = arith.constant 3 : index
    %103 = vector.load %arg6[%c0_113, %c3_114] : memref<8x7xf32, #tpu.memory_space<vmem>>, vector<8x1xf32>
    %104 = vector.broadcast %103 : vector<8x1xf32> to vector<8x416xf32>
    %105 = arith.addf %102, %104 : vector<8x416xf32>
    %cst_115 = arith.constant 0.000000e+00 : f32
    %106 = vector.broadcast %cst_115 : f32 to vector<8x416xf32>
    %107 = arith.maximumf %105, %106 : vector<8x416xf32>
    %c1_116 = arith.constant 1 : index
    %c0_117 = arith.constant 0 : index
    %c0_118 = arith.constant 0 : index
    %108 = vector.load %arg7[%c1_116, %c0_117, %c0_118] : memref<3x8x8xf32, #tpu.memory_space<vmem>>, vector<1x8x8xf32>
    %109 = vector.shape_cast %108 : vector<1x8x8xf32> to vector<8x8xf32>
    %c0_119 = arith.constant 0 : index
    %c1_120 = arith.constant 1 : index
    %110 = vector.load %arg8[%c0_119, %c1_120] : memref<8x3xf32, #tpu.memory_space<vmem>>, vector<8x1xf32>
    %cst_121 = arith.constant dense<0.000000e+00> : vector<8x416xf32>
    %111 = tpu.matmul %109, %107, %cst_121 {dimension_numbers = #tpu.dot_dimension_numbers<[1], [0], [0], [1], [0, 0, 1, 1], [], []>} : vector<8x8xf32>, vector<8x416xf32>, vector<8x416xf32> -> vector<8x416xf32>
    %112 = vector.broadcast %110 : vector<8x1xf32> to vector<8x416xf32>
    %113 = arith.addf %111, %112 : vector<8x416xf32>
    %cst_122 = arith.constant 0.000000e+00 : f32
    %114 = vector.broadcast %cst_122 : f32 to vector<8x416xf32>
    %115 = arith.maximumf %113, %114 : vector<8x416xf32>
    %116 = arith.addf %69, %115 : vector<8x416xf32>
    %c0_123 = arith.constant 0 : index
    %c129_124 = arith.constant 129 : index
    %117 = vector.load %arg12[%c0_123, %c129_124] : memref<8x728xf32, #tpu.memory_space<vmem>>, vector<8x416xf32>
    %c0_125 = arith.constant 0 : index
    %c130_126 = arith.constant 130 : index
    %118 = vector.load %arg12[%c0_125, %c130_126] : memref<8x728xf32, #tpu.memory_space<vmem>>, vector<8x416xf32>
    %c0_127 = arith.constant 0 : index
    %c131_128 = arith.constant 131 : index
    %119 = vector.load %arg12[%c0_127, %c131_128] : memref<8x728xf32, #tpu.memory_space<vmem>>, vector<8x416xf32>
    %c0_129 = arith.constant 0 : index
    %c155_130 = arith.constant 155 : index
    %120 = vector.load %arg12[%c0_129, %c155_130] : memref<8x728xf32, #tpu.memory_space<vmem>>, vector<8x416xf32>
    %c0_131 = arith.constant 0 : index
    %c156_132 = arith.constant 156 : index
    %121 = vector.load %arg12[%c0_131, %c156_132] : memref<8x728xf32, #tpu.memory_space<vmem>>, vector<8x416xf32>
    %c0_133 = arith.constant 0 : index
    %c157_134 = arith.constant 157 : index
    %122 = vector.load %arg12[%c0_133, %c157_134] : memref<8x728xf32, #tpu.memory_space<vmem>>, vector<8x416xf32>
    %c0_135 = arith.constant 0 : index
    %c181_136 = arith.constant 181 : index
    %123 = vector.load %arg12[%c0_135, %c181_136] : memref<8x728xf32, #tpu.memory_space<vmem>>, vector<8x416xf32>
    %c0_137 = arith.constant 0 : index
    %c182_138 = arith.constant 182 : index
    %124 = vector.load %arg12[%c0_137, %c182_138] : memref<8x728xf32, #tpu.memory_space<vmem>>, vector<8x416xf32>
    %c0_139 = arith.constant 0 : index
    %c183_140 = arith.constant 183 : index
    %125 = vector.load %arg12[%c0_139, %c183_140] : memref<8x728xf32, #tpu.memory_space<vmem>>, vector<8x416xf32>
    %126 = tpu.concatenate %117, %118, %119, %120, %121, %122, %123, %124, %125 in 0 : vector<8x416xf32>, vector<8x416xf32>, vector<8x416xf32>, vector<8x416xf32>, vector<8x416xf32>, vector<8x416xf32>, vector<8x416xf32>, vector<8x416xf32>, vector<8x416xf32> -> vector<72x416xf32>
    %c4 = arith.constant 4 : index
    %c0_141 = arith.constant 0 : index
    %c0_142 = arith.constant 0 : index
    %127 = vector.load %arg5[%c4, %c0_141, %c0_142] : memref<7x8x72xf32, #tpu.memory_space<vmem>>, vector<1x8x72xf32>
    %128 = vector.shape_cast %127 : vector<1x8x72xf32> to vector<8x72xf32>
    %cst_143 = arith.constant dense<0.000000e+00> : vector<8x416xf32>
    %129 = tpu.matmul %128, %126, %cst_143 {dimension_numbers = #tpu.dot_dimension_numbers<[1], [0], [0], [1], [0, 0, 1, 1], [], []>} : vector<8x72xf32>, vector<72x416xf32>, vector<8x416xf32> -> vector<8x416xf32>
    %c0_144 = arith.constant 0 : index
    %c4_145 = arith.constant 4 : index
    %130 = vector.load %arg6[%c0_144, %c4_145] : memref<8x7xf32, #tpu.memory_space<vmem>>, vector<8x1xf32>
    %131 = vector.broadcast %130 : vector<8x1xf32> to vector<8x416xf32>
    %132 = arith.addf %129, %131 : vector<8x416xf32>
    %cst_146 = arith.constant 0.000000e+00 : f32
    %133 = vector.broadcast %cst_146 : f32 to vector<8x416xf32>
    %134 = arith.maximumf %132, %133 : vector<8x416xf32>
    %135 = arith.mulf %134, %2 : vector<8x416xf32>
    %c0_147 = arith.constant 0 : index
    %c156_148 = arith.constant 156 : index
    %136 = vector.load %arg13[%c0_147, %c156_148] : memref<8x728xf32, #tpu.memory_space<vmem>>, vector<8x416xf32>
    tpu.vector_store %arg13[%c0_147, %c156_148], %135 {strides = array<i32>} : memref<8x728xf32, #tpu.memory_space<vmem>>, vector<8x416xf32>,
    %c0_149 = arith.constant 0 : index
    %c75_150 = arith.constant 75 : index
    %137 = vector.load %arg13[%c0_149, %c75_150] : memref<8x728xf32, #tpu.memory_space<vmem>>, vector<8x416xf32>
    %c0_151 = arith.constant 0 : index
    %c78_152 = arith.constant 78 : index
    %138 = vector.load %arg13[%c0_151, %c78_152] : memref<8x728xf32, #tpu.memory_space<vmem>>, vector<8x416xf32>
    %c0_153 = arith.constant 0 : index
    %c81_154 = arith.constant 81 : index
    %139 = vector.load %arg13[%c0_153, %c81_154] : memref<8x728xf32, #tpu.memory_space<vmem>>, vector<8x416xf32>
    %c0_155 = arith.constant 0 : index
    %c153_156 = arith.constant 153 : index
    %140 = vector.load %arg13[%c0_155, %c153_156] : memref<8x728xf32, #tpu.memory_space<vmem>>, vector<8x416xf32>
    %c0_157 = arith.constant 0 : index
    %c156_158 = arith.constant 156 : index
    %141 = vector.load %arg13[%c0_157, %c156_158] : memref<8x728xf32, #tpu.memory_space<vmem>>, vector<8x416xf32>
    %c0_159 = arith.constant 0 : index
    %c159_160 = arith.constant 159 : index
    %142 = vector.load %arg13[%c0_159, %c159_160] : memref<8x728xf32, #tpu.memory_space<vmem>>, vector<8x416xf32>
    %c0_161 = arith.constant 0 : index
    %c231_162 = arith.constant 231 : index
    %143 = vector.load %arg13[%c0_161, %c231_162] : memref<8x728xf32, #tpu.memory_space<vmem>>, vector<8x416xf32>
    %c0_163 = arith.constant 0 : index
    %c234_164 = arith.constant 234 : index
    %144 = vector.load %arg13[%c0_163, %c234_164] : memref<8x728xf32, #tpu.memory_space<vmem>>, vector<8x416xf32>
    %c0_165 = arith.constant 0 : index
    %c237_166 = arith.constant 237 : index
    %145 = vector.load %arg13[%c0_165, %c237_166] : memref<8x728xf32, #tpu.memory_space<vmem>>, vector<8x416xf32>
    %146 = tpu.concatenate %137, %138, %139, %140, %141, %142, %143, %144, %145 in 0 : vector<8x416xf32>, vector<8x416xf32>, vector<8x416xf32>, vector<8x416xf32>, vector<8x416xf32>, vector<8x416xf32>, vector<8x416xf32>, vector<8x416xf32>, vector<8x416xf32> -> vector<72x416xf32>
    %c5 = arith.constant 5 : index
    %c0_167 = arith.constant 0 : index
    %c0_168 = arith.constant 0 : index
    %147 = vector.load %arg5[%c5, %c0_167, %c0_168] : memref<7x8x72xf32, #tpu.memory_space<vmem>>, vector<1x8x72xf32>
    %148 = vector.shape_cast %147 : vector<1x8x72xf32> to vector<8x72xf32>
    %cst_169 = arith.constant dense<0.000000e+00> : vector<8x416xf32>
    %149 = tpu.matmul %148, %146, %cst_169 {dimension_numbers = #tpu.dot_dimension_numbers<[1], [0], [0], [1], [0, 0, 1, 1], [], []>} : vector<8x72xf32>, vector<72x416xf32>, vector<8x416xf32> -> vector<8x416xf32>
    %c0_170 = arith.constant 0 : index
    %c5_171 = arith.constant 5 : index
    %150 = vector.load %arg6[%c0_170, %c5_171] : memref<8x7xf32, #tpu.memory_space<vmem>>, vector<8x1xf32>
    %151 = vector.broadcast %150 : vector<8x1xf32> to vector<8x416xf32>
    %152 = arith.addf %149, %151 : vector<8x416xf32>
    %cst_172 = arith.constant 0.000000e+00 : f32
    %153 = vector.broadcast %cst_172 : f32 to vector<8x416xf32>
    %154 = arith.maximumf %152, %153 : vector<8x416xf32>
    %155 = arith.mulf %154, %2 : vector<8x416xf32>
    %c0_173 = arith.constant 0 : index
    %c156_174 = arith.constant 156 : index
    %156 = vector.load %arg14[%c0_173, %c156_174] : memref<8x728xf32, #tpu.memory_space<vmem>>, vector<8x416xf32>
    tpu.vector_store %arg14[%c0_173, %c156_174], %155 {strides = array<i32>} : memref<8x728xf32, #tpu.memory_space<vmem>>, vector<8x416xf32>,
    %c0_175 = arith.constant 0 : index
    %c21 = arith.constant 21 : index
    %157 = vector.load %arg14[%c0_175, %c21] : memref<8x728xf32, #tpu.memory_space<vmem>>, vector<8x416xf32>
    %c0_176 = arith.constant 0 : index
    %c26 = arith.constant 26 : index
    %158 = vector.load %arg14[%c0_176, %c26] : memref<8x728xf32, #tpu.memory_space<vmem>>, vector<8x416xf32>
    %c0_177 = arith.constant 0 : index
    %c31 = arith.constant 31 : index
    %159 = vector.load %arg14[%c0_177, %c31] : memref<8x728xf32, #tpu.memory_space<vmem>>, vector<8x416xf32>
    %c0_178 = arith.constant 0 : index
    %c151 = arith.constant 151 : index
    %160 = vector.load %arg14[%c0_178, %c151] : memref<8x728xf32, #tpu.memory_space<vmem>>, vector<8x416xf32>
    %c0_179 = arith.constant 0 : index
    %c156_180 = arith.constant 156 : index
    %161 = vector.load %arg14[%c0_179, %c156_180] : memref<8x728xf32, #tpu.memory_space<vmem>>, vector<8x416xf32>
    %c0_181 = arith.constant 0 : index
    %c161 = arith.constant 161 : index
    %162 = vector.load %arg14[%c0_181, %c161] : memref<8x728xf32, #tpu.memory_space<vmem>>, vector<8x416xf32>
    %c0_182 = arith.constant 0 : index
    %c281 = arith.constant 281 : index
    %163 = vector.load %arg14[%c0_182, %c281] : memref<8x728xf32, #tpu.memory_space<vmem>>, vector<8x416xf32>
    %c0_183 = arith.constant 0 : index
    %c286 = arith.constant 286 : index
    %164 = vector.load %arg14[%c0_183, %c286] : memref<8x728xf32, #tpu.memory_space<vmem>>, vector<8x416xf32>
    %c0_184 = arith.constant 0 : index
    %c291 = arith.constant 291 : index
    %165 = vector.load %arg14[%c0_184, %c291] : memref<8x728xf32, #tpu.memory_space<vmem>>, vector<8x416xf32>
    %166 = tpu.concatenate %157, %158, %159, %160, %161, %162, %163, %164, %165 in 0 : vector<8x416xf32>, vector<8x416xf32>, vector<8x416xf32>, vector<8x416xf32>, vector<8x416xf32>, vector<8x416xf32>, vector<8x416xf32>, vector<8x416xf32>, vector<8x416xf32> -> vector<72x416xf32>
    %c6 = arith.constant 6 : index
    %c0_185 = arith.constant 0 : index
    %c0_186 = arith.constant 0 : index
    %167 = vector.load %arg5[%c6, %c0_185, %c0_186] : memref<7x8x72xf32, #tpu.memory_space<vmem>>, vector<1x8x72xf32>
    %168 = vector.shape_cast %167 : vector<1x8x72xf32> to vector<8x72xf32>
    %cst_187 = arith.constant dense<0.000000e+00> : vector<8x416xf32>
    %169 = tpu.matmul %168, %166, %cst_187 {dimension_numbers = #tpu.dot_dimension_numbers<[1], [0], [0], [1], [0, 0, 1, 1], [], []>} : vector<8x72xf32>, vector<72x416xf32>, vector<8x416xf32> -> vector<8x416xf32>
    %c0_188 = arith.constant 0 : index
    %c6_189 = arith.constant 6 : index
    %170 = vector.load %arg6[%c0_188, %c6_189] : memref<8x7xf32, #tpu.memory_space<vmem>>, vector<8x1xf32>
    %171 = vector.broadcast %170 : vector<8x1xf32> to vector<8x416xf32>
    %172 = arith.addf %169, %171 : vector<8x416xf32>
    %cst_190 = arith.constant 0.000000e+00 : f32
    %173 = vector.broadcast %cst_190 : f32 to vector<8x416xf32>
    %174 = arith.maximumf %172, %173 : vector<8x416xf32>
    %c2_191 = arith.constant 2 : index
    %c0_192 = arith.constant 0 : index
    %c0_193 = arith.constant 0 : index
    %175 = vector.load %arg7[%c2_191, %c0_192, %c0_193] : memref<3x8x8xf32, #tpu.memory_space<vmem>>, vector<1x8x8xf32>
    %176 = vector.shape_cast %175 : vector<1x8x8xf32> to vector<8x8xf32>
    %c0_194 = arith.constant 0 : index
    %c2_195 = arith.constant 2 : index
    %177 = vector.load %arg8[%c0_194, %c2_195] : memref<8x3xf32, #tpu.memory_space<vmem>>, vector<8x1xf32>
    %cst_196 = arith.constant dense<0.000000e+00> : vector<8x416xf32>
    %178 = tpu.matmul %176, %174, %cst_196 {dimension_numbers = #tpu.dot_dimension_numbers<[1], [0], [0], [1], [0, 0, 1, 1], [], []>} : vector<8x8xf32>, vector<8x416xf32>, vector<8x416xf32> -> vector<8x416xf32>
    %179 = vector.broadcast %177 : vector<8x1xf32> to vector<8x416xf32>
    %180 = arith.addf %178, %179 : vector<8x416xf32>
    %cst_197 = arith.constant 0.000000e+00 : f32
    %181 = vector.broadcast %cst_197 : f32 to vector<8x416xf32>
    %182 = arith.maximumf %180, %181 : vector<8x416xf32>
    %183 = arith.addf %116, %182 : vector<8x416xf32>
    %c0_198 = arith.constant 0 : index
    %c0_199 = arith.constant 0 : index
    %184 = vector.load %arg9[%c0_198, %c0_199] : memref<4x8xf32, #tpu.memory_space<vmem>>, vector<4x8xf32>
    %c0_200 = arith.constant 0 : index
    %c0_201 = arith.constant 0 : index
    %185 = vector.load %arg10[%c0_200, %c0_201] : memref<4x1xf32, #tpu.memory_space<vmem>>, vector<4x1xf32>
    %cst_202 = arith.constant dense<0.000000e+00> : vector<4x416xf32>
    %186 = tpu.matmul %184, %183, %cst_202 {dimension_numbers = #tpu.dot_dimension_numbers<[1], [0], [0], [1], [0, 0, 1, 1], [], []>} : vector<4x8xf32>, vector<8x416xf32>, vector<4x416xf32> -> vector<4x416xf32>
    %187 = vector.broadcast %185 : vector<4x1xf32> to vector<4x416xf32>
    %188 = arith.addf %186, %187 : vector<4x416xf32>
    %cst_203 = arith.constant 0.000000e+00 : f32
    %189 = vector.broadcast %cst_203 : f32 to vector<4x416xf32>
    %190 = arith.maximumf %188, %189 : vector<4x416xf32>
    %c0_204 = arith.constant 0 : index
    %c0_205 = arith.constant 0 : index
    %c0_206 = arith.constant 0 : index
    %191 = vector.load %arg11[%c0_204, %c0_205, %c0_206] : memref<1x4x416xf32, #tpu.memory_space<vmem>>, vector<1x4x416xf32>
    %192 = vector.shape_cast %191 : vector<1x4x416xf32> to vector<4x416xf32>
    %193 = vector.shape_cast %190 : vector<4x416xf32> to vector<1x4x416xf32>
    tpu.vector_store %arg11[%c0_204, %c0_205, %c0_206], %193 {strides = array<i32>} : memref<1x4x416xf32, #tpu.memory_space<vmem>>, vector<1x4x416xf32>,
    return
  }
  func.func @transform_0(%arg0: i32) -> (i32, i32, i32) {
    %c0_i32 = arith.constant 0 : i32
    %c0_i32_0 = arith.constant 0 : i32
    %c0_i32_1 = arith.constant 0 : i32
    return %arg0, %c0_i32, %c0_i32_0 : i32, i32, i32
  }
  func.func @transform_1(%arg0: i32) -> (i32, i32) {
    %c0_i32 = arith.constant 0 : i32
    %c0_i32_0 = arith.constant 0 : i32
    %c0_i32_1 = arith.constant 0 : i32
    return %c0_i32, %c0_i32_0 : i32, i32
  }
  func.func @transform_2(%arg0: i32) -> (i32, i32) {
    %c0_i32 = arith.constant 0 : i32
    %c0_i32_0 = arith.constant 0 : i32
    %c0_i32_1 = arith.constant 0 : i32
    return %c0_i32, %c0_i32_0 : i32, i32
  }
  func.func @transform_3(%arg0: i32) -> (i32, i32) {
    %c0_i32 = arith.constant 0 : i32
    %c0_i32_0 = arith.constant 0 : i32
    %c0_i32_1 = arith.constant 0 : i32
    return %c0_i32, %c0_i32_0 : i32, i32
  }
  func.func @transform_4(%arg0: i32) -> (i32, i32, i32) {
    %c0_i32 = arith.constant 0 : i32
    %c0_i32_0 = arith.constant 0 : i32
    %c0_i32_1 = arith.constant 0 : i32
    %c0_i32_2 = arith.constant 0 : i32
    return %c0_i32, %c0_i32_0, %c0_i32_1 : i32, i32, i32
  }
  func.func @transform_5(%arg0: i32) -> (i32, i32) {
    %c0_i32 = arith.constant 0 : i32
    %c0_i32_0 = arith.constant 0 : i32
    %c0_i32_1 = arith.constant 0 : i32
    return %c0_i32, %c0_i32_0 : i32, i32
  }
  func.func @transform_6(%arg0: i32) -> (i32, i32, i32) {
    %c0_i32 = arith.constant 0 : i32
    %c0_i32_0 = arith.constant 0 : i32
    %c0_i32_1 = arith.constant 0 : i32
    %c0_i32_2 = arith.constant 0 : i32
    return %c0_i32, %c0_i32_0, %c0_i32_1 : i32, i32, i32
  }
  func.func @transform_7(%arg0: i32) -> (i32, i32) {
    %c0_i32 = arith.constant 0 : i32
    %c0_i32_0 = arith.constant 0 : i32
    %c0_i32_1 = arith.constant 0 : i32
    return %c0_i32, %c0_i32_0 : i32, i32
  }
  func.func @transform_8(%arg0: i32) -> (i32, i32) {
    %c0_i32 = arith.constant 0 : i32
    %c0_i32_0 = arith.constant 0 : i32
    %c0_i32_1 = arith.constant 0 : i32
    return %c0_i32, %c0_i32_0 : i32, i32
  }
  func.func @transform_9(%arg0: i32) -> (i32, i32) {
    %c0_i32 = arith.constant 0 : i32
    %c0_i32_0 = arith.constant 0 : i32
    %c0_i32_1 = arith.constant 0 : i32
    return %c0_i32, %c0_i32_0 : i32, i32
  }
  func.func @transform_10(%arg0: i32) -> (i32, i32, i32) {
    %c0_i32 = arith.constant 0 : i32
    %c0_i32_0 = arith.constant 0 : i32
    %c0_i32_1 = arith.constant 0 : i32
    return %arg0, %c0_i32, %c0_i32_0 : i32, i32, i32
  }
}

</mosaic_0001>

<bundles_post_ra>
// kernel: dac_forward.1
= control target key start
LH: loop header
LB: loop body
LE: loop exit
PB: predicated region body
PF: predicated region fallthrough
CT: control target
= control target key end

     0   :  { %s5218_s13 = smov 0   ;;  %s6480_s0 = inlined_call_operand.vmem [shape: f32[2,4,416], index: 0, kind: input, shape index: {}]   ;;  %s6481_s1 = inlined_call_operand.vmem [shape: f32[1,416], index: 1, kind: input, shape index: {}]   ;;  %s6482_s2 = inlined_call_operand.vmem [shape: f32[8,4], index: 2, kind: input, shape index: {}]   ;;  %s6483_s3 = inlined_call_operand.vmem [shape: f32[8,1], index: 3, kind: input, shape index: {}]   ;;  %s6484_s4 = inlined_call_operand.vmem [shape: f32[7,8,72], index: 4, kind: input, shape index: {}]   ;;  %s6485_s5 = inlined_call_operand.vmem [shape: f32[8,7], index: 5, kind: input, shape index: {}]   ;;  %s6486_s6 = inlined_call_operand.vmem [shape: f32[3,8,8], index: 6, kind: input, shape index: {}]   ;;  %s6487_s7 = inlined_call_operand.vmem [shape: f32[8,3], index: 7, kind: input, shape index: {}]   ;;  %s6488_s8 = inlined_call_operand.vmem [shape: f32[4,8], index: 8, kind: input, shape index: {}]   ;;  %s6489_s9 = inlined_call_operand.vmem [shape: f32[4,1], index: 9, kind: input, shape index: {}]   ;;  %s6490_s10 = inlined_call_operand.vmem [shape: f32[2,4,416], index: 10, kind: output, shape index: {}]  }
   0x1 LB: > { %s3909_s14 = sadd.s32 4294967295, %s5128_s13   ;;  %p3913_p0 = scmp.ge.s32.totalorder %s5128_s13, 1  ;;  %s5128_s13 = sphi %s5218_s13, %s20_s13  }
   0x2   : > { %p312_p1 = scmp.lt.s32.totalorder %s5128_s13, 3 }
   0x4   : > { %p313_p2 = pnand %p3913_p0, %p312_p1 }
   0x5   : > { %p350_p3 = scmp.lt.s32.totalorder (!%p313_p2), %s3909_s14, 1  ;;  %v5130_v0 = vmov (!%p313_p2), 0.0   ;;  %v400_v1 = vld [vmem:[%s6483_s3] sm:$0xff] (!%p313_p2)  ;;  %v5131_v2 = vmov (!%p313_p2), 0   ;;  %vm6491_vm0 = vcmask (!%p313_p2), 1043456   ;;  %vm410_vm1 = vcmask (!%p313_p2), 31744  }
   0x6   : > { %316 = sbr.rel (%p313_p2) target bundleno = 3780 (0xec4), region = 60  ;;  %487 = vmatprep.mubr.f32.mxu0 (!%p313_p2), %v5130_v0  ;;  %382 = vst [vmem:[#allocation2] sm:$0xff] (!%p313_p2), %v5130_v0  ;;  %558 = vmatprep.mubr.f32.mxu1 (!%p313_p2), %v5130_v0  ;;  %v399_v7 = vld [vmem:[%s6482_s2] sm:$0xff] (!%p313_p2)  ;;  %vm383_vm2 = vcmask (!%p313_p2), 228352   ;;  %vm387_vm3 = vcmask (!%p313_p2), 719872   ;;  %v362_v8 = vlaneseq (!%p313_p2)  ;;  %vm385_vm4 = vcmask (!%p313_p2), 1048032  }
   0x7   : > { %4223 = vset.pattern.permute.xlu0 (!%p313_p2), %v5131_v2  ;;  %384 = vst.msk [vmem:[#allocation2 + $0x8] sm:$0xff] (!%p313_p2), %vm383_vm2, %v5130_v0  ;;  %390 = vst.msk [vmem:[#allocation3 + $0x8] sm:$0xff] (!%p313_p2), %vm383_vm2, %v5130_v0  ;;  %v360_v12 = vld [vmem:[%s6481_s1] sm:$0xf] (!%p313_p2)  ;;  %s5132_s25 = smov (!%p313_p2), 28   ;;  %s5133_s26 = smov (!%p313_p2), 97  }
   0x8   : > { %403 = vperm.xlu0 (!%p313_p2), %4223, %v400_v1   ;;  %394 = vst.msk [vmem:[#allocation4 + $0x8] sm:$0xff] (!%p313_p2), %vm383_vm2, %v5130_v0  ;;  %v363_v9 = vshrl.u32 (!%p313_p2), %v362_v8, 7  ;;  %s5134_s27 = smov (!%p313_p2), 100   ;;  %s5135_s28 = smov (!%p313_p2), 94   ;;  %vm592_vm5 = vcmask (!%p313_p2), 1047776   ;;  %vm596_vm6 = vcmask (!%p313_p2), 490496  }
   0x9   : > { %388 = vst.msk [vmem:[#allocation2 + $0x28] sm:$0xff] (!%p313_p2), %vm387_vm3, %v5130_v0  ;;  %396 = vst.msk [vmem:[#allocation4 + $0x28] sm:$0xff] (!%p313_p2), %vm387_vm3, %v5130_v0  ;;  %s6495_s29 = smov (!%p313_p2), 74   ;;  %s5137_s30 = smov (!%p313_p2), 127   ;;  %vm1001_vm7 = vcmask (!%p313_p2), 1022976   ;;  %vm1013_vm8 = vcmask (!%p313_p2), 998400  }
   0xa   : > { %392 = vst.msk [vmem:[#allocation3 + $0x28] sm:$0xff] (!%p313_p2), %vm387_vm3, %v5130_v0  ;;  %v364_v10 = vsub.s32 (!%p313_p2), 0, %v363_v9  ;;  %v368_v13 = vsub.s32 (!%p313_p2), 1, %v363_v9  ;;  %v372_v18 = vsub.s32 (!%p313_p2), 2, %v363_v9  ;;  %v376_v20 = vsub.s32 (!%p313_p2), 3, %v363_v9  ;;  %s5138_s11 = smov (!%p313_p2), 126  }
   0xb   : > { %386 = vst.msk [vmem:[#allocation2 + $0x20] sm:$0xff] (!%p313_p2), %vm385_vm4, %v5130_v0  ;;  %391 = vst.msk [vmem:[#allocation3 + $0x20] sm:$0xff] (!%p313_p2), %vm385_vm4, %v5130_v0  ;;  %s5139_s12 = smov (!%p313_p2), 102   ;;  %s5140_s15 = smov (!%p313_p2), 101   ;;  %vm614_vm9 = vcmask (!%p313_p2), 1039360   ;;  %vm6499_vm10 = vcmask (!%p313_p2), 834560  }
   0xc   : > { %395 = vst.msk [vmem:[#allocation4 + $0x20] sm:$0xff] (!%p313_p2), %vm385_vm4, %v5130_v0  ;;  %v5265_v16 = vrot.slane (!%p313_p2), %v360_v12, %v364_v10  ;;  %v5267_v25 = vrot.slane (!%p313_p2), %v360_v12, %v368_v13  ;;  %v5272_v29 = vrot.slane (!%p313_p2), %v360_v12, %v376_v20  ;;  %v5274_v31 = vrot.slane (!%p313_p2), %v360_v12, %v372_v18  ;;  %s5141_s16 = smov (!%p313_p2), 76   ;;  %s5142_s18 = smov (!%p313_p2), 75  }
   0xd   : > { %s6563_s14 = smov (!%p350_p3, %s3909_s14), 1  ;;  %s5143_s19 = smov 125   ;;  %vm6504_vm11 = vcmask 1031168   ;;  %vm662_vm12 = vcmask 818176   ;;  %vm6492_vm13 = vcmask 613376   ;;  %vm6498_vm14 = vcmask 826368  }
   0xe   : > { %s6494_s17 = sshll.u32 %s6563_s14, 4  ;;  %s5145_s21 = smov 50   ;;  %vm6493_vm15 = vcmask 605184   ;;  %vm6503_vm3 = vcmask 408576   ;;  %vm6501_vm4 = vcmask 359424  }
   0xf   : > { %s354_s20 = scalar_lea.vmem %s6480_s0, %s6494_s17  ;;  %s5146_s22 = smov 47  }
  0x10   : > { %v397_v3 = vld [vmem:[%s354_s20] sm:$0xff]  ;;  %v398_v4 = vld [vmem:[%s354_s20 + $0x8] sm:$0xff]  ;;  %s5144_s20 = smov 122   ;;  %s5147_s23 = smov 44  }
  0x11   : > { %v408_v5 = vcombine.high %v397_v3, %v397_v3  ;;  %v409_v6 = vcombine.high %v398_v4, %v398_v4  ;;  %v988_v36 = vld [vmem:[#allocation2 + $0x28] sm:$0xff]  ;;  %s5148_s24 = smov 53   ;;  %s6505_s17 = smov 74  }
  0x13   : > { %3918 = vmatprep.subr.msk.mxu0 %vm6491_vm0, %v408_v5  ;;  %3921 = vmatprep.subr.msk.mxu1 %vm6491_vm0, %v409_v6 }
  0x14   : > { %3919 = vmatpush1.msk.msra.mxu0 %vm6491_vm0, %v397_v3  ;;  %3922 = vmatpush1.msk.msra.mxu1 %vm6491_vm0, %v398_v4  ;;  %vm1037_vm0 = vcmask 384000  }
  0x15   : > { %3920 = vmatmul.mubr.msk.f32.vlgmr.msra.gmra.mrb[0].mxu0 %vm410_vm1, %v399_v7  ;;  %3923 = vmatmul.mubr.msk.f32.vlgmr.msra.gmra.mrb[0].mxu1 %vm410_vm1, %v399_v7  ;;  %vm6497_vm1 = vcmask 621568  }
  0x16   : > { %972 = vmatprep.mubr.f32.mxu1 %v5130_v0  ;;  %901 = vmatprep.mubr.f32.mxu0 %v5130_v0 }
  0x87   : > { %v404_v11 = vpop.permute.xlu0 %403 }
  0xe8   : > { %v489_v14 = vpop.f32.mrb[0].mxu0  ;;  %v560_v15 = vpop.f32.mrb[0].mxu1 }
  0xe9   : > { %v490_v17 = vadd.f32 %v489_v14, %v404_v11  ;;  %v491_v19 = vpop.f32.mrb[1].mxu0  ;;  %v562_v21 = vpop.f32.mrb[1].mxu1  ;;  %v561_v22 = vadd.f32 %v560_v15, %v404_v11 }
  0xea   : > { %v492_v23 = vadd.f32 %v491_v19, %v404_v11  ;;  %v563_v24 = vadd.f32 %v562_v21, %v404_v11 }
  0xeb   : > { %v565_v26 = vmax.f32 %v490_v17, 0.0  ;;  %v567_v32 = vmax.f32 %v561_v22, 0.0 }
  0xec   : > { %v566_v27 = vmax.f32 %v492_v23, 0.0  ;;  %v568_v30 = vmax.f32 %v563_v24, 0.0 }
  0xed   : > { %v5270_v28 = vmul.f32 %v565_v26, %v5265_v16  ;;  %v5287_v35 = vmul.f32 %v567_v32, %v5274_v31 }
  0xee   : > { %v5277_v33 = vmul.f32 %v566_v27, %v5267_v25  ;;  %v5284_v34 = vmul.f32 %v568_v30, %v5272_v29 }
  0xef   : > { %577 = vrot.lane.b32.xlu0 %v5270_v28, %s5132_s25 }
  0xf0   : > { %579 = vrot.lane.b32.xlu1 %v5277_v33, %s5132_s25 }
  0xf3   : > { %583 = vrot.lane.b32.xlu0 %v5284_v34, %s5132_s25 }
  0xf4   : > { %581 = vrot.lane.b32.xlu1 %v5287_v35, %s5132_s25 }
  0xf7   : > { %1077 = vrot.lane.b32.xlu0 %v988_v36, %s5133_s26 }
  0xf8   : > { %1063 = vrot.lane.b32.xlu1 %v988_v36, %s5134_s27 }
  0xfc   : > { %1092 = vrot.lane.b32.xlu1 %v988_v36, %s5135_s28 }
 0x161   : > { %v578_v37 = vpop.permute.xlu0 %577 }
 0x162   : > { %593 = vst.msk [vmem:[#allocation2 + $0x8] sm:$0xff] %vm592_vm5, %v578_v37  ;;  %v580_v38 = vpop.permute.xlu1 %579 }
 0x163   : > { %v585_v39 = vsel %vm383_vm2, %v578_v37, %v580_v38 }
 0x164   : > { %594 = vst [vmem:[#allocation2 + $0x10] sm:$0xff] %v585_v39 }
 0x165   : > { %v584_v40 = vpop.permute.xlu0 %583 }
 0x166   : > { %v582_v41 = vpop.permute.xlu1 %581 }
 0x167   : > { %v5299_v42 = vsel %vm383_vm2, %v580_v38, %v582_v41  ;;  %v587_v43 = vsel %vm383_vm2, %v582_v41, %v584_v40 }
 0x168   : > { %595 = vst [vmem:[#allocation2 + $0x18] sm:$0xff] %v5299_v42  ;;  %597 = vst.msk [vmem:[#allocation2 + $0x20] sm:$0xff] %vm596_vm6, %v587_v43  ;;  %v4224_v44 = vpack.i.bf16 %v5299_v42, %v585_v39  ;;  %v4299_v48 = vpack.i.bf16 %v5130_v0, %v5299_v42 }
 0x169   : > { %v598_v45 = vld [vmem:[#allocation2 + $0x8] sm:$0xff]  ;;  %v5349_v52 = vpop.permute.xlu0 %1077 }
 0x16a   : > { %690 = vrot.lane.b32.xlu0 %v598_v45, %s6495_s29  ;;  %4225 = vrot.lane.b32.xlu1 %v4224_v44, %s5137_s30  ;;  %v4294_v49 = vpack.i.bf16 %v585_v39, %v598_v45  ;;  %v5347_v51 = vpop.permute.xlu1 %1063 }
 0x16e   : > { %1084 = vrot.lane.b32.xlu0 %v598_v45, %s5135_s28  ;;  %4235 = vrot.lane.b32.xlu1 %v4224_v44, %s5138_s11  ;;  %v5351_v53 = vpop.permute.xlu1 %1092 }
 0x16f   : > { %v601_v46 = vld [vmem:[#allocation2 + $0x20] sm:$0xff] }
 0x170   : > { %v4229_v47 = vpack.i.bf16 %v598_v45, %v601_v46  ;;  %v4319_v50 = vpack.i.bf16 %v601_v46, %v5299_v42 }
 0x172   : > { %4230 = vrot.lane.b32.xlu0 %v4229_v47, %s5137_s30  ;;  %4245 = vrot.lane.b32.xlu1 %v4224_v44, %s5139_s12 }
 0x176   : > { %4240 = vrot.lane.b32.xlu0 %v4229_v47, %s5138_s11  ;;  %4255 = vrot.lane.b32.xlu1 %v4224_v44, %s5140_s15 }
 0x17a   : > { %4250 = vrot.lane.b32.xlu0 %v4229_v47, %s5139_s12  ;;  %4265 = vrot.lane.b32.xlu1 %v4224_v44, %s5134_s27 }
 0x17e   : > { %4260 = vrot.lane.b32.xlu0 %v4229_v47, %s5140_s15  ;;  %4275 = vrot.lane.b32.xlu1 %v4224_v44, %s5141_s16 }
 0x182   : > { %4270 = vrot.lane.b32.xlu0 %v4229_v47, %s5134_s27  ;;  %4285 = vrot.lane.b32.xlu1 %v4224_v44, %s5142_s18 }
 0x186   : > { %4280 = vrot.lane.b32.xlu0 %v4229_v47, %s5141_s16  ;;  %692 = vrot.lane.b32.xlu1 %v585_v39, %s6495_s29 }
 0x18a   : > { %4290 = vrot.lane.b32.xlu0 %v4229_v47, %s5142_s18  ;;  %696 = vrot.lane.b32.xlu1 %v601_v46, %s6495_s29 }
 0x18e   : > { %694 = vrot.lane.b32.xlu0 %v5299_v42, %s6495_s29  ;;  %4300 = vrot.lane.b32.xlu1 %v4299_v48, %s5143_s19 }
 0x192   : > { %4295 = vrot.lane.b32.xlu0 %v4294_v49, %s5143_s19  ;;  %4305 = vrot.lane.b32.xlu1 %v4294_v49, %s5144_s20 }
 0x196   : > { %4310 = vrot.lane.b32.xlu0 %v4299_v48, %s5144_s20  ;;  %4315 = vrot.lane.b32.xlu1 %v4294_v49, %s5145_s21 }
 0x19a   : > { %4320 = vrot.lane.b32.xlu0 %v4319_v50, %s5145_s21  ;;  %4325 = vrot.lane.b32.xlu1 %v4294_v49, %s5146_s22 }
 0x19e   : > { %4330 = vrot.lane.b32.xlu0 %v4319_v50, %s5146_s22  ;;  %4335 = vrot.lane.b32.xlu1 %v4294_v49, %s5147_s23 }
 0x1a2   : > { %4340 = vrot.lane.b32.xlu0 %v4319_v50, %s5147_s23  ;;  %4345 = vrot.lane.b32.xlu1 %v4224_v44, %s5134_s27 }
 0x1a6   : > { %4350 = vrot.lane.b32.xlu0 %v4229_v47, %s5134_s27  ;;  %4355 = vrot.lane.b32.xlu1 %v4224_v44, %s5133_s26 }
 0x1aa   : > { %4360 = vrot.lane.b32.xlu0 %v4229_v47, %s5133_s26  ;;  %1086 = vrot.lane.b32.xlu1 %v585_v39, %s5135_s28 }
 0x1ae   : > { %1088 = vrot.lane.b32.xlu0 %v5299_v42, %s5135_s28  ;;  %1090 = vrot.lane.b32.xlu1 %v601_v46, %s5135_s28 }
 0x1b2   : > { %4365 = vrot.lane.b32.xlu0 %v4294_v49, %s5148_s24 }
 0x1dc   : > { %v5353_v54 = vpop.permute.xlu0 %690  ;;  %v5355_v55 = vpop.permute.xlu1 %4225 }
 0x1dd   : > { %v4227_v48 = vunpack.i.l.bf16 %v5355_v55 }
 0x1e0   : > { %v5357_v56 = vpop.permute.xlu0 %1084  ;;  %v5359_v57 = vpop.permute.xlu1 %4235 }
 0x1e4   : > { %v4231_v58 = vpop.permute.xlu0 %4230  ;;  %v5361_v59 = vpop.permute.xlu1 %4245 }
 0x1e5   : > { %v4233_v47 = vunpack.i.h.bf16 %v4231_v58  ;;  %v5440_v50 = vunpack.i.l.bf16 %v4231_v58 }
 0x1e8   : > { %v5363_v60 = vpop.permute.xlu0 %4240  ;;  %v5365_v61 = vpop.permute.xlu1 %4255 }
 0x1e9   : > { %v4242_v21 = vunpack.i.l.bf16 %v5363_v60 }
 0x1ec   : > { %v5367_v62 = vpop.permute.xlu0 %4250  ;;  %v5369_v63 = vpop.permute.xlu1 %4265 }
 0x1ed   : > { %v4252_v18 = vunpack.i.l.bf16 %v5367_v62 }
 0x1ef   : > { %v4384_v23 = vpack.i.bf16 %v4252_v18, %v4242_v21 }
 0x1f0   : > { %v5371_v1 = vpop.permute.xlu0 %4260  ;;  %v5373_v3 = vpop.permute.xlu1 %4275 }
 0x1f1   : > { %v4262_v27 = vunpack.i.l.bf16 %v5371_v1 }
 0x1f4   : > { %v5375_v4 = vpop.permute.xlu0 %4270  ;;  %v5377_v5 = vpop.permute.xlu1 %4285 }
 0x1f5   : > { %v4272_v22 = vunpack.i.l.bf16 %v5375_v4 }
 0x1f7   : > { %v4389_v32 = vpack.i.bf16 %v4272_v22, %v4262_v27 }
 0x1f8   : > { %v5379_v6 = vpop.permute.xlu0 %4280  ;;  %v5381_v7 = vpop.permute.xlu1 %692 }
 0x1f9   : > { %v4282_v39 = vunpack.i.l.bf16 %v5379_v6 }
 0x1fc   : > { %v5383_v8 = vpop.permute.xlu0 %4290  ;;  %v5385_v9 = vpop.permute.xlu1 %696 }
 0x1fd   : > { %v4292_v30 = vunpack.i.l.bf16 %v5383_v8 }
 0x1ff   : > { %v4394_v45 = vpack.i.bf16 %v4292_v30, %v4282_v39 }
 0x200   : > { %v5387_v10 = vpop.permute.xlu0 %694  ;;  %v5389_v11 = vpop.permute.xlu1 %4300 }
 0x201   : > { %v4303_v15 = vunpack.i.h.bf16 %v5389_v11  ;;  %v4302_v44 = vunpack.i.l.bf16 %v5389_v11 }
 0x204   : > { %v5391_v12 = vpop.permute.xlu0 %4295  ;;  %v5393_v13 = vpop.permute.xlu1 %4305 }
 0x205   : > { %v4297_v14 = vunpack.i.l.bf16 %v5391_v12  ;;  %v4307_v40 = vunpack.i.l.bf16 %v5393_v13 }
 0x207   : > { %v1002_v17 = vsel %vm1001_vm7, %v4303_v15, %v4297_v14  ;;  %v4399_v15 = vpack.i.bf16 %v4302_v44, %v5299_v42 }
 0x208   : > { %v4374_v19 = vpack.i.bf16 %v1002_v17, %v5130_v0  ;;  %v5402_v20 = vpop.permute.xlu1 %4315  ;;  %v5409_v26 = vpop.permute.xlu0 %4310  ;;  %v5447_v17 = vsel %vm614_vm9, %v4233_v47, %v4227_v48 }
 0x209   : > { %v4313_v0 = vunpack.i.h.bf16 %v5409_v26  ;;  %v4317_v41 = vunpack.i.l.bf16 %v5402_v20  ;;  %v4409_v58 = vpack.i.bf16 %v5440_v50, %v5447_v17 }
 0x20a   : > { %4375 = vrot.lane.b32.xlu1 %v4374_v19, %s5148_s24  ;;  %v4228_v19 = vunpack.i.h.bf16 %v5355_v55  ;;  %v4238_v55 = vunpack.i.h.bf16 %v5359_v57 }
 0x20b   : > { %v1014_v46 = vsel %vm1013_vm8, %v4313_v0, %v4307_v40  ;;  %v4247_v0 = vunpack.i.l.bf16 %v5361_v59 }
 0x20c   : > { %v5407_v24 = vpop.permute.xlu1 %4325  ;;  %v4379_v49 = vpack.i.bf16 %v4317_v41, %v1014_v46  ;;  %v5457_v42 = vsel %vm614_vm9, %v4228_v19, %v5440_v50  ;;  %v4267_v46 = vunpack.i.l.bf16 %v5369_v63 }
 0x20d   : > { %v4327_v37 = vunpack.i.l.bf16 %v5407_v24 }
 0x20e   : > { %4385 = vrot.lane.b32.xlu1 %v4384_v23, %s5137_s30  ;;  %v4248_v23 = vunpack.i.h.bf16 %v5361_v59  ;;  %v5466_v59 = vsel %vm614_vm9, %v4227_v48, %v4228_v19  ;;  %v4243_v19 = vunpack.i.h.bf16 %v5363_v60 }
 0x210   : > { %v5417_v36 = vpop.permute.xlu1 %4335  ;;  %v640_v47 = vsel %vm6499_vm10, %v4247_v0, %v4248_v23 }
 0x211   : > { %v4337_v38 = vunpack.i.l.bf16 %v5417_v36 }
 0x212   : > { %4390 = vrot.lane.b32.xlu1 %v4389_v32, %s5137_s30  ;;  %v641_v32 = vsel %vm6499_vm10, %v4248_v23, %v4252_v18  ;;  %v4253_v18 = vunpack.i.h.bf16 %v5367_v62  ;;  %v4288_v23 = vunpack.i.h.bf16 %v5377_v5  ;;  %v4287_v62 = vunpack.i.l.bf16 %v5377_v5 }
 0x213   : > { %v4369_v43 = vpack.i.bf16 %v4337_v38, %v4327_v37 }
 0x214   : > { %v689_v60 = vsel %vm6492_vm13, %v4288_v23, %v4292_v30  ;;  %v688_v5 = vsel %vm6492_vm13, %v4287_v62, %v4288_v23 }
 0x215   : > { %4370 = vrot.lane.b32.xlu0 %v4369_v43, %s5148_s24  ;;  %v4237_v43 = vunpack.i.l.bf16 %v5359_v57  ;;  %v629_v57 = vsel %vm6504_vm11, %v4238_v55, %v4242_v21 }
 0x216   : > { %4395 = vrot.lane.b32.xlu1 %v4394_v45, %s5137_s30  ;;  %v4268_v45 = vunpack.i.h.bf16 %v5369_v63 }
 0x217   : > { %v628_v63 = vsel %vm6504_vm11, %v4237_v43, %v4238_v55  ;;  %v627_v55 = vsel %vm6504_vm11, %v4243_v19, %v4237_v43 }
 0x218   : > { %v665_v48 = vsel %vm662_vm12, %v4268_v45, %v4272_v22  ;;  %v4258_v22 = vunpack.i.h.bf16 %v5365_v61 }
 0x219   : > { %4380 = vrot.lane.b32.xlu0 %v4379_v49, %s5148_s24  ;;  %v4404_v49 = vpack.i.bf16 %v5457_v42, %v5466_v59 }
 0x21a   : > { %4400 = vrot.lane.b32.xlu1 %v4399_v15, %s5148_s24  ;;  %v4419_v15 = vpack.i.bf16 %v641_v32, %v640_v47  ;;  %v664_v32 = vsel %vm662_vm12, %v4267_v46, %v4268_v45  ;;  %v4414_v47 = vpack.i.bf16 %v629_v57, %v628_v63  ;;  %v4273_v57 = vunpack.i.h.bf16 %v5375_v4 }
 0x21b   : > { %v4434_v21 = vpack.i.bf16 %v665_v48, %v664_v32  ;;  %v653_v30 = vsel %vm6498_vm14, %v4258_v22, %v4262_v27  ;;  %v701_v27 = vsel %vm6493_vm15, %v5387_v10, %v5385_v9  ;;  %v4278_v32 = vunpack.i.h.bf16 %v5373_v3 }
 0x21c   : > { %v663_v4 = vsel %vm662_vm12, %v4273_v57, %v4267_v46  ;;  %v4277_v46 = vunpack.i.l.bf16 %v5373_v3  ;;  %v5540_v57 = vpop.permute.xlu1 %4345 }
 0x21d   : > { %771 = vrot.lane.b32.xlu0 %v5385_v9, %s5137_s30  ;;  %v4318_v9 = vunpack.i.h.bf16 %v5402_v20  ;;  %v677_v11 = vsel %vm6497_vm1, %v4278_v32, %v4282_v39 }
 0x21e   : > { %4410 = vrot.lane.b32.xlu1 %v4409_v58, %s5137_s30  ;;  %v5478_v58 = vpop.permute.xlu0 %4320 }
 0x21f   : > { %v4322_v63 = vunpack.i.l.bf16 %v5478_v58 }
 0x221   : > { %4405 = vrot.lane.b32.xlu0 %v4404_v49, %s5137_s30  ;;  %v639_v49 = vsel %vm6499_vm10, %v4253_v18, %v4247_v0  ;;  %v4449_v0 = vpack.i.bf16 %v689_v60, %v688_v5  ;;  %v4298_v18 = vunpack.i.h.bf16 %v5391_v12  ;;  %v4293_v12 = vunpack.i.h.bf16 %v5383_v8 }
 0x222   : > { %4420 = vrot.lane.b32.xlu1 %v4419_v15, %s5137_s30  ;;  %v4257_v15 = vunpack.i.l.bf16 %v5365_v61  ;;  %v4424_v45 = vpack.i.bf16 %v639_v49, %v627_v55  ;;  %v5494_v48 = vpop.permute.xlu0 %4330  ;;  %v4263_v61 = vunpack.i.h.bf16 %v5371_v1  ;;  %v1027_v3 = vsel %vm6503_vm3, %v4318_v9, %v4322_v63 }
 0x223   : > { %v1003_v1 = vsel %vm1001_vm7, %v4297_v14, %v4298_v18  ;;  %v1004_v23 = vsel %vm1001_vm7, %v4298_v18, %v4302_v44  ;;  %v4323_v44 = vunpack.i.h.bf16 %v5478_v58  ;;  %v4283_v60 = vunpack.i.h.bf16 %v5379_v6 }
 0x224   : > { %v652_v43 = vsel %vm6498_vm14, %v4257_v15, %v4258_v22  ;;  %v4459_v14 = vpack.i.bf16 %v1004_v23, %v1003_v1  ;;  %v676_v22 = vsel %vm6497_vm1, %v4277_v46, %v4278_v32  ;;  %v1026_v8 = vsel %vm6503_vm3, %v4317_v41, %v4318_v9 }
 0x225   : > { %4415 = vrot.lane.b32.xlu0 %v4414_v47, %s5137_s30  ;;  %v4429_v19 = vpack.i.bf16 %v653_v30, %v652_v43  ;;  %v4469_v39 = vpack.i.bf16 %v1027_v3, %v1026_v8  ;;  %v687_v58 = vsel %vm6492_vm13, %v4293_v12, %v4287_v62  ;;  %v4312_v6 = vunpack.i.l.bf16 %v5409_v26 }
 0x226   : > { %4435 = vrot.lane.b32.xlu1 %v4434_v21, %s5137_s30  ;;  %v4341_v47 = vpop.permute.xlu0 %4340  ;;  %v651_v21 = vsel %vm6498_vm14, %v4263_v61, %v4257_v15  ;;  %v4444_v15 = vpack.i.bf16 %v677_v11, %v676_v22  ;;  %v675_v20 = vsel %vm6497_vm1, %v4283_v60, %v4277_v46  ;;  %v4338_v41 = vunpack.i.h.bf16 %v5417_v36 }
 0x227   : > { %v4439_v49 = vpack.i.bf16 %v663_v4, %v651_v21  ;;  %v4342_v5 = vunpack.i.l.bf16 %v4341_v47  ;;  %v4343_v18 = vunpack.i.h.bf16 %v4341_v47  ;;  %v4333_v26 = vunpack.i.h.bf16 %v5494_v48  ;;  %v4356_v4 = vpop.permute.xlu1 %4355 }
 0x228   : > { %v4332_v43 = vunpack.i.l.bf16 %v5494_v48  ;;  %v4308_v32 = vunpack.i.h.bf16 %v5393_v13  ;;  %v4358_v48 = vunpack.i.h.bf16 %v4356_v4  ;;  %v4357_v36 = vunpack.i.l.bf16 %v4356_v4 }
 0x229   : > { %4425 = vrot.lane.b32.xlu0 %v4424_v45, %s5137_s30  ;;  %v1028_v45 = vsel %vm6503_vm3, %v4322_v63, %v4323_v44  ;;  %v1051_v62 = vsel %vm6501_vm4, %v4338_v41, %v4342_v5  ;;  %v1052_v23 = vsel %vm6501_vm4, %v4342_v5, %v4343_v18  ;;  %v699_v47 = vsel %vm6493_vm15, %v5353_v54, %v5381_v7  ;;  %v5609_v18 = vld [vmem:[%s6485_s5] sm:$0xff] }
 0x22a   : > { %4450 = vrot.lane.b32.xlu1 %v4449_v0, %s5137_s30  ;;  %v5534_v55 = vpop.permute.xlu0 %4350  ;;  %v4454_v0 = vpack.i.bf16 %v687_v58, %v675_v20  ;;  %v4474_v30 = vpack.i.bf16 %v1028_v45, %v4312_v6  ;;  %vm1079_vm13 = vcmask 793600   ;;  %v4328_v9 = vunpack.i.h.bf16 %v5407_v24 }
 0x22b   : > { %v4352_v12 = vunpack.i.l.bf16 %v5534_v55  ;;  %v4348_v60 = vunpack.i.h.bf16 %v5540_v57  ;;  %v4347_v13 = vunpack.i.l.bf16 %v5540_v57  ;;  %vm6500_vm1 = vcmask 433152  }
 0x22c   : > { %v1039_v44 = vsel %vm1037_vm0, %v4328_v9, %v4332_v43  ;;  %vm833_vm14 = vcmask 588800   ;;  %vm1397_vm10 = vcmask 64512  }
 0x22d   : > { %4430 = vrot.lane.b32.xlu0 %v4429_v19, %s5137_s30  ;;  %v1050_v19 = vsel %vm6501_vm4, %v4337_v38, %v4338_v41  ;;  %v1040_v38 = vsel %vm1037_vm0, %v4332_v43, %v4333_v26  ;;  %v1068_v22 = vsel %vm662_vm12, %v4352_v12, %v5347_v51  ;;  %v1067_v58 = vsel %vm662_vm12, %v4348_v60, %v4352_v12 }
 0x22e   : > { %769 = vrot.lane.b32.xlu1 %v701_v27, %s5137_s30  ;;  %v4361_v61 = vpop.permute.xlu0 %4360  ;;  %v4484_v63 = vpack.i.bf16 %v1051_v62, %v1050_v19  ;;  %v700_v27 = vsel %vm6493_vm15, %v5381_v7, %v5387_v10  ;;  %v4489_v46 = vpack.i.bf16 %v1052_v23, %v1040_v38  ;;  %v1016_v10 = vsel %vm1013_vm8, %v4308_v32, %v4312_v6  ;;  %v1087_v7 = vpop.permute.xlu1 %1086 }
 0x22f   : > { %v4362_v1 = vunpack.i.l.bf16 %v4361_v61  ;;  %v1066_v24 = vsel %vm662_vm12, %v4347_v13, %v4348_v60  ;;  %vm6502_vm15 = vcmask 769024  }
 0x230   : > { %v4494_v6 = vpack.i.bf16 %v1067_v58, %v1066_v24 }
 0x231   : > { %4440 = vrot.lane.b32.xlu0 %v4439_v49, %s5137_s30  ;;  %v1082_v21 = vsel %vm1079_vm13, %v4358_v48, %v4362_v1  ;;  %v1015_v49 = vsel %vm1013_vm8, %v4307_v40, %v4308_v32  ;;  %v1083_v3 = vsel %vm1079_vm13, %v4362_v1, %v5349_v52  ;;  %v1038_v40 = vsel %vm1037_vm0, %v4327_v37, %v4328_v9 }
 0x232   : > { %4460 = vrot.lane.b32.xlu1 %v4459_v14, %s5148_s24  ;;  %v1081_v14 = vsel %vm1079_vm13, %v4357_v36, %v4358_v48  ;;  %v4464_v54 = vpack.i.bf16 %v1016_v10, %v1015_v49  ;;  %v4479_v8 = vpack.i.bf16 %v1039_v44, %v1038_v40  ;;  %v4353_v52 = vunpack.i.h.bf16 %v5534_v55  ;;  %v1089_v5 = vpop.permute.xlu0 %1088  ;;  %v1091_v45 = vpop.permute.xlu1 %1090 }
 0x233   : > { %v4499_v11 = vpack.i.bf16 %v1082_v21, %v1081_v14  ;;  %v1097_v51 = vsel %vm6502_vm15, %v1089_v5, %v1091_v45  ;;  %v5149_v55 = vmov 1   ;;  %v1098_v41 = vsel %vm6502_vm15, %v1091_v45, %v5351_v53 }
 0x234   : > { %v1065_v57 = vsel %vm662_vm12, %v4353_v52, %v4347_v13  ;;  %4514 = vset.pattern.permute.xlu0 %v5149_v55 }
 0x235   : > { %4445 = vrot.lane.b32.xlu0 %v4444_v15, %s5137_s30  ;;  %v4363_v15 = vunpack.i.h.bf16 %v4361_v61 }
 0x236   : > { %4470 = vrot.lane.b32.xlu1 %v4469_v39, %s5148_s24  ;;  %v4509_v39 = vpack.i.bf16 %v1083_v3, %v1068_v22  ;;  %v5614_v61 = vpop.permute.xlu0 %4365 }
 0x237   : > { %v1080_v37 = vsel %vm1079_vm13, %v4363_v15, %v4357_v36 }
 0x238   : > { %v4504_v20 = vpack.i.bf16 %v1080_v37, %v1065_v57 }
 0x239   : > { %4455 = vrot.lane.b32.xlu0 %v4454_v0, %s5137_s30  ;;  %v1096_v0 = vsel %vm6502_vm15, %v1087_v7, %v1089_v5 }
 0x23a   : > { %4475 = vrot.lane.b32.xlu1 %v4474_v30, %s5148_s24  ;;  %v1095_v30 = vsel %vm6502_vm15, %v5357_v56, %v1087_v7 }
 0x23d   : > { %767 = vrot.lane.b32.xlu0 %v700_v27, %s5137_s30 }
 0x23e   : > { %4485 = vrot.lane.b32.xlu1 %v4484_v63, %s5148_s24 }
 0x241   : > { %765 = vrot.lane.b32.xlu0 %v699_v47, %s5137_s30 }
 0x242   : > { %4490 = vrot.lane.b32.xlu1 %v4489_v46, %s5148_s24 }
 0x245   : > { %4465 = vrot.lane.b32.xlu0 %v4464_v54, %s5148_s24 }
 0x246   : > { %4500 = vrot.lane.b32.xlu1 %v4499_v11, %s5148_s24 }
 0x249   : > { %4480 = vrot.lane.b32.xlu0 %v4479_v8, %s5148_s24 }
 0x24a   : > { %4510 = vrot.lane.b32.xlu1 %v4509_v39, %s5148_s24 }
 0x24d   : > { %4495 = vrot.lane.b32.xlu0 %v4494_v6, %s5148_s24 }
 0x24e   : > { %1173 = vrot.lane.b32.xlu1 %v1097_v51, %s5148_s24 }
 0x251   : > { %4505 = vrot.lane.b32.xlu0 %v4504_v20, %s5148_s24 }
 0x252   : > { %1175 = vrot.lane.b32.xlu1 %v1098_v41, %s5148_s24 }
 0x255   : > { %1171 = vrot.lane.b32.xlu0 %v1096_v0, %s5148_s24 }
 0x259   : > { %1169 = vrot.lane.b32.xlu0 %v1095_v30, %s5148_s24 }
 0x25d   : > { %1102 = vperm.xlu0 %4514, %v5609_v18  }
 0x27c   : > { %v5612_v53 = vpop.permute.xlu1 %4375 }
 0x280   : > { %v4386_v62 = vpop.permute.xlu1 %4385 }
 0x281   : > { %v4388_v23 = vunpack.i.h.bf16 %v4386_v62  ;;  %v4387_v32 = vunpack.i.l.bf16 %v4386_v62 }
 0x283   : > { %v5644_v44 = vpack.c.bf16 %v4388_v23, %v4387_v32 }
 0x284   : > { %v5616_v26 = vpop.permute.xlu1 %4390 }
 0x285   : > { %v4393_v3 = vunpack.i.h.bf16 %v5616_v26  ;;  %v4392_v60 = vunpack.i.l.bf16 %v5616_v26 }
 0x287   : > { %v5618_v43 = vpop.permute.xlu0 %4370  ;;  %v5662_v24 = vpack.c.bf16 %v4393_v3, %v4392_v60 }
 0x288   : > { %v5620_v19 = vpop.permute.xlu1 %4395 }
 0x289   : > { %v4398_v0 = vunpack.i.h.bf16 %v5620_v19  ;;  %v4397_v30 = vunpack.i.l.bf16 %v5620_v19 }
 0x28b   : > { %v5622_v56 = vpop.permute.xlu0 %4380 }
 0x28c   : > { %v5624_v4 = vpop.permute.xlu1 %4400 }
 0x28f   : > { %v5626_v63 = vpop.permute.xlu0 %771 }
 0x290   : > { %v4411_v27 = vpop.permute.xlu1 %4410 }
 0x291   : > { %v4413_v1 = vunpack.i.h.bf16 %v4411_v27  ;;  %v4412_v38 = vunpack.i.l.bf16 %v4411_v27 }
 0x293   : > { %v5629_v48 = vpack.c.bf16 %v4413_v1, %v5440_v50  ;;  %v4406_v36 = vpop.permute.xlu0 %4405 }
 0x294   : > { %v4421_v46 = vpop.permute.xlu1 %4420  ;;  %v4408_v47 = vunpack.i.h.bf16 %v4406_v36  ;;  %v4407_v10 = vunpack.i.l.bf16 %v4406_v36 }
 0x295   : > { %v4423_v21 = vunpack.i.h.bf16 %v4421_v46  ;;  %3975 = vmatprep.subr.bf16.mxu1 %v5629_v48  ;;  %v4422_v9 = vunpack.i.l.bf16 %v4421_v46 }
 0x296   : > { %v773_v49 = vsel %vm614_vm9, %v4412_v38, %v4407_v10  ;;  %v775_v12 = vsel %vm614_vm9, %v4408_v47, %v4413_v1  ;;  %v774_v14 = vsel %vm614_vm9, %v4407_v10, %v4408_v47 }
 0x297   : > { %v4416_v54 = vpop.permute.xlu0 %4415  ;;  %v5636_v7 = vpack.c.bf16 %v774_v14, %v5466_v59  ;;  %v5639_v50 = vpack.c.bf16 %v775_v12, %v5457_v42  ;;  %v5642_v11 = vpack.c.bf16 %v773_v49, %v5447_v17  ;;  %v781_v8 = vsel %vm614_vm9, %v4423_v21, %v4388_v23 }
 0x298   : > { %v4436_v13 = vpop.permute.xlu1 %4435  ;;  %v4418_v40 = vunpack.i.h.bf16 %v4416_v54  ;;  %v4417_v22 = vunpack.i.l.bf16 %v4416_v54  ;;  %v780_v59 = vsel %vm614_vm9, %v4422_v9, %v4423_v21 }
 0x299   : > { %3959 = vmatprep.subr.bf16.mxu0 %v5636_v7  ;;  %3977 = vmatpush1.bf16.msra.mxu1 %v5639_v50  ;;  %v4438_v6 = vunpack.i.h.bf16 %v4436_v13  ;;  %v4437_v37 = vunpack.i.l.bf16 %v4436_v13 }
 0x29a   : > { %v778_v42 = vsel %vm614_vm9, %v4418_v40, %v4387_v32  ;;  %3961 = vmatpush1.bf16.msra.mxu0 %v5642_v11  ;;  %3979 = vmatprep.subr.bf16.mxu1 %v5644_v44  ;;  %v777_v17 = vsel %vm614_vm9, %v4417_v22, %v4418_v40 }
 0x29b   : > { %v4426_v15 = vpop.permute.xlu0 %4425  ;;  %v5656_v39 = vpack.c.bf16 %v780_v59, %v777_v17  ;;  %v5658_v58 = vpack.c.bf16 %v781_v8, %v778_v42  ;;  %v787_v1 = vsel %vm614_vm9, %v4438_v6, %v4393_v3  ;;  %v786_v36 = vsel %vm614_vm9, %v4437_v37, %v4438_v6 }
 0x29c   : > { %v5660_v52 = vpop.permute.xlu1 %4450  ;;  %v4428_v5 = vunpack.i.h.bf16 %v4426_v15  ;;  %v4427_v45 = vunpack.i.l.bf16 %v4426_v15  ;;  %v4403_v6 = vunpack.i.h.bf16 %v5624_v4 }
 0x29d   : > { %3963 = vmatprep.subr.bf16.mxu0 %v5656_v39  ;;  %3981 = vmatpush1.bf16.msra.mxu1 %v5658_v58  ;;  %v4453_v49 = vunpack.i.h.bf16 %v5660_v52  ;;  %v4452_v12 = vunpack.i.l.bf16 %v5660_v52 }
 0x29e   : > { %v776_v51 = vsel %vm614_vm9, %v4427_v45, %v4417_v22  ;;  %v779_v57 = vsel %vm614_vm9, %v4428_v5, %v4422_v9  ;;  %3983 = vmatprep.subr.bf16.mxu1 %v5662_v24  ;;  %v5682_v9 = vpack.c.bf16 %v4398_v0, %v4397_v30 }
 0x29f   : > { %v4431_v20 = vpop.permute.xlu0 %4430  ;;  %v5669_v41 = vpack.c.bf16 %v779_v57, %v776_v51  ;;  %v793_v8 = vsel %vm614_vm9, %v4453_v49, %v4398_v0  ;;  %v792_v59 = vsel %vm614_vm9, %v4452_v12, %v4453_v49  ;;  %v4368_v0 = vunpack.i.h.bf16 %v5614_v61 }
 0x2a0   : > { %v770_v62 = vpop.permute.xlu1 %769  ;;  %v4433_v26 = vunpack.i.h.bf16 %v4431_v20  ;;  %v4432_v27 = vunpack.i.l.bf16 %v4431_v20 }
 0x2a1   : > { %3965 = vmatpush1.bf16.msra.mxu0 %v5669_v41 }
 0x2a2   : > { %v784_v23 = vsel %vm614_vm9, %v4433_v26, %v4392_v60  ;;  %v783_v32 = vsel %vm614_vm9, %v4432_v27, %v4433_v26 }
 0x2a3   : > { %v4441_v38 = vpop.permute.xlu0 %4440  ;;  %v5678_v46 = vpack.c.bf16 %v786_v36, %v783_v32  ;;  %v5680_v47 = vpack.c.bf16 %v787_v1, %v784_v23 }
 0x2a4   : > { %v4461_v10 = vpop.permute.xlu1 %4460  ;;  %v4443_v19 = vunpack.i.h.bf16 %v4441_v38  ;;  %v4442_v21 = vunpack.i.l.bf16 %v4441_v38 }
 0x2a5   : > { %3967 = vmatprep.subr.bf16.mxu0 %v5678_v46  ;;  %3985 = vmatpush1.bf16.msra.mxu1 %v5680_v47  ;;  %v4463_v15 = vunpack.i.h.bf16 %v4461_v10  ;;  %v4462_v26 = vunpack.i.l.bf16 %v4461_v10  ;;  %v4377_v10 = vunpack.i.l.bf16 %v5612_v53 }
 0x2a6   : > { %v782_v14 = vsel %vm614_vm9, %v4442_v21, %v4432_v27  ;;  %v785_v54 = vsel %vm614_vm9, %v4443_v19, %v4437_v37  ;;  %3987 = vmatprep.subr.bf16.mxu1 %v5682_v9  ;;  %v4402_v37 = vunpack.i.l.bf16 %v5624_v4  ;;  %v4378_v27 = vunpack.i.h.bf16 %v5612_v53 }
 0x2a7   : > { %v4446_v3 = vpop.permute.xlu0 %4445  ;;  %v5691_v60 = vpack.c.bf16 %v785_v54, %v782_v14  ;;  %v1183_v23 = vsel %vm6500_vm1, %v4463_v15, %v4403_v6  ;;  %v5724_v21 = vsel %vm614_vm9, %v770_v62, %v5626_v63  ;;  %v702_v14 = vld [vmem:[%s6484_s4] sm:$0xff]  ;;  %v1182_v53 = vsel %vm6500_vm1, %v4462_v26, %v4463_v15 }
 0x2a8   : > { %v5693_v13 = vpop.permute.xlu1 %4470  ;;  %v4448_v40 = vunpack.i.h.bf16 %v4446_v3  ;;  %v4447_v22 = vunpack.i.l.bf16 %v4446_v3  ;;  %v1180_v54 = vsel %vm6500_vm1, %v4368_v0, %v4402_v37  ;;  %v1181_v3 = vsel %vm6500_vm1, %v4378_v27, %v4462_v26 }
 0x2a9   : > { %3969 = vmatpush1.bf16.msra.mxu0 %v5691_v60 }
 0x2aa   : > { %v790_v42 = vsel %vm614_vm9, %v4448_v40, %v4397_v30  ;;  %v789_v17 = vsel %vm614_vm9, %v4447_v22, %v4448_v40  ;;  %v4367_v30 = vunpack.i.l.bf16 %v5614_v61 }
 0x2ab   : > { %v4456_v52 = vpop.permute.xlu0 %4455  ;;  %v5700_v5 = vpack.c.bf16 %v792_v59, %v789_v17  ;;  %v5702_v45 = vpack.c.bf16 %v793_v8, %v790_v42 }
 0x2ac   : > { %v5706_v51 = vpop.permute.xlu1 %4475  ;;  %v4458_v57 = vunpack.i.h.bf16 %v4456_v52  ;;  %v4457_v20 = vunpack.i.l.bf16 %v4456_v52  ;;  %v1179_v8 = vsel %vm6500_vm1, %v4367_v30, %v4368_v0  ;;  %v1178_v42 = vsel %vm6500_vm1, %v4377_v10, %v4367_v30  ;;  %v5744_v52 = vld [vmem:[#allocation2] sm:$0xff] }
 0x2ad   : > { %3971 = vmatprep.subr.bf16.mxu0 %v5700_v5  ;;  %3989 = vmatpush1.bf16.msra.mxu1 %v5702_v45  ;;  %v4478_v32 = vunpack.i.h.bf16 %v5706_v51  ;;  %v4477_v61 = vunpack.i.l.bf16 %v5706_v51  ;;  %v3990_v15 = vpack.c.bf16 %v1182_v53, %v1179_v8  ;;  %v3992_v51 = vpack.c.bf16 %v1181_v3, %v1178_v42 }
 0x2ae   : > { %v788_v1 = vsel %vm614_vm9, %v4457_v20, %v4447_v22  ;;  %v791_v4 = vsel %vm614_vm9, %v4458_v57, %v4452_v12  ;;  %924 = vmatprep.subr.mxu1 %v5626_v63  ;;  %v4006_v12 = vpack.c.bf16 %v4403_v6, %v4402_v37  ;;  %v4473_v6 = vunpack.i.h.bf16 %v5693_v13 }
 0x2af   : > { %v768_v36 = vpop.permute.xlu0 %767  ;;  %v5719_v38 = vpack.c.bf16 %v791_v4, %v788_v1  ;;  %v4010_v22 = vpack.c.bf16 %v4478_v32, %v4477_v61  ;;  %v4472_v37 = vunpack.i.l.bf16 %v5693_v13  ;;  %v4373_v20 = vunpack.i.h.bf16 %v5618_v43 }
 0x2b0   : > { %v4486_v19 = vpop.permute.xlu1 %4485  ;;  %v5727_v49 = vsel %vm614_vm9, %v768_v36, %v770_v62  ;;  %v4008_v62 = vpack.c.bf16 %v1183_v23, %v1180_v54  ;;  %v4383_v0 = vunpack.i.h.bf16 %v5622_v56  ;;  %v4382_v30 = vunpack.i.l.bf16 %v5622_v56 }
 0x2b1   : > { %3973 = vmatpush1.bf16.msra.mxu0 %v5719_v38  ;;  %925 = vmatpush1.msra.mxu1 %v5724_v21  ;;  %v4487_v57 = vunpack.i.l.bf16 %v4486_v19  ;;  %v4488_v26 = vunpack.i.h.bf16 %v4486_v19  ;;  %v4372_v10 = vunpack.i.l.bf16 %v5618_v43  ;;  %v1188_v54 = vsel %vm6500_vm1, %v4472_v37, %v4473_v6 }
 0x2b2   : > { %853 = vmatprep.subr.mxu0 %v5727_v49  ;;  %4007 = vmatprep.subr.bf16.mxu1 %v4006_v12  ;;  %v1187_v12 = vsel %vm6500_vm1, %v4383_v0, %v4472_v37 }
 0x2b3   : > { %v766_v40 = vpop.permute.xlu0 %765  ;;  %3925 = vmatmul.mubr.msk.f32.vlgmr.msra.gmra.mrb[2].mxu1 %vm833_vm14, %v702_v14  ;;  %v1193_v56 = vsel %vm6500_vm1, %v4373_v20, %v4487_v57  ;;  %v1194_v43 = vsel %vm6500_vm1, %v4487_v57, %v4488_v26 }
 0x2b4   : > { %v4491_v17 = vpop.permute.xlu1 %4490  ;;  %v5742_v59 = vsel %vm614_vm9, %v766_v40, %v768_v36  ;;  %4009 = vmatpush1.bf16.msra.mxu1 %v4008_v62  ;;  %1379 = vmatprep.mubr.f32.mxu1 %v5744_v52 }
 0x2b5   : > { %4011 = vmatprep.subr.bf16.mxu1 %v4010_v22  ;;  %854 = vmatpush1.msra.mxu0 %v5742_v59  ;;  %v4493_v13 = vunpack.i.h.bf16 %v4491_v17  ;;  %v4492_v1 = vunpack.i.l.bf16 %v4491_v17 }
 0x2b6   : > { %3991 = vmatprep.subr.bf16.mxu0 %v3990_v15  ;;  %3924 = vmatmul.mubr.msk.f32.vlgmr.msra.gmra.mrb[2].mxu0 %vm833_vm14, %v702_v14  ;;  %v1189_v14 = vsel %vm6500_vm1, %v4473_v6, %v4478_v32 }
 0x2b7   : > { %v4466_v27 = vpop.permute.xlu0 %4465  ;;  %3993 = vmatpush1.bf16.msra.mxu0 %v3992_v51  ;;  %1308 = vmatprep.mubr.f32.mxu0 %v5744_v52  ;;  %v1195_v42 = vsel %vm6500_vm1, %v4488_v26, %v4493_v13  ;;  %v4014_v6 = vpack.c.bf16 %v4493_v13, %v4492_v1 }
 0x2b8   : > { %v4501_v4 = vpop.permute.xlu1 %4500  ;;  %v4468_v23 = vunpack.i.h.bf16 %v4466_v27  ;;  %v4467_v36 = vunpack.i.l.bf16 %v4466_v27 }
 0x2b9   : > { %v4503_v37 = vunpack.i.h.bf16 %v4501_v4  ;;  %v4502_v51 = vunpack.i.l.bf16 %v4501_v4 }
 0x2ba   : > { %v1184_v19 = vsel %vm6500_vm1, %v4382_v30, %v4467_v36  ;;  %v1186_v53 = vsel %vm6500_vm1, %v4468_v23, %v4477_v61  ;;  %v1185_v3 = vsel %vm6500_vm1, %v4467_v36, %v4468_v23 }
 0x2bb   : > { %v4481_v62 = vpop.permute.xlu0 %4480  ;;  %v3994_v40 = vpack.c.bf16 %v1188_v54, %v1185_v3  ;;  %v4012_v22 = vpack.c.bf16 %v1189_v14, %v1186_v53  ;;  %v3996_v8 = vpack.c.bf16 %v1187_v12, %v1184_v19  ;;  %v1200_v54 = vsel %vm6500_vm1, %v4502_v51, %v4503_v37 }
 0x2bc   : > { %v4511_v17 = vpop.permute.xlu1 %4510  ;;  %v4483_v32 = vunpack.i.h.bf16 %v4481_v62  ;;  %v4482_v15 = vunpack.i.l.bf16 %v4481_v62 }
 0x2bd   : > { %v4513_v20 = vunpack.i.h.bf16 %v4511_v17  ;;  %v4512_v0 = vunpack.i.l.bf16 %v4511_v17  ;;  %3995 = vmatprep.subr.bf16.mxu0 %v3994_v40  ;;  %4013 = vmatpush1.bf16.msra.mxu1 %v4012_v22 }
 0x2be   : > { %v1190_v61 = vsel %vm6500_vm1, %v4372_v10, %v4482_v15  ;;  %v1192_v30 = vsel %vm6500_vm1, %v4483_v32, %v4492_v1  ;;  %3997 = vmatpush1.bf16.msra.mxu0 %v3996_v8  ;;  %4015 = vmatprep.subr.bf16.mxu1 %v4014_v6  ;;  %v1191_v57 = vsel %vm6500_vm1, %v4482_v15, %v4483_v32  ;;  %v3926_v32 = vld [vmem:[%s6484_s4 + $0x8] sm:$0xff] }
 0x2bf   : > { %v4496_v27 = vpop.permute.xlu0 %4495  ;;  %v3998_v26 = vpack.c.bf16 %v1194_v43, %v1191_v57  ;;  %v4016_v23 = vpack.c.bf16 %v1195_v42, %v1192_v30  ;;  %v4000_v36 = vpack.c.bf16 %v1193_v56, %v1190_v61  ;;  %v4018_v4 = vpack.c.bf16 %v4513_v20, %v4512_v0 }
 0x2c0   : > { %v1174_v12 = vpop.permute.xlu1 %1173  ;;  %v4498_v13 = vunpack.i.h.bf16 %v4496_v27  ;;  %v4497_v14 = vunpack.i.l.bf16 %v4496_v27  ;;  %v1201_v10 = vsel %vm6500_vm1, %v4503_v37, %v4513_v20  ;;  %v5150_v20 = vmov 2  }
 0x2c1   : > { %3999 = vmatprep.subr.bf16.mxu0 %v3998_v26  ;;  %4017 = vmatpush1.bf16.msra.mxu1 %v4016_v23 }
 0x2c2   : > { %v1198_v1 = vsel %vm6500_vm1, %v4498_v13, %v4512_v0  ;;  %4001 = vmatpush1.bf16.msra.mxu0 %v4000_v36  ;;  %4019 = vmatprep.subr.bf16.mxu1 %v4018_v4  ;;  %v1197_v19 = vsel %vm6500_vm1, %v4497_v14, %v4498_v13 }
 0x2c3   : > { %v4506_v53 = vpop.permute.xlu0 %4505  ;;  %v4002_v3 = vpack.c.bf16 %v1200_v54, %v1197_v19  ;;  %v4020_v62 = vpack.c.bf16 %v1201_v10, %v1198_v1  ;;  %4515 = vset.pattern.permute.xlu1 %v5150_v20  ;;  %v1390_v1 = vld [vmem:[%s6486_s6] sm:$0xff] }
 0x2c4   : > { %v1176_v56 = vpop.permute.xlu1 %1175  ;;  %v4508_v40 = vunpack.i.h.bf16 %v4506_v53  ;;  %v4507_v22 = vunpack.i.l.bf16 %v4506_v53  ;;  %1554 = vperm.xlu1 %4515, %v5609_v18  }
 0x2c5   : > { %4003 = vmatprep.subr.bf16.mxu0 %v4002_v3  ;;  %4021 = vmatpush1.bf16.msra.mxu1 %v4020_v62  ;;  %v1204_v15 = vsel %vm6500_vm1, %v1174_v12, %v1176_v56 }
 0x2c6   : > { %v1196_v8 = vsel %vm6500_vm1, %v4507_v22, %v4497_v14  ;;  %v1199_v43 = vsel %vm6500_vm1, %v4508_v40, %v4502_v51  ;;  %1331 = vmatprep.subr.mxu1 %v1176_v56  ;;  %v1738_v40 = vld [vmem:[#allocation3 + $0x28] sm:$0xff] }
 0x2c7   : > { %v1172_v42 = vpop.permute.xlu0 %1171  ;;  %v4004_v17 = vpack.c.bf16 %v1199_v43, %v1196_v8 }
 0x2c8   : > { %v1203_v6 = vsel %vm6500_vm1, %v1172_v42, %v1174_v12 }
 0x2c9   : > { %4005 = vmatpush1.bf16.msra.mxu0 %v4004_v17  ;;  %1332 = vmatpush1.msra.mxu1 %v1204_v15 }
 0x2ca   : > { %1260 = vmatprep.subr.mxu0 %v1203_v6  ;;  %3928 = vmatmul.mubr.msk.f32.vlgmr.msra.gmra.mrb[4].mxu1 %vm833_vm14, %v3926_v32 }
 0x2cb   : > { %v1170_v37 = vpop.permute.xlu0 %1169  ;;  %1536 = vmatprep.mubr.f32.mxu1 %v5744_v52 }
 0x2cc   : > { %v1202_v51 = vsel %vm6500_vm1, %v1170_v37, %v1172_v42 }
 0x2cd   : > { %1261 = vmatpush1.msra.mxu0 %v1202_v51 }
 0x2ce   : > { %3927 = vmatmul.mubr.msk.f32.vlgmr.msra.gmra.mrb[4].mxu0 %vm833_vm14, %v3926_v32 }
 0x2cf   : > { %1465 = vmatprep.mubr.f32.mxu0 %v5744_v52 }
 0x2dc   : > { %v1103_v27 = vpop.permute.xlu0 %1102 }
 0x386   : > { %v5786_v0 = vpop.f32.mrb[2].mxu1 }
 0x387   : > { %v5788_v61 = vpop.f32.mrb[3].mxu1 }
 0x389   : > { %v5790_v30 = vpop.f32.mrb[2].mxu0 }
 0x38a   : > { %v5792_v57 = vpop.f32.mrb[3].mxu0 }
 0x39d   : > { %v1381_v26 = vpop.f32.mrb[4].mxu1 }
 0x39e   : > { %v1383_v23 = vpop.f32.mrb[5].mxu1  ;;  %v1382_v36 = vadd.f32 %v1381_v26, %v1103_v27 }
 0x39f   : > { %v1384_v12 = vadd.f32 %v1383_v23, %v1103_v27 }
 0x3a0   : > { %v1388_v13 = vmax.f32 %v1382_v36, 0.0 }
 0x3a1   : > { %v1389_v14 = vmax.f32 %v1384_v12, 0.0  ;;  %v1310_v4 = vpop.f32.mrb[4].mxu0 }
 0x3a2   : > { %v1311_v54 = vadd.f32 %v1310_v4, %v1103_v27  ;;  %v1312_v10 = vpop.f32.mrb[5].mxu0 }
 0x3a3   : > { %v1313_v19 = vadd.f32 %v1312_v10, %v1103_v27  ;;  %1472 = vmatprep.subr.mxu1 %v1389_v14 }
 0x3a4   : > { %1473 = vmatpush1.msra.mxu1 %v1388_v13  ;;  %v1386_v3 = vmax.f32 %v1311_v54, 0.0 }
 0x3a5   : > { %v1387_v53 = vmax.f32 %v1313_v19, 0.0  ;;  %4039 = vmatprep.subr.bf16.mxu1 %v5629_v48  ;;  %3930 = vmatmul.mubr.msk.f32.vlgmr.msra.gmra.mrb[6].mxu1 %vm1397_vm10, %v1390_v1  ;;  %v3931_v48 = vld [vmem:[%s6484_s4 + $0x10] sm:$0xff] }
 0x3a6   : > { %4041 = vmatpush1.bf16.msra.mxu1 %v5639_v50  ;;  %1695 = vmatprep.mubr.f32.mxu1 %v5744_v52 }
 0x3a7   : > { %1401 = vmatprep.subr.mxu0 %v1387_v53  ;;  %4043 = vmatprep.subr.bf16.mxu1 %v5644_v44 }
 0x3a8   : > { %1402 = vmatpush1.msra.mxu0 %v1386_v3 }
 0x3a9   : > { %3929 = vmatmul.mubr.msk.f32.vlgmr.msra.gmra.mrb[6].mxu0 %vm1397_vm10, %v1390_v1  ;;  %4023 = vmatprep.subr.bf16.mxu0 %v5636_v7 }
 0x3aa   : > { %4025 = vmatpush1.bf16.msra.mxu0 %v5642_v11  ;;  %4045 = vmatpush1.bf16.msra.mxu1 %v5658_v58  ;;  %v1555_v58 = vpop.permute.xlu1 %1554 }
 0x3ab   : > { %4027 = vmatprep.subr.bf16.mxu0 %v5656_v39  ;;  %4047 = vmatprep.subr.bf16.mxu1 %v5662_v24 }
 0x3ac   : > { %1624 = vmatprep.mubr.f32.mxu0 %v5744_v52 }
 0x3ae   : > { %4029 = vmatpush1.bf16.msra.mxu0 %v5669_v41  ;;  %4049 = vmatpush1.bf16.msra.mxu1 %v5680_v47 }
 0x3af   : > { %4031 = vmatprep.subr.bf16.mxu0 %v5678_v46  ;;  %4051 = vmatprep.subr.bf16.mxu1 %v5682_v9 }
 0x3b2   : > { %4033 = vmatpush1.bf16.msra.mxu0 %v5691_v60  ;;  %4053 = vmatpush1.bf16.msra.mxu1 %v5702_v45 }
 0x3b3   : > { %4035 = vmatprep.subr.bf16.mxu0 %v5700_v5  ;;  %1647 = vmatprep.subr.mxu1 %v5626_v63 }
 0x3b6   : > { %4037 = vmatpush1.bf16.msra.mxu0 %v5719_v38  ;;  %1648 = vmatpush1.msra.mxu1 %v5724_v21 }
 0x3b7   : > { %1576 = vmatprep.subr.mxu0 %v5727_v49  ;;  %3933 = vmatmul.mubr.msk.f32.vlgmr.msra.gmra.mrb[8].mxu1 %vm833_vm14, %v3931_v48 }
 0x3b8   : > { %2123 = vmatprep.mubr.f32.mxu1 %v5744_v52 }
 0x3ba   : > { %1577 = vmatpush1.msra.mxu0 %v5742_v59 }
 0x3bb   : > { %3932 = vmatmul.mubr.msk.f32.vlgmr.msra.gmra.mrb[8].mxu0 %vm833_vm14, %v3931_v48 }
 0x3bc   : > { %2052 = vmatprep.mubr.f32.mxu0 %v5744_v52 }
 0x478   : > { %v5828_v63 = vpop.f32.mrb[6].mxu1 }
 0x479   : > { %v5830_v7 = vpop.f32.mrb[7].mxu1 }
 0x47c   : > { %v5832_v50 = vpop.f32.mrb[6].mxu0 }
 0x47d   : > { %v5834_v11 = vpop.f32.mrb[7].mxu0 }
 0x48a   : > { %v1697_v44 = vpop.f32.mrb[8].mxu1 }
 0x48b   : > { %v1699_v39 = vpop.f32.mrb[9].mxu1  ;;  %v1698_v46 = vadd.f32 %v1697_v44, %v1555_v58 }
 0x48c   : > { %v1700_v60 = vadd.f32 %v1699_v39, %v1555_v58 }
 0x48d   : > { %v1704_v21 = vmax.f32 %v1698_v46, 0.0 }
 0x48e   : > { %v1626_v24 = vpop.f32.mrb[8].mxu0  ;;  %v1705_v59 = vmax.f32 %v1700_v60, 0.0 }
 0x48f   : > { %v1627_v41 = vadd.f32 %v1626_v24, %v1555_v58  ;;  %v1628_v47 = vpop.f32.mrb[9].mxu0  ;;  %v1708_v62 = vmul.f32 %v1704_v21, %v5274_v31 }
 0x490   : > { %v1629_v9 = vadd.f32 %v1628_v47, %v1555_v58  ;;  %v1709_v56 = vmul.f32 %v1705_v59, %v5272_v29 }
 0x491   : > { %v1702_v5 = vmax.f32 %v1627_v41, 0.0 }
 0x492   : > { %v1703_v45 = vmax.f32 %v1629_v9, 0.0 }
 0x493   : > { %v1706_v38 = vmul.f32 %v1702_v5, %v5265_v16 }
 0x494   : > { %v1707_v49 = vmul.f32 %v1703_v45, %v5267_v25 }
 0x495   : > { %1714 = vrot.lane.b32.xlu1 %v1706_v38, %s5132_s25 }
 0x496   : > { %1716 = vrot.lane.b32.xlu0 %v1707_v49, %s5132_s25 }
 0x499   : > { %1718 = vrot.lane.b32.xlu1 %v1708_v62, %s5132_s25 }
 0x49a   : > { %1720 = vrot.lane.b32.xlu0 %v1709_v56, %s5132_s25 }
 0x49d   : > { %1808 = vrot.lane.b32.xlu1 %v1738_v40, %s5134_s27 }
 0x507   : > { %v1715_v22 = vpop.permute.xlu1 %1714 }
 0x508   : > { %1729 = vst.msk [vmem:[#allocation3 + $0x8] sm:$0xff] %vm592_vm5, %v1715_v22  ;;  %v1717_v8 = vpop.permute.xlu0 %1716 }
 0x509   : > { %v1722_v32 = vsel %vm383_vm2, %v1715_v22, %v1717_v8 }
 0x50b   : > { %v1719_v43 = vpop.permute.xlu1 %1718 }
 0x50c   : > { %v1721_v42 = vpop.permute.xlu0 %1720  ;;  %v1723_v27 = vsel %vm383_vm2, %v1717_v8, %v1719_v43 }
 0x50d   : > { %v1724_v17 = vsel %vm383_vm2, %v1719_v43, %v1721_v42  ;;  %v4531_v26 = vpack.i.bf16 %v5744_v52, %v1723_v27  ;;  %v4576_v36 = vpack.i.bf16 %v1723_v27, %v1722_v32 }
 0x50e   : > { %1732 = vst.msk [vmem:[#allocation3 + $0x20] sm:$0xff] %vm596_vm6, %v1724_v17 }
 0x50f   : > { %v1734_v15 = vld [vmem:[#allocation3 + $0x8] sm:$0xff]  ;;  %v1809_v12 = vpop.permute.xlu1 %1808 }
 0x510   : > { %v4526_v6 = vpack.i.bf16 %v1722_v32, %v1734_v15 }
 0x512   : > { %4527 = vrot.lane.b32.xlu1 %v4526_v6, %s5143_s19 }
 0x515   : > { %v1737_v37 = vld [vmem:[#allocation3 + $0x20] sm:$0xff] }
 0x516   : > { %4537 = vrot.lane.b32.xlu1 %v4526_v6, %s5144_s20  ;;  %v4516_v51 = vpack.i.bf16 %v1734_v15, %v1737_v37  ;;  %v4551_v23 = vpack.i.bf16 %v1737_v37, %v1723_v27 }
 0x518   : > { %4517 = vrot.lane.b32.xlu0 %v4516_v51, %s5134_s27 }
 0x51a   : > { %4547 = vrot.lane.b32.xlu1 %v4526_v6, %s5145_s21 }
 0x51c   : > { %4522 = vrot.lane.b32.xlu0 %v4516_v51, %s5133_s26 }
 0x51e   : > { %4557 = vrot.lane.b32.xlu1 %v4526_v6, %s5146_s22 }
 0x520   : > { %4532 = vrot.lane.b32.xlu0 %v4531_v26, %s5143_s19 }
 0x522   : > { %4567 = vrot.lane.b32.xlu1 %v4526_v6, %s5147_s23 }
 0x524   : > { %4542 = vrot.lane.b32.xlu0 %v4531_v26, %s5144_s20 }
 0x526   : > { %1834 = vrot.lane.b32.xlu1 %v1737_v37, %s5135_s28 }
 0x528   : > { %4552 = vrot.lane.b32.xlu0 %v4551_v23, %s5145_s21 }
 0x52a   : > { %4577 = vrot.lane.b32.xlu1 %v4576_v36, %s5134_s27 }
 0x52c   : > { %4562 = vrot.lane.b32.xlu0 %v4551_v23, %s5146_s22 }
 0x52e   : > { %4582 = vrot.lane.b32.xlu1 %v4576_v36, %s5133_s26 }
 0x530   : > { %4572 = vrot.lane.b32.xlu0 %v4551_v23, %s5147_s23 }
 0x532   : > { %1830 = vrot.lane.b32.xlu1 %v1722_v32, %s5135_s28 }
 0x534   : > { %1822 = vrot.lane.b32.xlu0 %v1738_v40, %s5133_s26 }
 0x536   : > { %1836 = vrot.lane.b32.xlu1 %v1738_v40, %s5135_s28 }
 0x538   : > { %1832 = vrot.lane.b32.xlu0 %v1723_v27, %s5135_s28 }
 0x53c   : > { %1828 = vrot.lane.b32.xlu0 %v1734_v15, %s5135_s28 }
 0x540   : > { %4587 = vrot.lane.b32.xlu0 %v4526_v6, %s5148_s24 }
 0x584   : > { %v4528_v13 = vpop.permute.xlu1 %4527 }
 0x585   : > { %v4529_v41 = vunpack.i.l.bf16 %v4528_v13  ;;  %v4530_v23 = vunpack.i.h.bf16 %v4528_v13 }
 0x588   : > { %v4538_v14 = vpop.permute.xlu1 %4537 }
 0x589   : > { %v4539_v45 = vunpack.i.l.bf16 %v4538_v14  ;;  %v4540_v56 = vunpack.i.h.bf16 %v4538_v14 }
 0x58a   : > { %v5872_v4 = vpop.permute.xlu0 %4517 }
 0x58b   : > { %v4519_v17 = vunpack.i.l.bf16 %v5872_v4  ;;  %v1763_v32 = vsel %vm1013_vm8, %v4539_v45, %v4540_v56 }
 0x58c   : > { %v5874_v54 = vpop.permute.xlu1 %4547 }
 0x58d   : > { %v4549_v59 = vunpack.i.l.bf16 %v5874_v54 }
 0x58e   : > { %v5876_v10 = vpop.permute.xlu0 %4522 }
 0x58f   : > { %v4524_v37 = vunpack.i.l.bf16 %v5876_v10 }
 0x590   : > { %v4558_v1 = vpop.permute.xlu1 %4557 }
 0x591   : > { %v4559_v39 = vunpack.i.l.bf16 %v4558_v1  ;;  %v4560_v15 = vunpack.i.h.bf16 %v4558_v1 }
 0x592   : > { %v4533_v19 = vpop.permute.xlu0 %4532 }
 0x593   : > { %v4534_v53 = vunpack.i.l.bf16 %v4533_v19  ;;  %v4535_v48 = vunpack.i.h.bf16 %v4533_v19  ;;  %v1785_v19 = vsel %vm1037_vm0, %v4559_v39, %v4560_v15 }
 0x594   : > { %v5878_v3 = vpop.permute.xlu1 %4567 }
 0x595   : > { %v4606_v44 = vpack.i.bf16 %v4534_v53, %v1723_v27  ;;  %v4569_v24 = vunpack.i.l.bf16 %v5878_v3  ;;  %v1751_v47 = vsel %vm1001_vm7, %v4535_v48, %v4529_v41  ;;  %v1813_v48 = vsel %vm662_vm12, %v4519_v17, %v1809_v12 }
 0x596   : > { %v5880_v58 = vpop.permute.xlu0 %4542  ;;  %v4596_v38 = vpack.i.bf16 %v1751_v47, %v5744_v52  ;;  %v1752_v12 = vsel %vm1001_vm7, %v4529_v41, %v4530_v23 }
 0x597   : > { %4607 = vrot.lane.b32.xlu1 %v4606_v44, %s5148_s24  ;;  %v4591_v46 = vpack.i.bf16 %v4569_v24, %v4559_v39  ;;  %v4545_v9 = vunpack.i.h.bf16 %v5880_v58  ;;  %v4544_v21 = vunpack.i.l.bf16 %v5880_v58  ;;  %v1753_v44 = vsel %vm1001_vm7, %v4530_v23, %v4534_v53 }
 0x598   : > { %v5888_v5 = vpop.permute.xlu1 %1834  ;;  %v4525_v39 = vunpack.i.h.bf16 %v5876_v10 }
 0x599   : > { %4592 = vrot.lane.b32.xlu0 %v4591_v46, %s5148_s24  ;;  %v1762_v49 = vsel %vm1013_vm8, %v4545_v9, %v4539_v45  ;;  %v1764_v8 = vsel %vm1013_vm8, %v4540_v56, %v4544_v21  ;;  %v4520_v56 = vunpack.i.h.bf16 %v5872_v4  ;;  %v4570_v4 = vunpack.i.h.bf16 %v5878_v3 }
 0x59a   : > { %v4553_v60 = vpop.permute.xlu0 %4552  ;;  %v4601_v22 = vpack.i.bf16 %v4549_v59, %v1762_v49  ;;  %v4621_v6 = vpack.i.bf16 %v1764_v8, %v1763_v32  ;;  %v4616_v49 = vpack.i.bf16 %v1753_v44, %v1752_v12  ;;  %v5151_v44 = vmov 3  }
 0x59b   : > { %v4554_v47 = vunpack.i.l.bf16 %v4553_v60  ;;  %4736 = vset.pattern.permute.xlu0 %v5151_v44 }
 0x59c   : > { %v4578_v40 = vpop.permute.xlu1 %4577 }
 0x59d   : > { %4597 = vrot.lane.b32.xlu0 %v4596_v38, %s5148_s24  ;;  %v4580_v27 = vunpack.i.h.bf16 %v4578_v40  ;;  %v4579_v26 = vunpack.i.l.bf16 %v4578_v40  ;;  %v4550_v38 = vunpack.i.h.bf16 %v5874_v54  ;;  %v4555_v40 = vunpack.i.h.bf16 %v4553_v60 }
 0x59e   : > { %v5895_v62 = vpop.permute.xlu0 %4562 }
 0x59f   : > { %v4564_v43 = vunpack.i.l.bf16 %v5895_v62  ;;  %v1812_v9 = vsel %vm662_vm12, %v4580_v27, %v4519_v17  ;;  %v1811_v13 = vsel %vm662_vm12, %v4579_v26, %v4580_v27  ;;  %v1774_v17 = vsel %vm6503_vm3, %v4549_v59, %v4550_v38 }
 0x5a0   : > { %v4583_v36 = vpop.permute.xlu1 %4582  ;;  %v4651_v53 = vpack.i.bf16 %v1812_v9, %v1811_v13  ;;  %v1810_v41 = vsel %vm662_vm12, %v4520_v56, %v4579_v26 }
 0x5a1   : > { %4602 = vrot.lane.b32.xlu0 %v4601_v22, %s5148_s24  ;;  %v1786_v51 = vsel %vm1037_vm0, %v4560_v15, %v4564_v43  ;;  %v4584_v45 = vunpack.i.l.bf16 %v4583_v36  ;;  %v1775_v22 = vsel %vm6503_vm3, %v4550_v38, %v4554_v47 }
 0x5a2   : > { %v4573_v42 = vpop.permute.xlu0 %4572  ;;  %v4636_v46 = vpack.i.bf16 %v1786_v51, %v1785_v19  ;;  %v4626_v15 = vpack.i.bf16 %v1775_v22, %v1774_v17  ;;  %v1796_v19 = vsel %vm6501_vm4, %v4569_v24, %v4570_v4  ;;  %v2296_v24 = vld [vmem:[#allocation2 + $0x10] sm:$0xff] }
 0x5a3   : > { %v1824_v8 = vsel %vm1079_vm13, %v4525_v39, %v4584_v45  ;;  %v4574_v51 = vunpack.i.l.bf16 %v4573_v42  ;;  %v4575_v23 = vunpack.i.h.bf16 %v4573_v42  ;;  %v4585_v42 = vunpack.i.h.bf16 %v4583_v36 }
 0x5a4   : > { %v4661_v54 = vpack.i.bf16 %v1824_v8, %v1810_v41  ;;  %v1831_v60 = vpop.permute.xlu1 %1830 }
 0x5a5   : > { %4622 = vrot.lane.b32.xlu0 %v4621_v6, %s5148_s24  ;;  %v1776_v6 = vsel %vm6503_vm3, %v4554_v47, %v4555_v40  ;;  %v1826_v13 = vsel %vm1079_vm13, %v4585_v42, %v4524_v37  ;;  %v1825_v36 = vsel %vm1079_vm13, %v4584_v45, %v4585_v42  ;;  %v2295_v45 = vld [vmem:[#allocation2 + $0x8] sm:$0xff]  ;;  %vm6509_vm3 = vcmask 826368  }
 0x5a6   : > { %v1823_v14 = vpop.permute.xlu0 %1822  ;;  %v4631_v27 = vpack.i.bf16 %v1776_v6, %v4544_v21  ;;  %v1798_v21 = vsel %vm6501_vm4, %v4574_v51, %v4575_v23  ;;  %v4656_v12 = vpack.i.bf16 %v1826_v13, %v1825_v36 }
 0x5a7   : > { %v1827_v1 = vsel %vm1079_vm13, %v4524_v37, %v1823_v14  ;;  %v1797_v14 = vsel %vm6501_vm4, %v4570_v4, %v4574_v51  ;;  %v2298_v37 = vld [vmem:[#allocation2 + $0x20] sm:$0xff] }
 0x5a8   : > { %v4611_v58 = vpack.i.bf16 %v1827_v1, %v1813_v48  ;;  %v4565_v48 = vunpack.i.h.bf16 %v5895_v62  ;;  %v4641_v1 = vpack.i.bf16 %v1797_v14, %v1796_v19  ;;  %v4671_v39 = vpack.i.bf16 %v2295_v45, %v2298_v37 }
 0x5a9   : > { %4637 = vrot.lane.b32.xlu0 %v4636_v46, %s5148_s24  ;;  %v2297_v46 = vld [vmem:[#allocation2 + $0x18] sm:$0xff] }
 0x5aa   : > { %4612 = vrot.lane.b32.xlu1 %v4611_v58, %s5148_s24  ;;  %v1833_v32 = vpop.permute.xlu0 %1832  ;;  %v1787_v3 = vsel %vm1037_vm0, %v4564_v43, %v4565_v48  ;;  %v4666_v9 = vpack.i.bf16 %v2297_v46, %v2296_v24  ;;  %v1837_v43 = vpop.permute.xlu1 %1836 }
 0x5ab   : > { %v1839_v59 = vsel %vm6502_vm15, %v1831_v60, %v1833_v32  ;;  %v4646_v47 = vpack.i.bf16 %v1798_v21, %v1787_v3  ;;  %v1840_v62 = vsel %vm6502_vm15, %v1833_v32, %v5888_v5  ;;  %v1841_v10 = vsel %vm6502_vm15, %v5888_v5, %v1837_v43 }
 0x5ad   : > { %4652 = vrot.lane.b32.xlu0 %v4651_v53, %s5148_s24 }
 0x5ae   : > { %4617 = vrot.lane.b32.xlu1 %v4616_v49, %s5148_s24  ;;  %v1829_v26 = vpop.permute.xlu0 %1828 }
 0x5af   : > { %v1838_v58 = vsel %vm6502_vm15, %v1829_v26, %v1831_v60 }
 0x5b1   : > { %4662 = vrot.lane.b32.xlu0 %v4661_v54, %s5148_s24 }
 0x5b2   : > { %4627 = vrot.lane.b32.xlu1 %v4626_v15, %s5148_s24  ;;  %v4588_v5 = vpop.permute.xlu0 %4587 }
 0x5b3   : > { %v4590_v32 = vunpack.i.h.bf16 %v4588_v5  ;;  %v4589_v15 = vunpack.i.l.bf16 %v4588_v5 }
 0x5b5   : > { %1916 = vrot.lane.b32.xlu0 %v1839_v59, %s5148_s24  ;;  %v1923_v26 = vsel %vm6500_vm1, %v4589_v15, %v4590_v32 }
 0x5b6   : > { %4632 = vrot.lane.b32.xlu1 %v4631_v27, %s5148_s24 }
 0x5b9   : > { %1914 = vrot.lane.b32.xlu0 %v1838_v58, %s5148_s24 }
 0x5ba   : > { %4642 = vrot.lane.b32.xlu1 %v4641_v1, %s5148_s24 }
 0x5bd   : > { %4667 = vrot.lane.b32.xlu0 %v4666_v9, %s5137_s30 }
 0x5be   : > { %4647 = vrot.lane.b32.xlu1 %v4646_v47, %s5148_s24 }
 0x5c1   : > { %4677 = vrot.lane.b32.xlu0 %v4666_v9, %s5138_s11 }
 0x5c2   : > { %4657 = vrot.lane.b32.xlu1 %v4656_v12, %s5148_s24 }
 0x5c5   : > { %4687 = vrot.lane.b32.xlu0 %v4666_v9, %s5139_s12 }
 0x5c6   : > { %1918 = vrot.lane.b32.xlu1 %v1840_v62, %s5148_s24 }
 0x5c9   : > { %4697 = vrot.lane.b32.xlu0 %v4666_v9, %s5140_s15 }
 0x5ca   : > { %1920 = vrot.lane.b32.xlu1 %v1841_v10, %s5148_s24 }
 0x5cd   : > { %4707 = vrot.lane.b32.xlu0 %v4666_v9, %s5134_s27 }
 0x5ce   : > { %4672 = vrot.lane.b32.xlu1 %v4671_v39, %s5137_s30 }
 0x5d1   : > { %4717 = vrot.lane.b32.xlu0 %v4666_v9, %s5141_s16 }
 0x5d2   : > { %4682 = vrot.lane.b32.xlu1 %v4671_v39, %s5138_s11 }
 0x5d5   : > { %4727 = vrot.lane.b32.xlu0 %v4666_v9, %s5142_s18 }
 0x5d6   : > { %4692 = vrot.lane.b32.xlu1 %v4671_v39, %s5139_s12 }
 0x5d9   : > { %2382 = vrot.lane.b32.xlu0 %v2296_v24, %s6505_s17 }
 0x5da   : > { %4702 = vrot.lane.b32.xlu1 %v4671_v39, %s5140_s15  ;;  %s5160_s15 = smov 114  }
 0x5dd   : > { %2386 = vrot.lane.b32.xlu0 %v2298_v37, %s6505_s17 }
 0x5de   : > { %4712 = vrot.lane.b32.xlu1 %v4671_v39, %s5134_s27 }
 0x5e1   : > { %1847 = vperm.xlu0 %4736, %v5609_v18  }
 0x5e2   : > { %4722 = vrot.lane.b32.xlu1 %v4671_v39, %s5141_s16 }
 0x5e6   : > { %4732 = vrot.lane.b32.xlu1 %v4671_v39, %s5142_s18 }
 0x5ea   : > { %2384 = vrot.lane.b32.xlu1 %v2297_v46, %s6505_s17 }
 0x5ee   : > { %2380 = vrot.lane.b32.xlu1 %v2295_v45, %s6505_s17 }
 0x609   : > { %v4608_v38 = vpop.permute.xlu1 %4607 }
 0x60a   : > { %v4610_v49 = vunpack.i.h.bf16 %v4608_v38  ;;  %v4609_v53 = vunpack.i.l.bf16 %v4608_v38 }
 0x60b   : > { %v5978_v56 = vpop.permute.xlu0 %4592 }
 0x60c   : > { %v4070_v40 = vpack.c.bf16 %v4610_v49, %v4609_v53  ;;  %v1924_v23 = vsel %vm6500_vm1, %v4590_v32, %v4609_v53 }
 0x60e   : > { %4071 = vmatprep.subr.bf16.mxu1 %v4070_v40 }
 0x60f   : > { %v4598_v22 = vpop.permute.xlu0 %4597 }
 0x610   : > { %v4599_v54 = vunpack.i.l.bf16 %v4598_v22  ;;  %v4600_v4 = vunpack.i.h.bf16 %v4598_v22 }
 0x612   : > { %v1922_v14 = vsel %vm6500_vm1, %v4599_v54, %v4589_v15  ;;  %v4595_v54 = vunpack.i.h.bf16 %v5978_v56 }
 0x613   : > { %v4603_v8 = vpop.permute.xlu0 %4602 }
 0x614   : > { %v4605_v24 = vunpack.i.h.bf16 %v4603_v8  ;;  %v4604_v47 = vunpack.i.l.bf16 %v4603_v8 }
 0x617   : > { %v4623_v17 = vpop.permute.xlu0 %4622 }
 0x618   : > { %v4625_v59 = vunpack.i.h.bf16 %v4623_v17  ;;  %v4624_v19 = vunpack.i.l.bf16 %v4623_v17 }
 0x61a   : > { %v1928_v36 = vsel %vm6500_vm1, %v4604_v47, %v4624_v19  ;;  %v1929_v62 = vsel %vm6500_vm1, %v4624_v19, %v4625_v59 }
 0x61b   : > { %v5982_v18 = vpop.permute.xlu0 %4637 }
 0x61c   : > { %v5980_v41 = vpop.permute.xlu1 %4612  ;;  %v4639_v53 = vunpack.i.l.bf16 %v5982_v18 }
 0x61f   : > { %v5984_v51 = vpop.permute.xlu0 %4652 }
 0x620   : > { %v4618_v6 = vpop.permute.xlu1 %4617 }
 0x621   : > { %v4620_v60 = vunpack.i.h.bf16 %v4618_v6  ;;  %v4619_v27 = vunpack.i.l.bf16 %v4618_v6  ;;  %v4594_v6 = vunpack.i.l.bf16 %v5978_v56  ;;  %v4614_v56 = vunpack.i.l.bf16 %v5980_v41 }
 0x623   : > { %v1927_v48 = vsel %vm6500_vm1, %v4620_v60, %v4610_v49  ;;  %v1925_v1 = vsel %vm6500_vm1, %v4600_v4, %v4619_v27  ;;  %v1926_v44 = vsel %vm6500_vm1, %v4619_v27, %v4620_v60  ;;  %v5992_v42 = vpop.permute.xlu0 %4662  ;;  %v4640_v49 = vunpack.i.h.bf16 %v5982_v18 }
 0x624   : > { %v4628_v21 = vpop.permute.xlu1 %4627  ;;  %v4054_v58 = vpack.c.bf16 %v1926_v44, %v1923_v26  ;;  %v4072_v46 = vpack.c.bf16 %v1927_v48, %v1924_v23  ;;  %v4056_v3 = vpack.c.bf16 %v1925_v1, %v1922_v14  ;;  %v1934_v27 = vsel %vm6500_vm1, %v4594_v6, %v4639_v53 }
 0x625   : > { %v4630_v9 = vunpack.i.h.bf16 %v4628_v21  ;;  %v4629_v13 = vunpack.i.l.bf16 %v4628_v21  ;;  %v1935_v23 = vsel %vm6500_vm1, %v4639_v53, %v4640_v49  ;;  %v4615_v1 = vunpack.i.h.bf16 %v5980_v41 }
 0x626   : > { %4055 = vmatprep.subr.bf16.mxu0 %v4054_v58  ;;  %4073 = vmatpush1.bf16.msra.mxu1 %v4072_v46  ;;  %v4655_v58 = vunpack.i.h.bf16 %v5984_v51  ;;  %v4654_v46 = vunpack.i.l.bf16 %v5984_v51 }
 0x627   : > { %v1931_v12 = vsel %vm6500_vm1, %v4605_v24, %v4629_v13  ;;  %4057 = vmatpush1.bf16.msra.mxu0 %v4056_v3  ;;  %v1932_v43 = vsel %vm6500_vm1, %v4629_v13, %v4630_v9  ;;  %v5998_v37 = vpop.permute.xlu0 %1916  ;;  %v4664_v3 = vunpack.i.l.bf16 %v5992_v42 }
 0x628   : > { %v4633_v10 = vpop.permute.xlu1 %4632  ;;  %v4058_v45 = vpack.c.bf16 %v1932_v43, %v1929_v62  ;;  %v4060_v39 = vpack.c.bf16 %v1931_v12, %v1928_v36  ;;  %v4665_v12 = vunpack.i.h.bf16 %v5992_v42  ;;  %v4082_v43 = vpack.c.bf16 %v4615_v1, %v4614_v56 }
 0x629   : > { %v4635_v5 = vunpack.i.h.bf16 %v4633_v10  ;;  %v4634_v38 = vunpack.i.l.bf16 %v4633_v10  ;;  %v1942_v10 = vsel %vm6500_vm1, %v4655_v58, %v4614_v56 }
 0x62a   : > { %4059 = vmatprep.subr.bf16.mxu0 %v4058_v45  ;;  %v1941_v45 = vsel %vm6500_vm1, %v4654_v46, %v4655_v58 }
 0x62b   : > { %v1930_v40 = vsel %vm6500_vm1, %v4625_v59, %v4634_v38  ;;  %v1933_v22 = vsel %vm6500_vm1, %v4630_v9, %v4635_v5  ;;  %4061 = vmatpush1.bf16.msra.mxu0 %v4060_v39  ;;  %v4074_v8 = vpack.c.bf16 %v4635_v5, %v4634_v38  ;;  %v1915_v32 = vpop.permute.xlu0 %1914  ;;  %v1940_v39 = vsel %vm6500_vm1, %v4664_v3, %v4654_v46 }
 0x62c   : > { %v4643_v17 = vpop.permute.xlu1 %4642  ;;  %v4076_v15 = vpack.c.bf16 %v1933_v22, %v1930_v40 }
 0x62d   : > { %v4645_v4 = vunpack.i.h.bf16 %v4643_v17  ;;  %v4644_v60 = vunpack.i.l.bf16 %v4643_v17  ;;  %4075 = vmatprep.subr.bf16.mxu1 %v4074_v8 }
 0x62e   : > { %4077 = vmatpush1.bf16.msra.mxu1 %v4076_v15 }
 0x62f   : > { %v1937_v18 = vsel %vm6500_vm1, %v4595_v54, %v4644_v60  ;;  %v1938_v14 = vsel %vm6500_vm1, %v4644_v60, %v4645_v4  ;;  %v6010_v26 = vpop.permute.xlu0 %4667  ;;  %v3934_v54 = vld [vmem:[%s6484_s4 + $0x18] sm:$0xff] }
 0x630   : > { %v4648_v59 = vpop.permute.xlu1 %4647  ;;  %v4062_v19 = vpack.c.bf16 %v1938_v14, %v1935_v23  ;;  %v4064_v48 = vpack.c.bf16 %v1937_v18, %v1934_v27  ;;  %v4670_v60 = vunpack.i.h.bf16 %v6010_v26  ;;  %v4669_v27 = vunpack.i.l.bf16 %v6010_v26 }
 0x631   : > { %v4650_v44 = vunpack.i.h.bf16 %v4648_v59  ;;  %v4649_v21 = vunpack.i.l.bf16 %v4648_v59 }
 0x632   : > { %4063 = vmatprep.subr.bf16.mxu0 %v4062_v19  ;;  %v6043_v19 = vsel %vm614_vm9, %v4669_v27, %v4670_v60 }
 0x633   : > { %v1936_v24 = vsel %vm6500_vm1, %v4640_v49, %v4649_v21  ;;  %v1939_v47 = vsel %vm6500_vm1, %v4645_v4, %v4650_v44  ;;  %4065 = vmatpush1.bf16.msra.mxu0 %v4064_v48  ;;  %v4078_v9 = vpack.c.bf16 %v4650_v44, %v4649_v21  ;;  %v4678_v51 = vpop.permute.xlu0 %4677  ;;  %v1946_v4 = vsel %vm6500_vm1, %v1915_v32, %v5998_v37 }
 0x634   : > { %v4658_v13 = vpop.permute.xlu1 %4657  ;;  %v4080_v36 = vpack.c.bf16 %v1939_v47, %v1936_v24  ;;  %v4680_v59 = vunpack.i.h.bf16 %v4678_v51 }
 0x635   : > { %v4660_v41 = vunpack.i.h.bf16 %v4658_v13  ;;  %v4659_v62 = vunpack.i.l.bf16 %v4658_v13  ;;  %4079 = vmatprep.subr.bf16.mxu1 %v4078_v9 }
 0x636   : > { %4081 = vmatpush1.bf16.msra.mxu1 %v4080_v36 }
 0x637   : > { %v1945_v5 = vsel %vm6500_vm1, %v4660_v41, %v4615_v1  ;;  %v1943_v38 = vsel %vm6500_vm1, %v4665_v12, %v4659_v62  ;;  %4083 = vmatprep.subr.bf16.mxu1 %v4082_v43  ;;  %v1944_v49 = vsel %vm6500_vm1, %v4659_v62, %v4660_v41  ;;  %v4688_v17 = vpop.permute.xlu0 %4687 }
 0x638   : > { %v1919_v42 = vpop.permute.xlu1 %1918  ;;  %v4066_v53 = vpack.c.bf16 %v1944_v49, %v1941_v45  ;;  %v4084_v40 = vpack.c.bf16 %v1945_v5, %v1942_v10  ;;  %v4068_v22 = vpack.c.bf16 %v1943_v38, %v1940_v39  ;;  %v4690_v21 = vunpack.i.h.bf16 %v4688_v17 }
 0x639   : > { %v1947_v8 = vsel %vm6500_vm1, %v5998_v37, %v1919_v42  ;;  %v4679_v37 = vunpack.i.l.bf16 %v4678_v51  ;;  %v4689_v58 = vunpack.i.l.bf16 %v4688_v17 }
 0x63a   : > { %4067 = vmatprep.subr.bf16.mxu0 %v4066_v53  ;;  %4085 = vmatpush1.bf16.msra.mxu1 %v4084_v40 }
 0x63b   : > { %4069 = vmatpush1.bf16.msra.mxu0 %v4068_v22  ;;  %v4698_v32 = vpop.permute.xlu0 %4697 }
 0x63c   : > { %v1921_v15 = vpop.permute.xlu1 %1920  ;;  %2004 = vmatprep.subr.mxu0 %v1947_v8  ;;  %v4700_v41 = vunpack.i.h.bf16 %v4698_v32  ;;  %v4699_v62 = vunpack.i.l.bf16 %v4698_v32 }
 0x63d   : > { %2075 = vmatprep.subr.mxu1 %v1921_v15  ;;  %v1948_v6 = vsel %vm6500_vm1, %v1919_v42, %v1921_v15  ;;  %vm6506_vm1 = vcmask 834560  }
 0x63e   : > { %2076 = vmatpush1.msra.mxu1 %v1948_v6  ;;  %v2334_v43 = vsel %vm6506_vm1, %v4689_v58, %v4690_v21  ;;  %vm6507_vm4 = vmmov %vm6506_vm1  ;;  %v2345_v42 = vsel %vm6509_vm3, %v4699_v62, %v4700_v41 }
 0x63f   : > { %2005 = vmatpush1.msra.mxu0 %v1946_v4  ;;  %3936 = vmatmul.mubr.msk.f32.vlgmr.msra.gmra.mrb[10].mxu1 %vm833_vm14, %v3934_v54  ;;  %v4708_v24 = vpop.permute.xlu0 %4707  ;;  %vm6508_vm15 = vmmov %vm6506_vm1 }
 0x640   : > { %v4673_v18 = vpop.permute.xlu1 %4672  ;;  %3935 = vmatmul.mubr.msk.f32.vlgmr.msra.gmra.mrb[10].mxu0 %vm833_vm14, %v3934_v54  ;;  %2280 = vmatprep.mubr.f32.mxu1 %v5744_v52  ;;  %v4710_v40 = vunpack.i.h.bf16 %v4708_v24  ;;  %v4709_v22 = vunpack.i.l.bf16 %v4708_v24  ;;  %vm6510_vm1 = vmmov %vm6509_vm3  ;;  %vm6512_vm3 = vcmask 621568  }
 0x641   : > { %v4675_v23 = vunpack.i.h.bf16 %v4673_v18  ;;  %v6039_v14 = vunpack.i.l.bf16 %v4673_v18  ;;  %2209 = vmatprep.mubr.f32.mxu0 %v5744_v52  ;;  %v2323_v52 = vsel %vm6504_vm11, %v4679_v37, %v4680_v59 }
 0x643   : > { %v6047_v26 = vsel %vm614_vm9, %v4670_v60, %v6039_v14  ;;  %v6052_v56 = vsel %vm614_vm9, %v4675_v23, %v4669_v27  ;;  %v4718_v53 = vpop.permute.xlu0 %4717  ;;  %v2356_v23 = vsel %vm662_vm12, %v4709_v22, %v4710_v40 }
 0x644   : > { %v4683_v48 = vpop.permute.xlu1 %4682  ;;  %v4737_v1 = vpack.i.bf16 %v6047_v26, %v6043_v19  ;;  %v4742_v13 = vpack.i.bf16 %v6039_v14, %v6052_v56  ;;  %v4720_v27 = vunpack.i.h.bf16 %v4718_v53  ;;  %v4719_v18 = vunpack.i.l.bf16 %v4718_v53 }
 0x645   : > { %v4684_v44 = vunpack.i.l.bf16 %v4683_v48  ;;  %v4685_v46 = vunpack.i.h.bf16 %v4683_v48 }
 0x646   : > { %4738 = vrot.lane.b32.xlu1 %v4737_v1, %s5137_s30 }
 0x647   : > { %v2324_v3 = vsel %vm6504_vm11, %v4680_v59, %v4684_v44  ;;  %v2322_v10 = vsel %vm6504_vm11, %v4685_v46, %v4679_v37  ;;  %v4728_v48 = vpop.permute.xlu0 %4727 }
 0x648   : > { %v4693_v47 = vpop.permute.xlu1 %4692  ;;  %v4747_v9 = vpack.i.bf16 %v2324_v3, %v2323_v52  ;;  %v4730_v46 = vunpack.i.h.bf16 %v4728_v48  ;;  %v4729_v3 = vunpack.i.l.bf16 %v4728_v48 }
 0x649   : > { %v4695_v36 = vunpack.i.h.bf16 %v4693_v47  ;;  %v4694_v12 = vunpack.i.l.bf16 %v4693_v47 }
 0x64a   : > { %4748 = vrot.lane.b32.xlu0 %v4747_v9, %s5137_s30  ;;  %4743 = vrot.lane.b32.xlu1 %v4742_v13, %s5137_s30 }
 0x64b   : > { %v2333_v51 = vsel %vm6507_vm4, %v4695_v36, %v4689_v58  ;;  %v2335_v45 = vsel %vm6508_vm15, %v4690_v21, %v4694_v12  ;;  %v4762_v15 = vpack.i.bf16 %v4694_v12, %v4684_v44  ;;  %vm6511_vm15 = vmmov %vm6510_vm1  ;;  %v2367_v58 = vsel %vm6512_vm3, %v4719_v18, %v4720_v27 }
 0x64c   : > { %v4703_v39 = vpop.permute.xlu1 %4702  ;;  %v4757_v5 = vpack.i.bf16 %v2333_v51, %v2322_v10  ;;  %v4752_v38 = vpack.i.bf16 %v2335_v45, %v2334_v43  ;;  %vm6513_vm4 = vmmov %vm6512_vm3 }
 0x64d   : > { %v4704_v49 = vunpack.i.l.bf16 %v4703_v39  ;;  %v4705_v8 = vunpack.i.h.bf16 %v4703_v39 }
 0x64e   : > { %4758 = vrot.lane.b32.xlu0 %v4757_v5, %s5137_s30  ;;  %4753 = vrot.lane.b32.xlu1 %v4752_v38, %s5137_s30  ;;  %v2383_v38 = vpop.permute.xlu0 %2382 }
 0x64f   : > { %v2346_v17 = vsel %vm6510_vm1, %v4700_v41, %v4704_v49  ;;  %v2344_v59 = vsel %vm6511_vm15, %v4705_v8, %v4699_v62  ;;  %vm6514_vm1 = vcmask 613376   ;;  %vm6515_vm15 = vmmov %vm6512_vm3 }
 0x650   : > { %v4713_v54 = vpop.permute.xlu1 %4712  ;;  %v4767_v6 = vpack.i.bf16 %v2346_v17, %v2345_v42  ;;  %v2378_v62 = vsel %vm6514_vm1, %v4729_v3, %v4730_v46  ;;  %vm6516_vm3 = vmmov %vm6514_vm1  ;;  %v5152_v17 = vmov 4  }
 0x651   : > { %v4715_v4 = vunpack.i.h.bf16 %v4713_v54  ;;  %v4714_v60 = vunpack.i.l.bf16 %v4713_v54  ;;  %vm6517_vm11 = vmmov %vm6514_vm1  ;;  %4807 = vset.pattern.permute.xlu0 %v5152_v17 }
 0x652   : > { %4768 = vrot.lane.b32.xlu0 %v4767_v6, %s5137_s30  ;;  %4763 = vrot.lane.b32.xlu1 %v4762_v15, %s5137_s30  ;;  %v5118_v15 = vld [vmem:[%s6485_s5] sm:$0xff] }
 0x653   : > { %v2355_v37 = vsel %vm662_vm12, %v4715_v4, %v4709_v22  ;;  %v2357_v32 = vsel %vm662_vm12, %v4710_v40, %v4714_v60  ;;  %v4782_v9 = vpack.i.bf16 %v4714_v60, %v4704_v49  ;;  %v2387_v40 = vpop.permute.xlu0 %2386 }
 0x654   : > { %v4723_v1 = vpop.permute.xlu1 %4722  ;;  %v4777_v44 = vpack.i.bf16 %v2355_v37, %v2344_v59  ;;  %v4772_v52 = vpack.i.bf16 %v2357_v32, %v2356_v23 }
 0x655   : > { %v4724_v21 = vunpack.i.l.bf16 %v4723_v1  ;;  %v4725_v24 = vunpack.i.h.bf16 %v4723_v1 }
 0x656   : > { %4778 = vrot.lane.b32.xlu0 %v4777_v44, %s5137_s30  ;;  %4773 = vrot.lane.b32.xlu1 %v4772_v52, %s5137_s30 }
 0x657   : > { %v2368_v47 = vsel %vm6513_vm4, %v4720_v27, %v4724_v21  ;;  %v2366_v43 = vsel %vm6515_vm15, %v4725_v24, %v4719_v18  ;;  %vm6518_vm4 = vcmask 605184  }
 0x658   : > { %v4733_v13 = vpop.permute.xlu1 %4732  ;;  %v4787_v36 = vpack.i.bf16 %v2368_v47, %v2367_v58  ;;  %vm6519_vm1 = vmmov %vm6518_vm4 }
 0x659   : > { %v4735_v12 = vunpack.i.h.bf16 %v4733_v13  ;;  %v4734_v41 = vunpack.i.l.bf16 %v4733_v13 }
 0x65a   : > { %4788 = vrot.lane.b32.xlu0 %v4787_v36, %s5137_s30  ;;  %4783 = vrot.lane.b32.xlu1 %v4782_v9, %s5137_s30 }
 0x65b   : > { %v2377_v10 = vsel %vm6516_vm3, %v4735_v12, %v4729_v3  ;;  %v2379_v51 = vsel %vm6517_vm11, %v4730_v46, %v4734_v41  ;;  %v4802_v49 = vpack.i.bf16 %v4734_v41, %v4724_v21  ;;  %vm6520_vm11 = vmmov %vm6519_vm1 }
 0x65c   : > { %v2385_v45 = vpop.permute.xlu1 %2384  ;;  %v4797_v39 = vpack.i.bf16 %v2377_v10, %v2366_v43  ;;  %v4792_v5 = vpack.i.bf16 %v2379_v51, %v2378_v62 }
 0x65d   : > { %v2389_v42 = vsel %vm6518_vm4, %v2383_v38, %v2385_v45  ;;  %v2390_v8 = vsel %vm6520_vm11, %v2385_v45, %v2387_v40  ;;  %vm6531_vm11 = vcmask 433152  }
 0x65e   : > { %4798 = vrot.lane.b32.xlu0 %v4797_v39, %s5137_s30  ;;  %4793 = vrot.lane.b32.xlu1 %v4792_v5, %s5137_s30 }
 0x660   : > { %v2381_v53 = vpop.permute.xlu1 %2380  ;;  %v1848_v4 = vpop.permute.xlu0 %1847 }
 0x661   : > { %v2388_v22 = vsel %vm6519_vm1, %v2381_v53, %v2383_v38 }
 0x662   : > { %2455 = vrot.lane.b32.xlu0 %v2389_v42, %s5137_s30  ;;  %4803 = vrot.lane.b32.xlu1 %v4802_v49, %s5137_s30 }
 0x666   : > { %2453 = vrot.lane.b32.xlu0 %v2388_v22, %s5137_s30  ;;  %2457 = vrot.lane.b32.xlu1 %v2390_v8, %s5137_s30 }
 0x66a   : > { %2459 = vrot.lane.b32.xlu1 %v2387_v40, %s5137_s30  ;;  %2394 = vperm.xlu0 %4807, %v5118_v15  }
 0x6b8   : > { %v4739_v54 = vpop.permute.xlu1 %4738 }
 0x6b9   : > { %v4741_v37 = vunpack.i.h.bf16 %v4739_v54  ;;  %v4740_v32 = vunpack.i.l.bf16 %v4739_v54 }
 0x6bb   : > { %v2462_v1 = vsel %vm614_vm9, %v4740_v32, %v4741_v37 }
 0x6bc   : > { %v4744_v6 = vpop.permute.xlu1 %4743  ;;  %v4749_v27 = vpop.permute.xlu0 %4748  ;;  %v4086_v24 = vpack.c.bf16 %v2462_v1, %v6043_v19 }
 0x6bd   : > { %v4746_v52 = vunpack.i.h.bf16 %v4744_v6  ;;  %v4745_v58 = vunpack.i.l.bf16 %v4744_v6  ;;  %v4750_v62 = vunpack.i.l.bf16 %v4749_v27  ;;  %v4751_v39 = vunpack.i.h.bf16 %v4749_v27 }
 0x6bf   : > { %v2463_v5 = vsel %vm614_vm9, %v4741_v37, %v4746_v52  ;;  %v2461_v42 = vsel %vm614_vm9, %v4745_v58, %v4740_v32  ;;  %v4102_v22 = vpack.c.bf16 %v4746_v52, %v6039_v14  ;;  %v3937_v14 = vld [vmem:[%s6486_s6 + $0x8] sm:$0xff] }
 0x6c0   : > { %v4754_v60 = vpop.permute.xlu1 %4753  ;;  %v4759_v23 = vpop.permute.xlu0 %4758  ;;  %v4104_v58 = vpack.c.bf16 %v2463_v5, %v6047_v26 }
 0x6c1   : > { %v4760_v46 = vunpack.i.l.bf16 %v4759_v23  ;;  %v4761_v47 = vunpack.i.h.bf16 %v4759_v23  ;;  %v4756_v9 = vunpack.i.h.bf16 %v4754_v60  ;;  %v4755_v13 = vunpack.i.l.bf16 %v4754_v60 }
 0x6c3   : > { %v2464_v19 = vsel %vm614_vm9, %v4760_v46, %v4750_v62  ;;  %v2467_v8 = vsel %vm614_vm9, %v4761_v47, %v4755_v13  ;;  %v2468_v6 = vsel %vm614_vm9, %v4755_v13, %v4756_v9  ;;  %v2465_v46 = vsel %vm614_vm9, %v4750_v62, %v4751_v39 }
 0x6c4   : > { %v4764_v18 = vpop.permute.xlu1 %4763  ;;  %v6100_v48 = vpop.permute.xlu0 %4768 }
 0x6c5   : > { %v4765_v43 = vunpack.i.l.bf16 %v4764_v18  ;;  %v4766_v38 = vunpack.i.h.bf16 %v4764_v18  ;;  %v4771_v60 = vunpack.i.h.bf16 %v6100_v48 }
 0x6c7   : > { %v2466_v27 = vsel %vm614_vm9, %v4751_v39, %v4765_v43  ;;  %v2469_v23 = vsel %vm614_vm9, %v4756_v9, %v4766_v38  ;;  %v4106_v47 = vpack.c.bf16 %v4766_v38, %v4765_v43  ;;  %v4090_v9 = vpack.c.bf16 %v2468_v6, %v2465_v46 }
 0x6c8   : > { %v6098_v59 = vpop.permute.xlu1 %4773  ;;  %v6105_v21 = vpop.permute.xlu0 %4778 }
 0x6c9   : > { %v4780_v37 = vunpack.i.l.bf16 %v6105_v21  ;;  %v4776_v32 = vunpack.i.h.bf16 %v6098_v59  ;;  %v4775_v1 = vunpack.i.l.bf16 %v6098_v59  ;;  %v4088_v59 = vpack.c.bf16 %v2461_v42, %v6052_v56 }
 0x6cb   : > { %v2474_v56 = vsel %vm614_vm9, %v4775_v1, %v4776_v32 }
 0x6cc   : > { %v6103_v44 = vpop.permute.xlu1 %4783  ;;  %v6115_v17 = vpop.permute.xlu0 %4788 }
 0x6cd   : > { %v4785_v52 = vunpack.i.l.bf16 %v6103_v44 }
 0x6d0   : > { %v6111_v53 = vpop.permute.xlu1 %4793 }
 0x6d1   : > { %v4795_v62 = vunpack.i.l.bf16 %v6111_v53 }
 0x6d4   : > { %v4804_v13 = vpop.permute.xlu1 %4803 }
 0x6d5   : > { %v4806_v5 = vunpack.i.h.bf16 %v4804_v13  ;;  %v4805_v38 = vunpack.i.l.bf16 %v4804_v13 }
 0x712   : > { %v2125_v3 = vpop.f32.mrb[10].mxu1 }
 0x713   : > { %v2126_v36 = vadd.f32 %v2125_v3, %v1848_v4  ;;  %v2054_v12 = vpop.f32.mrb[10].mxu0  ;;  %v2127_v41 = vpop.f32.mrb[11].mxu1  ;;  %v4786_v3 = vunpack.i.h.bf16 %v6103_v44  ;;  %v4796_v44 = vunpack.i.h.bf16 %v6111_v53 }
 0x714   : > { %v2055_v10 = vadd.f32 %v2054_v12, %v1848_v4  ;;  %v2128_v51 = vadd.f32 %v2127_v41, %v1848_v4  ;;  %v2056_v45 = vpop.f32.mrb[11].mxu0  ;;  %v4799_v41 = vpop.permute.xlu0 %4798 }
 0x715   : > { %v2057_v49 = vadd.f32 %v2056_v45, %v1848_v4  ;;  %v2132_v15 = vmax.f32 %v2126_v36, 0.0  ;;  %v4770_v4 = vunpack.i.l.bf16 %v6100_v48  ;;  %v4781_v48 = vunpack.i.h.bf16 %v6105_v21  ;;  %v6145_v45 = vld [vmem:[#allocation2] sm:$0xff] }
 0x716   : > { %v2133_v40 = vmax.f32 %v2128_v51, 0.0  ;;  %v2130_v18 = vmax.f32 %v2055_v10, 0.0  ;;  %v4108_v21 = vpack.c.bf16 %v2469_v23, %v2466_v27  ;;  %v4092_v36 = vpack.c.bf16 %v2467_v8, %v2464_v19 }
 0x717   : > { %v2131_v54 = vmax.f32 %v2057_v49, 0.0  ;;  %v2471_v12 = vsel %vm614_vm9, %v4770_v4, %v4771_v60  ;;  %v2470_v26 = vsel %vm614_vm9, %v4780_v37, %v4770_v4  ;;  %v2473_v43 = vsel %vm614_vm9, %v4781_v48, %v4775_v1 }
 0x718   : > { %2216 = vmatprep.subr.mxu1 %v2133_v40  ;;  %v4790_v10 = vunpack.i.l.bf16 %v6115_v17  ;;  %v2472_v51 = vsel %vm614_vm9, %v4771_v60, %v4785_v52  ;;  %v2475_v39 = vsel %vm614_vm9, %v4776_v32, %v4786_v3  ;;  %v4110_v49 = vpack.c.bf16 %v4786_v3, %v4785_v52  ;;  %v3940_v52 = vld [vmem:[%s6484_s4 + $0x20] sm:$0xff] }
 0x719   : > { %2145 = vmatprep.subr.mxu0 %v2131_v54  ;;  %2217 = vmatpush1.msra.mxu1 %v2132_v15  ;;  %v4801_v42 = vunpack.i.h.bf16 %v4799_v41  ;;  %v4800_v19 = vunpack.i.l.bf16 %v4799_v41  ;;  %v4094_v53 = vpack.c.bf16 %v2474_v56, %v2471_v12  ;;  %v2480_v40 = vsel %vm614_vm9, %v4795_v62, %v4796_v44  ;;  %v2456_v15 = vpop.permute.xlu0 %2455 }
 0x71a   : > { %2146 = vmatpush1.msra.mxu0 %v2130_v18  ;;  %4103 = vmatprep.subr.bf16.mxu1 %v4102_v22  ;;  %v2458_v22 = vpop.permute.xlu1 %2457  ;;  %v4112_v8 = vpack.c.bf16 %v2475_v39, %v2472_v51  ;;  %v2481_v6 = vsel %vm614_vm9, %v4796_v44, %v4806_v5  ;;  %v4114_v60 = vpack.c.bf16 %v4806_v5, %v4805_v38  ;;  %v2702_v5 = vld [vmem:[#allocation3 + $0x28] sm:$0xff] }
 0x71b   : > { %3938 = vmatmul.mubr.msk.f32.vlgmr.msra.gmra.mrb[12].mxu0 %vm1397_vm10, %v3937_v14  ;;  %3939 = vmatmul.mubr.msk.f32.vlgmr.msra.gmra.mrb[12].mxu1 %vm1397_vm10, %v3937_v14  ;;  %v2476_v27 = vsel %vm614_vm9, %v4800_v19, %v4790_v10  ;;  %v2479_v18 = vsel %vm614_vm9, %v4801_v42, %v4795_v62  ;;  %v2483_v48 = vsel %vm614_vm9, %v2456_v15, %v2458_v22 }
 0x71c   : > { %4087 = vmatprep.subr.bf16.mxu0 %v4086_v24  ;;  %4105 = vmatpush1.bf16.msra.mxu1 %v4104_v58  ;;  %v4791_v24 = vunpack.i.h.bf16 %v6115_v17  ;;  %v4096_v17 = vpack.c.bf16 %v2473_v43, %v2470_v26  ;;  %v4100_v37 = vpack.c.bf16 %v2479_v18, %v2476_v27 }
 0x71d   : > { %4089 = vmatpush1.bf16.msra.mxu0 %v4088_v59  ;;  %4107 = vmatprep.subr.bf16.mxu1 %v4106_v47  ;;  %v2454_v1 = vpop.permute.xlu0 %2453 }
 0x71e   : > { %4091 = vmatprep.subr.bf16.mxu0 %v4090_v9  ;;  %2659 = vmatprep.mubr.f32.mxu1 %v6145_v45  ;;  %v2478_v54 = vsel %vm614_vm9, %v4791_v24, %v4805_v38  ;;  %v2477_v4 = vsel %vm614_vm9, %v4790_v10, %v4791_v24  ;;  %v2460_v32 = vpop.permute.xlu1 %2459  ;;  %v2482_v46 = vsel %vm614_vm9, %v2454_v1, %v2456_v15 }
 0x71f   : > { %2588 = vmatprep.mubr.f32.mxu0 %v6145_v45  ;;  %v4098_v14 = vpack.c.bf16 %v2480_v40, %v2477_v4  ;;  %v4116_v23 = vpack.c.bf16 %v2481_v6, %v2478_v54  ;;  %v2484_v58 = vsel %vm614_vm9, %v2458_v22, %v2460_v32 }
 0x720   : > { %4109 = vmatpush1.bf16.msra.mxu1 %v4108_v21 }
 0x721   : > { %4093 = vmatpush1.bf16.msra.mxu0 %v4092_v36  ;;  %4111 = vmatprep.subr.bf16.mxu1 %v4110_v49  ;;  %v2395_v13 = vpop.permute.xlu0 %2394 }
 0x722   : > { %4095 = vmatprep.subr.bf16.mxu0 %v4094_v53 }
 0x724   : > { %4113 = vmatpush1.bf16.msra.mxu1 %v4112_v8 }
 0x725   : > { %4097 = vmatpush1.bf16.msra.mxu0 %v4096_v17  ;;  %4115 = vmatprep.subr.bf16.mxu1 %v4114_v60 }
 0x726   : > { %4099 = vmatprep.subr.bf16.mxu0 %v4098_v14 }
 0x728   : > { %4117 = vmatpush1.bf16.msra.mxu1 %v4116_v23 }
 0x729   : > { %4101 = vmatpush1.bf16.msra.mxu0 %v4100_v37  ;;  %2611 = vmatprep.subr.mxu1 %v2460_v32 }
 0x72a   : > { %2540 = vmatprep.subr.mxu0 %v2483_v48 }
 0x72c   : > { %2612 = vmatpush1.msra.mxu1 %v2484_v58 }
 0x72d   : > { %2541 = vmatpush1.msra.mxu0 %v2482_v46  ;;  %3942 = vmatmul.mubr.msk.f32.vlgmr.msra.gmra.mrb[14].mxu1 %vm833_vm14, %v3940_v52 }
 0x72e   : > { %3941 = vmatmul.mubr.msk.f32.vlgmr.msra.gmra.mrb[14].mxu0 %vm833_vm14, %v3940_v52  ;;  %3087 = vmatprep.mubr.f32.mxu1 %v6145_v45 }
 0x72f   : > { %3016 = vmatprep.mubr.f32.mxu0 %v6145_v45 }
 0x7ee   : > { %v6166_v3 = vpop.f32.mrb[12].mxu0  ;;  %v6168_v59 = vpop.f32.mrb[12].mxu1 }
 0x7ef   : > { %v6170_v47 = vpop.f32.mrb[13].mxu0  ;;  %v6172_v9 = vpop.f32.mrb[13].mxu1 }
 0x800   : > { %v2661_v21 = vpop.f32.mrb[14].mxu1 }
 0x801   : > { %v2662_v36 = vadd.f32 %v2661_v21, %v2395_v13  ;;  %v2590_v12 = vpop.f32.mrb[14].mxu0  ;;  %v2663_v26 = vpop.f32.mrb[15].mxu1 }
 0x802   : > { %v2591_v41 = vadd.f32 %v2590_v12, %v2395_v13  ;;  %v2592_v44 = vpop.f32.mrb[15].mxu0  ;;  %v2664_v51 = vadd.f32 %v2663_v26, %v2395_v13 }
 0x803   : > { %v2668_v62 = vmax.f32 %v2662_v36, 0.0  ;;  %v2593_v56 = vadd.f32 %v2592_v44, %v2395_v13 }
 0x804   : > { %v2666_v43 = vmax.f32 %v2591_v41, 0.0  ;;  %v2669_v38 = vmax.f32 %v2664_v51, 0.0 }
 0x805   : > { %v2672_v24 = vmul.f32 %v2668_v62, %v5274_v31  ;;  %v2667_v39 = vmax.f32 %v2593_v56, 0.0 }
 0x806   : > { %v2670_v10 = vmul.f32 %v2666_v43, %v5265_v16  ;;  %v2673_v42 = vmul.f32 %v2669_v38, %v5272_v29 }
 0x807   : > { %2682 = vrot.lane.b32.xlu0 %v2672_v24, %s5132_s25  ;;  %v2671_v49 = vmul.f32 %v2667_v39, %v5267_v25 }
 0x808   : > { %2678 = vrot.lane.b32.xlu1 %v2670_v10, %s5132_s25 }
 0x80b   : > { %2772 = vrot.lane.b32.xlu0 %v2702_v5, %s5134_s27 }
 0x80c   : > { %2680 = vrot.lane.b32.xlu1 %v2671_v49, %s5132_s25 }
 0x810   : > { %2684 = vrot.lane.b32.xlu1 %v2673_v42, %s5132_s25 }
 0x879   : > { %v2683_v53 = vpop.permute.xlu0 %2682 }
 0x87a   : > { %v2679_v19 = vpop.permute.xlu1 %2678 }
 0x87b   : > { %2693 = vst.msk [vmem:[#allocation3 + $0x8] sm:$0xff] %vm592_vm5, %v2679_v19 }
 0x87d   : > { %v2773_v23 = vpop.permute.xlu0 %2772 }
 0x87e   : > { %v2681_v40 = vpop.permute.xlu1 %2680 }
 0x87f   : > { %v2686_v22 = vsel %vm383_vm2, %v2679_v19, %v2681_v40  ;;  %v2687_v8 = vsel %vm383_vm2, %v2681_v40, %v2683_v53 }
 0x880   : > { %v4823_v27 = vpack.i.bf16 %v6145_v45, %v2687_v8  ;;  %v4868_v18 = vpack.i.bf16 %v2687_v8, %v2686_v22 }
 0x882   : > { %v2685_v17 = vpop.permute.xlu1 %2684  ;;  %v2698_v15 = vld [vmem:[#allocation3 + $0x8] sm:$0xff] }
 0x883   : > { %v2688_v54 = vsel %vm383_vm2, %v2683_v53, %v2685_v17  ;;  %v4818_v6 = vpack.i.bf16 %v2686_v22, %v2698_v15 }
 0x884   : > { %2696 = vst.msk [vmem:[#allocation3 + $0x20] sm:$0xff] %vm596_vm6, %v2688_v54 }
 0x885   : > { %4819 = vrot.lane.b32.xlu0 %v4818_v6, %s5143_s19 }
 0x889   : > { %4829 = vrot.lane.b32.xlu0 %v4818_v6, %s5144_s20 }
 0x88b   : > { %v2701_v60 = vld [vmem:[#allocation3 + $0x20] sm:$0xff] }
 0x88c   : > { %v4808_v4 = vpack.i.bf16 %v2698_v15, %v2701_v60  ;;  %v4843_v14 = vpack.i.bf16 %v2701_v60, %v2687_v8 }
 0x88d   : > { %4839 = vrot.lane.b32.xlu0 %v4818_v6, %s5145_s21 }
 0x88e   : > { %4809 = vrot.lane.b32.xlu1 %v4808_v4, %s5134_s27 }
 0x891   : > { %4849 = vrot.lane.b32.xlu0 %v4818_v6, %s5146_s22 }
 0x892   : > { %4814 = vrot.lane.b32.xlu1 %v4808_v4, %s5133_s26 }
 0x895   : > { %4859 = vrot.lane.b32.xlu0 %v4818_v6, %s5147_s23 }
 0x896   : > { %4824 = vrot.lane.b32.xlu1 %v4823_v27, %s5143_s19 }
 0x899   : > { %2798 = vrot.lane.b32.xlu0 %v2701_v60, %s5135_s28 }
 0x89a   : > { %4834 = vrot.lane.b32.xlu1 %v4823_v27, %s5144_s20  ;;  %s5154_s20 = smov 123  }
 0x89d   : > { %4869 = vrot.lane.b32.xlu0 %v4868_v18, %s5134_s27 }
 0x89e   : > { %4844 = vrot.lane.b32.xlu1 %v4843_v14, %s5145_s21  ;;  %s5156_s21 = smov 121  }
 0x8a1   : > { %4874 = vrot.lane.b32.xlu0 %v4868_v18, %s5133_s26 }
 0x8a2   : > { %4854 = vrot.lane.b32.xlu1 %v4843_v14, %s5146_s22  ;;  %s5157_s22 = smov 116  }
 0x8a5   : > { %2794 = vrot.lane.b32.xlu0 %v2686_v22, %s5135_s28 }
 0x8a6   : > { %4864 = vrot.lane.b32.xlu1 %v4843_v14, %s5147_s23  ;;  %s5158_s23 = smov 124  }
 0x8a9   : > { %2800 = vrot.lane.b32.xlu0 %v2702_v5, %s5135_s28 }
 0x8aa   : > { %2786 = vrot.lane.b32.xlu1 %v2702_v5, %s5133_s26 }
 0x8ae   : > { %2796 = vrot.lane.b32.xlu1 %v2687_v8, %s5135_s28 }
 0x8b2   : > { %2792 = vrot.lane.b32.xlu1 %v2698_v15, %s5135_s28 }
 0x8b6   : > { %4879 = vrot.lane.b32.xlu1 %v4818_v6, %s5148_s24 }
 0x8f7   : > { %v6210_v37 = vpop.permute.xlu0 %4819 }
 0x8f8   : > { %v4821_v12 = vunpack.i.l.bf16 %v6210_v37 }
 0x8fb   : > { %v4830_v32 = vpop.permute.xlu0 %4829 }
 0x8fc   : > { %v4831_v10 = vunpack.i.l.bf16 %v4830_v32  ;;  %v4832_v19 = vunpack.i.h.bf16 %v4830_v32 }
 0x8fe   : > { %v2727_v17 = vsel %vm1013_vm8, %v4831_v10, %v4832_v19 }
 0x8ff   : > { %v6212_v1 = vpop.permute.xlu0 %4839 }
 0x900   : > { %v6214_v48 = vpop.permute.xlu1 %4809  ;;  %v4841_v49 = vunpack.i.l.bf16 %v6212_v1 }
 0x901   : > { %v4811_v32 = vunpack.i.l.bf16 %v6214_v48 }
 0x903   : > { %v4850_v52 = vpop.permute.xlu0 %4849 }
 0x904   : > { %v6216_v58 = vpop.permute.xlu1 %4814  ;;  %v4851_v13 = vunpack.i.l.bf16 %v4850_v52  ;;  %v4852_v15 = vunpack.i.h.bf16 %v4850_v52 }
 0x907   : > { %v6218_v46 = vpop.permute.xlu0 %4859 }
 0x908   : > { %v4825_v21 = vpop.permute.xlu1 %4824  ;;  %v4861_v36 = vunpack.i.l.bf16 %v6218_v46 }
 0x909   : > { %v4827_v26 = vunpack.i.h.bf16 %v4825_v21  ;;  %v4826_v41 = vunpack.i.l.bf16 %v4825_v21  ;;  %v2749_v21 = vsel %vm1037_vm0, %v4851_v13, %v4852_v15 }
 0x90a   : > { %v4883_v44 = vpack.i.bf16 %v4861_v36, %v4851_v13 }
 0x90b   : > { %v2715_v62 = vsel %vm1001_vm7, %v4827_v26, %v4821_v12  ;;  %v4898_v56 = vpack.i.bf16 %v4826_v41, %v2687_v8  ;;  %v6227_v24 = vpop.permute.xlu0 %2798 }
 0x90c   : > { %v6225_v43 = vpop.permute.xlu1 %4834  ;;  %4884 = vrot.lane.b32.xlu1 %v4883_v44, %s5148_s24  ;;  %v4888_v39 = vpack.i.bf16 %v2715_v62, %v6145_v45  ;;  %v4816_v44 = vunpack.i.l.bf16 %v6216_v58 }
 0x90d   : > { %v4837_v51 = vunpack.i.h.bf16 %v6225_v43  ;;  %4899 = vrot.lane.b32.xlu0 %v4898_v56, %s5148_s24  ;;  %v4836_v38 = vunpack.i.l.bf16 %v6225_v43 }
 0x90f   : > { %v2726_v5 = vsel %vm1013_vm8, %v4837_v51, %v4831_v10  ;;  %v4870_v40 = vpop.permute.xlu0 %4869  ;;  %v2728_v22 = vsel %vm1013_vm8, %v4832_v19, %v4836_v38  ;;  %v4822_v10 = vunpack.i.h.bf16 %v6210_v37  ;;  %v4817_v51 = vunpack.i.h.bf16 %v6216_v58 }
 0x910   : > { %v4845_v42 = vpop.permute.xlu1 %4844  ;;  %4889 = vrot.lane.b32.xlu1 %v4888_v39, %s5148_s24  ;;  %v4893_v53 = vpack.i.bf16 %v4841_v49, %v2726_v5  ;;  %v4913_v6 = vpack.i.bf16 %v2728_v22, %v2727_v17  ;;  %v4872_v60 = vunpack.i.h.bf16 %v4870_v40  ;;  %v4871_v4 = vunpack.i.l.bf16 %v4870_v40 }
 0x911   : > { %v2777_v39 = vsel %vm662_vm12, %v4811_v32, %v2773_v23  ;;  %v2717_v40 = vsel %vm1001_vm7, %v4822_v10, %v4826_v41  ;;  %v4846_v22 = vunpack.i.l.bf16 %v4845_v42  ;;  %v2716_v37 = vsel %vm1001_vm7, %v4821_v12, %v4822_v10 }
 0x912   : > { %v2775_v52 = vsel %vm662_vm12, %v4871_v4, %v4872_v60  ;;  %v2776_v62 = vsel %vm662_vm12, %v4872_v60, %v4811_v32  ;;  %v4842_v58 = vunpack.i.h.bf16 %v6212_v1  ;;  %vm6521_vm8 = vcmask 408576  }
 0x913   : > { %v4875_v18 = vpop.permute.xlu0 %4874  ;;  %v4943_v13 = vpack.i.bf16 %v2776_v62, %v2775_v52  ;;  %vm6522_vm9 = vmmov %vm6521_vm8  ;;  %vm6524_vm7 = vcmask 769024  }
 0x914   : > { %v6238_v8 = vpop.permute.xlu1 %4854  ;;  %4894 = vrot.lane.b32.xlu1 %v4893_v53, %s5148_s24  ;;  %v4876_v56 = vunpack.i.l.bf16 %v4875_v18  ;;  %v4812_v53 = vunpack.i.h.bf16 %v6214_v48  ;;  %v2739_v48 = vsel %vm6521_vm8, %v4842_v58, %v4846_v22  ;;  %v2738_v41 = vsel %vm6522_vm9, %v4841_v49, %v4842_v58  ;;  %vm6523_vm15 = vmmov %vm6521_vm8 }
 0x915   : > { %v4856_v54 = vunpack.i.l.bf16 %v6238_v8  ;;  %v4918_v32 = vpack.i.bf16 %v2739_v48, %v2738_v41  ;;  %vm6526_vm3 = vmmov %vm6524_vm7 }
 0x916   : > { %v2788_v17 = vsel %vm1079_vm13, %v4817_v51, %v4876_v56  ;;  %v2774_v23 = vsel %vm662_vm12, %v4812_v53, %v4871_v4  ;;  %vm6525_vm12 = vcmask 359424   ;;  %v4857_v51 = vunpack.i.h.bf16 %v6238_v8  ;;  %vm6532_vm8 = vmmov %vm6531_vm11 }
 0x917   : > { %v2750_v27 = vsel %vm1037_vm0, %v4852_v15, %v4856_v54  ;;  %v4908_v15 = vpack.i.bf16 %v2717_v40, %v2716_v37  ;;  %vm6527_vm4 = vmmov %vm6525_vm12  ;;  %v5153_v8 = vmov 5  }
 0x918   : > { %v4865_v14 = vpop.permute.xlu1 %4864  ;;  %4914 = vrot.lane.b32.xlu1 %v4913_v6, %s5148_s24  ;;  %v4928_v26 = vpack.i.bf16 %v2750_v27, %v2749_v21  ;;  %v4953_v6 = vpack.i.bf16 %v2788_v17, %v2774_v23  ;;  %v4847_v27 = vunpack.i.h.bf16 %v4845_v42  ;;  %v2795_v21 = vpop.permute.xlu0 %2794  ;;  %v4862_v42 = vunpack.i.h.bf16 %v6218_v46  ;;  %vm6528_vm1 = vmmov %vm6527_vm4 }
 0x919   : > { %v4867_v62 = vunpack.i.h.bf16 %v4865_v14  ;;  %4958 = vset.pattern.permute.xlu1 %v5153_v8  ;;  %vm6533_vm9 = vmmov %vm6532_vm8 }
 0x91a   : > { %v2740_v12 = vsel %vm6523_vm15, %v4846_v22, %v4847_v27  ;;  %v2760_v10 = vsel %vm6527_vm4, %v4861_v36, %v4862_v42  ;;  %v6289_v36 = vld [vmem:[%s6485_s5] sm:$0xff]  ;;  %vm6534_vm15 = vmmov %vm6532_vm8 }
 0x91b   : > { %v4923_v52 = vpack.i.bf16 %v2740_v12, %v4836_v38  ;;  %v2751_v38 = vsel %vm1037_vm0, %v4856_v54, %v4857_v51  ;;  %vm6529_vm0 = vmmov %vm6526_vm3 }
 0x91c   : > { %v2787_v43 = vpop.permute.xlu1 %2786  ;;  %4929 = vrot.lane.b32.xlu1 %v4928_v26, %s5148_s24  ;;  %v4866_v26 = vunpack.i.l.bf16 %v4865_v14 }
 0x91d   : > { %v2791_v5 = vsel %vm1079_vm13, %v4816_v44, %v2787_v43 }
 0x91e   : > { %v4903_v19 = vpack.i.bf16 %v2791_v5, %v2777_v39  ;;  %v2761_v43 = vsel %vm6525_vm12, %v4862_v42, %v4866_v26  ;;  %v4877_v5 = vunpack.i.h.bf16 %v4875_v18  ;;  %v2801_v18 = vpop.permute.xlu0 %2800 }
 0x91f   : > { %v4933_v39 = vpack.i.bf16 %v2761_v43, %v2760_v10 }
 0x920   : > { %4904 = vrot.lane.b32.xlu0 %v4903_v19, %s5148_s24  ;;  %4944 = vrot.lane.b32.xlu1 %v4943_v13, %s5148_s24  ;;  %v2797_v60 = vpop.permute.xlu1 %2796  ;;  %v2762_v13 = vsel %vm6528_vm1, %v4866_v26, %v4867_v62  ;;  %v2789_v19 = vsel %vm1079_vm13, %v4876_v56, %v4877_v5  ;;  %v2790_v53 = vsel %vm1079_vm13, %v4877_v5, %v4816_v44  ;;  %vm6530_vm13 = vmmov %vm6529_vm0 }
 0x921   : > { %v2803_v1 = vsel %vm6524_vm7, %v2795_v21, %v2797_v60  ;;  %v4938_v14 = vpack.i.bf16 %v2762_v13, %v2751_v38  ;;  %v4948_v46 = vpack.i.bf16 %v2790_v53, %v2789_v19  ;;  %v2804_v54 = vsel %vm6529_vm0, %v2797_v60, %v6227_v24  ;;  %vm6535_vm7 = vmmov %vm6532_vm8 }
 0x922   : > { %v2805_v44 = vsel %vm6530_vm13, %v6227_v24, %v2801_v18  ;;  %vm6536_vm12 = vmmov %vm6535_vm7 }
 0x924   : > { %4909 = vrot.lane.b32.xlu0 %v4908_v15, %s5148_s24  ;;  %4954 = vrot.lane.b32.xlu1 %v4953_v6, %s5148_s24  ;;  %v2793_v4 = vpop.permute.xlu1 %2792 }
 0x925   : > { %v2802_v49 = vsel %vm6526_vm3, %v2793_v4, %v2795_v21  ;;  %vm6537_vm3 = vmmov %vm6535_vm7 }
 0x926   : > { %vm6538_vm4 = vmmov %vm6537_vm3 }
 0x927   : > { %vm6539_vm1 = vmmov %vm6537_vm3 }
 0x928   : > { %4919 = vrot.lane.b32.xlu0 %v4918_v32, %s5148_s24  ;;  %2880 = vrot.lane.b32.xlu1 %v2803_v1, %s5148_s24  ;;  %v4880_v56 = vpop.permute.xlu1 %4879  ;;  %vm6540_vm0 = vmmov %vm6539_vm1 }
 0x929   : > { %v4882_v27 = vunpack.i.h.bf16 %v4880_v56  ;;  %v4881_v48 = vunpack.i.l.bf16 %v4880_v56  ;;  %vm6541_vm13 = vmmov %vm6540_vm0 }
 0x92b   : > { %v2887_v42 = vsel %vm6533_vm9, %v4881_v48, %v4882_v27  ;;  %vm6544_vm9 = vmmov %vm6540_vm0 }
 0x92c   : > { %4924 = vrot.lane.b32.xlu0 %v4923_v52, %s5148_s24  ;;  %2878 = vrot.lane.b32.xlu1 %v2802_v49, %s5148_s24 }
 0x930   : > { %4934 = vrot.lane.b32.xlu0 %v4933_v39, %s5148_s24  ;;  %2811 = vperm.xlu1 %4958, %v6289_v36  }
 0x934   : > { %4939 = vrot.lane.b32.xlu0 %v4938_v14, %s5148_s24  ;;  %5110 = vset.pattern.permute.xlu1 %v5131_v2 }
 0x938   : > { %4949 = vrot.lane.b32.xlu0 %v4948_v46, %s5148_s24 }
 0x93c   : > { %2882 = vrot.lane.b32.xlu0 %v2804_v54, %s5148_s24 }
 0x940   : > { %2884 = vrot.lane.b32.xlu0 %v2805_v44, %s5148_s24  ;;  %s5159_s24 = smov 119  }
 0x97e   : > { %v6300_v37 = vpop.permute.xlu1 %4884 }
 0x97f   : > { %v4900_v40 = vpop.permute.xlu0 %4899 }
 0x980   : > { %v4902_v22 = vunpack.i.h.bf16 %v4900_v40  ;;  %v4901_v17 = vunpack.i.l.bf16 %v4900_v40 }
 0x982   : > { %v4134_v58 = vpack.c.bf16 %v4902_v22, %v4901_v17  ;;  %v4890_v23 = vpop.permute.xlu1 %4889  ;;  %v2888_v26 = vsel %vm6531_vm11, %v4882_v27, %v4901_v17  ;;  %vm6542_vm11 = vmmov %vm6540_vm0 }
 0x983   : > { %v4891_v41 = vunpack.i.l.bf16 %v4890_v23  ;;  %v4892_v24 = vunpack.i.h.bf16 %v4890_v23 }
 0x984   : > { %4135 = vmatprep.subr.bf16.mxu1 %v4134_v58 }
 0x985   : > { %v2886_v1 = vsel %vm6532_vm8, %v4891_v41, %v4881_v48  ;;  %vm6543_vm8 = vmmov %vm6540_vm0 }
 0x986   : > { %v4895_v15 = vpop.permute.xlu1 %4894 }
 0x987   : > { %v4897_v38 = vunpack.i.h.bf16 %v4895_v15  ;;  %v4896_v14 = vunpack.i.l.bf16 %v4895_v15 }
 0x98a   : > { %v4915_v60 = vpop.permute.xlu1 %4914 }
 0x98b   : > { %v4917_v4 = vunpack.i.h.bf16 %v4915_v60  ;;  %v4916_v52 = vunpack.i.l.bf16 %v4915_v60 }
 0x98d   : > { %v2892_v46 = vsel %vm6537_vm3, %v4896_v14, %v4916_v52  ;;  %v2893_v54 = vsel %vm6539_vm1, %v4916_v52, %v4917_v4  ;;  %vm6548_vm3 = vmmov %vm6540_vm0 }
 0x98e   : > { %v4930_v62 = vpop.permute.xlu1 %4929  ;;  %vm6550_vm1 = vmmov %vm6540_vm0 }
 0x98f   : > { %v4932_v23 = vunpack.i.h.bf16 %v4930_v62  ;;  %v4931_v15 = vunpack.i.l.bf16 %v4930_v62 }
 0x992   : > { %v6302_v6 = vpop.permute.xlu0 %4904 }
 0x996   : > { %v4910_v32 = vpop.permute.xlu0 %4909 }
 0x997   : > { %v4912_v21 = vunpack.i.h.bf16 %v4910_v32  ;;  %v4911_v12 = vunpack.i.l.bf16 %v4910_v32 }
 0x999   : > { %v2891_v43 = vsel %vm6534_vm15, %v4912_v21, %v4902_v22  ;;  %v2889_v49 = vsel %vm6535_vm7, %v4892_v24, %v4911_v12  ;;  %v2890_v10 = vsel %vm6536_vm12, %v4911_v12, %v4912_v21  ;;  %v4945_v22 = vpop.permute.xlu1 %4944  ;;  %v4887_v24 = vunpack.i.h.bf16 %v6300_v37  ;;  %vm6545_vm15 = vmmov %vm6540_vm0 }
 0x99a   : > { %v4136_v51 = vpack.c.bf16 %v2891_v43, %v2888_v26  ;;  %v4120_v39 = vpack.c.bf16 %v2889_v49, %v2886_v1  ;;  %v4920_v5 = vpop.permute.xlu0 %4919  ;;  %v4118_v13 = vpack.c.bf16 %v2890_v10, %v2887_v42  ;;  %v4886_v21 = vunpack.i.l.bf16 %v6300_v37  ;;  %vm6546_vm7 = vmmov %vm6540_vm0 }
 0x99b   : > { %v4922_v19 = vunpack.i.h.bf16 %v4920_v5  ;;  %v4921_v53 = vunpack.i.l.bf16 %v4920_v5  ;;  %v4906_v37 = vunpack.i.l.bf16 %v6302_v6  ;;  %vm6547_vm12 = vmmov %vm6540_vm0 }
 0x99c   : > { %4119 = vmatprep.subr.bf16.mxu0 %v4118_v13  ;;  %4137 = vmatpush1.bf16.msra.mxu1 %v4136_v51  ;;  %v2898_v1 = vsel %vm6543_vm8, %v4886_v21, %v4931_v15  ;;  %v4907_v51 = vunpack.i.h.bf16 %v6302_v6  ;;  %v4947_v13 = vunpack.i.h.bf16 %v4945_v22  ;;  %vm6553_vm8 = vmmov %vm6540_vm0 }
 0x99d   : > { %v2895_v8 = vsel %vm6538_vm4, %v4897_v38, %v4921_v53  ;;  %4121 = vmatpush1.bf16.msra.mxu0 %v4120_v39  ;;  %v2896_v18 = vsel %vm6540_vm0, %v4921_v53, %v4922_v19  ;;  %v4955_v42 = vpop.permute.xlu1 %4954  ;;  %v4946_v38 = vunpack.i.l.bf16 %v4945_v22  ;;  %vm6549_vm4 = vmmov %vm6540_vm0 }
 0x99e   : > { %v4124_v44 = vpack.c.bf16 %v2895_v8, %v2892_v46  ;;  %v4925_v56 = vpop.permute.xlu0 %4924  ;;  %v4122_v40 = vpack.c.bf16 %v2896_v18, %v2893_v54  ;;  %v4956_v14 = vunpack.i.l.bf16 %v4955_v42  ;;  %v4146_v18 = vpack.c.bf16 %v4907_v51, %v4906_v37 }
 0x99f   : > { %v4927_v17 = vunpack.i.h.bf16 %v4925_v56  ;;  %v4926_v58 = vunpack.i.l.bf16 %v4925_v56  ;;  %v2906_v6 = vsel %vm6549_vm4, %v4947_v13, %v4906_v37  ;;  %v2905_v22 = vsel %vm6550_vm1, %v4946_v38, %v4947_v13 }
 0x9a0   : > { %4123 = vmatprep.subr.bf16.mxu0 %v4122_v40  ;;  %vm3191_vm1 = vcmask 949248  }
 0x9a1   : > { %v2894_v60 = vsel %vm6541_vm13, %v4917_v4, %v4926_v58  ;;  %v2897_v27 = vsel %vm6542_vm11, %v4922_v19, %v4927_v17  ;;  %v4138_v48 = vpack.c.bf16 %v4927_v17, %v4926_v58  ;;  %4125 = vmatpush1.bf16.msra.mxu0 %v4124_v44  ;;  %v2899_v4 = vsel %vm6545_vm15, %v4931_v15, %v4932_v23  ;;  %v2881_v56 = vpop.permute.xlu1 %2880  ;;  %vm6551_vm13 = vmmov %vm6540_vm0 }
 0x9a2   : > { %v4140_v41 = vpack.c.bf16 %v2897_v27, %v2894_v60  ;;  %v4935_v32 = vpop.permute.xlu0 %4934  ;;  %v4957_v44 = vunpack.i.h.bf16 %v4955_v42  ;;  %v2904_v58 = vsel %vm6540_vm0, %v4956_v14, %v4946_v38  ;;  %vm6552_vm11 = vmmov %vm6540_vm0 }
 0x9a3   : > { %v4937_v12 = vunpack.i.h.bf16 %v4935_v32  ;;  %v4936_v26 = vunpack.i.l.bf16 %v4935_v32  ;;  %4139 = vmatprep.subr.bf16.mxu1 %v4138_v48  ;;  %vm6555_vm15 = vmmov %vm6540_vm0 }
 0x9a4   : > { %4141 = vmatpush1.bf16.msra.mxu1 %v4140_v41 }
 0x9a5   : > { %v2901_v52 = vsel %vm6544_vm9, %v4887_v24, %v4936_v26  ;;  %v2902_v62 = vsel %vm6546_vm7, %v4936_v26, %v4937_v12  ;;  %v2879_v24 = vpop.permute.xlu1 %2878  ;;  %vm6554_vm9 = vmmov %vm6540_vm0  ;;  %v3943_v26 = vld [vmem:[%s6484_s4 + $0x28] sm:$0xff] }
 0x9a6   : > { %v4128_v43 = vpack.c.bf16 %v2901_v52, %v2898_v1  ;;  %v4940_v49 = vpop.permute.xlu0 %4939  ;;  %v4126_v10 = vpack.c.bf16 %v2902_v62, %v2899_v4  ;;  %vm6556_vm7 = vmmov %vm6540_vm0  ;;  %vm3204_vm0 = vcmask 1014784  }
 0x9a7   : > { %v4942_v39 = vunpack.i.h.bf16 %v4940_v49  ;;  %v4941_v5 = vunpack.i.l.bf16 %v4940_v49  ;;  %v2910_v42 = vsel %vm6556_vm7, %v2879_v24, %v2881_v56 }
 0x9a8   : > { %4127 = vmatprep.subr.bf16.mxu0 %v4126_v10 }
 0x9a9   : > { %v2900_v19 = vsel %vm6547_vm12, %v4932_v23, %v4941_v5  ;;  %v2903_v53 = vsel %vm6548_vm3, %v4937_v12, %v4942_v39  ;;  %v4142_v46 = vpack.c.bf16 %v4942_v39, %v4941_v5  ;;  %4129 = vmatpush1.bf16.msra.mxu0 %v4128_v43  ;;  %vm3179_vm3 = vcmask 990208  }
 0x9aa   : > { %v4144_v8 = vpack.c.bf16 %v2903_v53, %v2900_v19  ;;  %v4950_v54 = vpop.permute.xlu0 %4949 }
 0x9ab   : > { %v4952_v40 = vunpack.i.h.bf16 %v4950_v54  ;;  %v4951_v17 = vunpack.i.l.bf16 %v4950_v54  ;;  %4143 = vmatprep.subr.bf16.mxu1 %v4142_v46 }
 0x9ac   : > { %4145 = vmatpush1.bf16.msra.mxu1 %v4144_v8 }
 0x9ad   : > { %v2907_v23 = vsel %vm6551_vm13, %v4957_v44, %v4951_v17  ;;  %v2909_v15 = vsel %vm6552_vm11, %v4952_v40, %v4907_v51  ;;  %4147 = vmatprep.subr.bf16.mxu1 %v4146_v18  ;;  %v2908_v60 = vsel %vm6553_vm8, %v4951_v17, %v4952_v40  ;;  %vm3216_vm13 = vcmask 973824  }
 0x9ae   : > { %v4132_v27 = vpack.c.bf16 %v2907_v23, %v2904_v58  ;;  %v4148_v48 = vpack.c.bf16 %v2909_v15, %v2906_v6  ;;  %v2883_v41 = vpop.permute.xlu0 %2882  ;;  %v4130_v32 = vpack.c.bf16 %v2908_v60, %v2905_v22  ;;  %v3130_v15 = vld [vmem:[#allocation4 + $0x28] sm:$0xff]  ;;  %vm3228_vm11 = vcmask 932864  }
 0x9af   : > { %v2911_v21 = vsel %vm6554_vm9, %v2881_v56, %v2883_v41  ;;  %v2812_v52 = vpop.permute.xlu1 %2811  ;;  %vm3312_vm8 = vcmask 875520  }
 0x9b0   : > { %4131 = vmatprep.subr.bf16.mxu0 %v4130_v32  ;;  %4149 = vmatpush1.bf16.msra.mxu1 %v4148_v48  ;;  %v5162_v48 = vmov 6  }
 0x9b1   : > { %4133 = vmatpush1.bf16.msra.mxu0 %v4132_v27  ;;  %5109 = vset.pattern.permute.xlu0 %v5162_v48 }
 0x9b2   : > { %v2885_v12 = vpop.permute.xlu0 %2884  ;;  %2968 = vmatprep.subr.mxu0 %v2911_v21 }
 0x9b3   : > { %v2912_v1 = vsel %vm6555_vm15, %v2883_v41, %v2885_v12  ;;  %3039 = vmatprep.subr.mxu1 %v2885_v12 }
 0x9b4   : > { %3040 = vmatpush1.msra.mxu1 %v2912_v1 }
 0x9b5   : > { %2969 = vmatpush1.msra.mxu0 %v2910_v42  ;;  %3945 = vmatmul.mubr.msk.f32.vlgmr.msra.gmra.mrb[16].mxu1 %vm833_vm14, %v3943_v26 }
 0x9b6   : > { %3944 = vmatmul.mubr.msk.f32.vlgmr.msra.gmra.mrb[16].mxu0 %vm833_vm14, %v3943_v26  ;;  %3514 = vmatprep.mubr.f32.mxu1 %v6145_v45 }
 0x9b7   : > { %3443 = vmatprep.mubr.f32.mxu0 %v6145_v45 }
 0xa88   : > { %v3089_v4 = vpop.f32.mrb[16].mxu1 }
 0xa89   : > { %v3018_v62 = vpop.f32.mrb[16].mxu0  ;;  %v3091_v43 = vpop.f32.mrb[17].mxu1  ;;  %v3090_v10 = vadd.f32 %v3089_v4, %v2812_v52 }
 0xa8a   : > { %v3019_v49 = vadd.f32 %v3018_v62, %v2812_v52  ;;  %v3020_v51 = vpop.f32.mrb[17].mxu0  ;;  %v3092_v39 = vadd.f32 %v3091_v43, %v2812_v52 }
 0xa8b   : > { %v3021_v37 = vadd.f32 %v3020_v51, %v2812_v52  ;;  %v3096_v14 = vmax.f32 %v3090_v10, 0.0 }
 0xa8c   : > { %v3094_v5 = vmax.f32 %v3019_v49, 0.0  ;;  %v3097_v53 = vmax.f32 %v3092_v39, 0.0 }
 0xa8d   : > { %v3095_v13 = vmax.f32 %v3021_v37, 0.0  ;;  %v3100_v46 = vmul.f32 %v3096_v14, %v5274_v31 }
 0xa8e   : > { %v3098_v38 = vmul.f32 %v3094_v5, %v5265_v16  ;;  %v3101_v8 = vmul.f32 %v3097_v53, %v5272_v29 }
 0xa8f   : > { %v3099_v19 = vmul.f32 %v3095_v13, %v5267_v25 }
 0xa90   : > { %3106 = vrot.lane.b32.xlu0 %v3098_v38, %s5132_s25 }
 0xa91   : > { %3108 = vrot.lane.b32.xlu1 %v3099_v19, %s5132_s25 }
 0xa94   : > { %3110 = vrot.lane.b32.xlu0 %v3100_v46, %s5132_s25 }
 0xa95   : > { %3112 = vrot.lane.b32.xlu1 %v3101_v8, %s5132_s25  ;;  %s5155_s25 = smov 118  }
 0xb02   : > { %v3107_v54 = vpop.permute.xlu0 %3106 }
 0xb03   : > { %3121 = vst.msk [vmem:[#allocation4 + $0x8] sm:$0xff] %vm592_vm5, %v3107_v54  ;;  %v3109_v16 = vpop.permute.xlu1 %3108  ;;  %vm3155_vm5 = vcmask 965632  }
 0xb04   : > { %v3114_v18 = vsel %vm383_vm2, %v3107_v54, %v3109_v16 }
 0xb05   : > { %v5014_v60 = vpack.i.bf16 %v3114_v18, %v3130_v15 }
 0xb06   : > { %v3111_v25 = vpop.permute.xlu0 %3110 }
 0xb07   : > { %v3115_v44 = vsel %vm383_vm2, %v3109_v16, %v3111_v25  ;;  %v3113_v56 = vpop.permute.xlu1 %3112 }
 0xb08   : > { %v3116_v40 = vsel %vm383_vm2, %v3111_v25, %v3113_v56  ;;  %v4994_v22 = vpack.i.bf16 %v3115_v44, %v3114_v18  ;;  %v4979_v58 = vpack.i.bf16 %v6145_v45, %v3115_v44  ;;  %v5034_v27 = vpack.i.bf16 %v3115_v44, %v6145_v45 }
 0xb09   : > { %3124 = vst.msk [vmem:[#allocation4 + $0x20] sm:$0xff] %vm596_vm6, %v3116_v40  ;;  %vm3143_vm2 = vcmask 1006592   ;;  %vm6557_vm6 = vcmask 1031168  }
 0xb0a   : > { %v3126_v31 = vld [vmem:[#allocation4 + $0x8] sm:$0xff]  ;;  %vm6558_vm12 = vmmov %vm6557_vm6 }
 0xb0b   : > { %v4974_v29 = vpack.i.bf16 %v3114_v18, %v3126_v31  ;;  %vm6559_vm4 = vmmov %vm6557_vm6 }
 0xb0d   : > { %4975 = vrot.lane.b32.xlu0 %v4974_v29, %s5154_s20 }
 0xb10   : > { %v3129_v17 = vld [vmem:[#allocation4 + $0x20] sm:$0xff] }
 0xb11   : > { %4985 = vrot.lane.b32.xlu0 %v4974_v29, %s5155_s25  ;;  %v4959_v6 = vpack.i.bf16 %v3126_v31, %v3129_v17  ;;  %v5009_v23 = vpack.i.bf16 %v3129_v17, %v3115_v44 }
 0xb13   : > { %4960 = vrot.lane.b32.xlu1 %v4959_v6, %s5138_s11 }
 0xb15   : > { %4995 = vrot.lane.b32.xlu0 %v4994_v22, %s5138_s11  ;;  %s5161_s11 = smov 107  }
 0xb17   : > { %4965 = vrot.lane.b32.xlu1 %v4959_v6, %s5156_s21 }
 0xb19   : > { %5000 = vrot.lane.b32.xlu0 %v4994_v22, %s5156_s21  ;;  %s6560_s21 = sshll.u32 %s6563_s14, 4 }
 0xb1b   : > { %4970 = vrot.lane.b32.xlu1 %v4959_v6, %s5157_s22 }
 0xb1d   : > { %5005 = vrot.lane.b32.xlu0 %v4994_v22, %s5157_s22 }
 0xb1f   : > { %4980 = vrot.lane.b32.xlu1 %v4979_v58, %s5154_s20 }
 0xb21   : > { %5010 = vrot.lane.b32.xlu0 %v5009_v23, %s5158_s23 }
 0xb23   : > { %4990 = vrot.lane.b32.xlu1 %v4979_v58, %s5155_s25 }
 0xb25   : > { %5020 = vrot.lane.b32.xlu0 %v5009_v23, %s5159_s24 }
 0xb27   : > { %5015 = vrot.lane.b32.xlu1 %v5014_v60, %s5158_s23 }
 0xb29   : > { %3222 = vrot.lane.b32.xlu0 %v3115_v44, %s5160_s15 }
 0xb2b   : > { %5025 = vrot.lane.b32.xlu1 %v5014_v60, %s5159_s24  ;;  %s359_s24 = scalar_lea.vmem %s6490_s10, %s6560_s21 }
 0xb2d   : > { %3226 = vrot.lane.b32.xlu0 %v3130_v15, %s5160_s15 }
 0xb2f   : > { %3224 = vrot.lane.b32.xlu1 %v3129_v17, %s5160_s15 }
 0xb31   : > { %5030 = vrot.lane.b32.xlu0 %v4974_v29, %s5161_s11 }
 0xb33   : > { %3220 = vrot.lane.b32.xlu1 %v3114_v18, %s5160_s15 }
 0xb35   : > { %5035 = vrot.lane.b32.xlu0 %v5034_v27, %s5161_s11 }
 0xb7f   : > { %v4976_v41 = vpop.permute.xlu0 %4975 }
 0xb80   : > { %v4977_v42 = vunpack.i.l.bf16 %v4976_v41  ;;  %v4978_v43 = vunpack.i.h.bf16 %v4976_v41 }
 0xb82   : > { %v3145_v19 = vsel %vm3143_vm2, %v4977_v42, %v4978_v43 }
 0xb83   : > { %v4986_v24 = vpop.permute.xlu0 %4985 }
 0xb84   : > { %v4987_v49 = vunpack.i.l.bf16 %v4986_v24  ;;  %v4988_v53 = vunpack.i.h.bf16 %v4986_v24 }
 0xb85   : > { %v4961_v32 = vpop.permute.xlu1 %4960 }
 0xb86   : > { %v4962_v14 = vunpack.i.l.bf16 %v4961_v32  ;;  %v4963_v31 = vunpack.i.h.bf16 %v4961_v32  ;;  %v3157_v29 = vsel %vm3155_vm5, %v4987_v49, %v4988_v53 }
 0xb87   : > { %v4996_v12 = vpop.permute.xlu0 %4995 }
 0xb88   : > { %v4998_v10 = vunpack.i.h.bf16 %v4996_v12  ;;  %v4997_v39 = vunpack.i.l.bf16 %v4996_v12 }
 0xb89   : > { %v6361_v21 = vpop.permute.xlu1 %4965 }
 0xb8a   : > { %v3170_v8 = vsel %vm6557_vm6, %v4998_v10, %v4962_v14  ;;  %v3169_v25 = vsel %vm6558_vm12, %v4997_v39, %v4998_v10  ;;  %v4967_v17 = vunpack.i.l.bf16 %v6361_v21  ;;  %v3168_v22 = vsel %vm6559_vm4, %v4963_v31, %v4997_v39 }
 0xb8b   : > { %v5001_v62 = vpop.permute.xlu0 %5000  ;;  %v5059_v6 = vpack.i.bf16 %v3170_v8, %v3169_v25  ;;  %v4968_v32 = vunpack.i.h.bf16 %v6361_v21  ;;  %v5064_v12 = vpack.i.bf16 %v4962_v14, %v3168_v22 }
 0xb8c   : > { %v5003_v44 = vunpack.i.h.bf16 %v5001_v62  ;;  %v5002_v56 = vunpack.i.l.bf16 %v5001_v62 }
 0xb8d   : > { %v6363_v26 = vpop.permute.xlu1 %4970 }
 0xb8e   : > { %v3182_v15 = vsel %vm3179_vm3, %v5003_v44, %v4967_v17  ;;  %v3181_v60 = vsel %vm3179_vm3, %v5002_v56, %v5003_v44  ;;  %v4972_v24 = vunpack.i.l.bf16 %v6363_v26 }
 0xb8f   : > { %v5006_v16 = vpop.permute.xlu0 %5005 }
 0xb90   : > { %v5008_v27 = vunpack.i.h.bf16 %v5006_v16  ;;  %v5007_v48 = vunpack.i.l.bf16 %v5006_v16 }
 0xb91   : > { %v4981_v1 = vpop.permute.xlu1 %4980 }
 0xb92   : > { %v4983_v52 = vunpack.i.h.bf16 %v4981_v1  ;;  %v4982_v4 = vunpack.i.l.bf16 %v4981_v1  ;;  %v5069_v1 = vpack.i.bf16 %v3182_v15, %v3181_v60  ;;  %v2136_v15 = vld [vmem:[%s6487_s7] sm:$0xff] }
 0xb93   : > { %v5011_v41 = vpop.permute.xlu0 %5010  ;;  %v5120_v60 = vld [vmem:[%s6485_s5] sm:$0xff] }
 0xb94   : > { %v3144_v45 = vsel %vm3143_vm2, %v4983_v52, %v4977_v42  ;;  %v3146_v5 = vsel %vm3143_vm2, %v4978_v43, %v4982_v4  ;;  %v3180_v42 = vsel %vm3179_vm3, %v4968_v32, %v5002_v56  ;;  %v3194_v52 = vsel %vm3191_vm1, %v5008_v27, %v4972_v24 }
 0xb95   : > { %v5039_v51 = vpack.i.bf16 %v4982_v4, %v3144_v45  ;;  %v4991_v37 = vpop.permute.xlu1 %4990  ;;  %v5049_v54 = vpack.i.bf16 %v3146_v5, %v3145_v19  ;;  %v3193_v4 = vsel %vm3191_vm1, %v5007_v48, %v5008_v27  ;;  %v4973_v45 = vunpack.i.h.bf16 %v6363_v26 }
 0xb96   : > { %v4993_v13 = vunpack.i.h.bf16 %v4991_v37  ;;  %v4992_v38 = vunpack.i.l.bf16 %v4991_v37  ;;  %v5012_v21 = vunpack.i.l.bf16 %v5011_v41  ;;  %v5079_v10 = vpack.i.bf16 %v4967_v17, %v3180_v42 }
 0xb97   : > { %5040 = vrot.lane.b32.xlu1 %v5039_v51, %s5161_s11  ;;  %v5074_v51 = vpack.i.bf16 %v3194_v52, %v3193_v4  ;;  %v5021_v37 = vpop.permute.xlu0 %5020  ;;  %v3192_v39 = vsel %vm3191_vm1, %v4973_v45, %v5007_v48 }
 0xb98   : > { %v3156_v46 = vsel %vm3155_vm5, %v4993_v13, %v4987_v49  ;;  %v3158_v40 = vsel %vm3155_vm5, %v4988_v53, %v4992_v38  ;;  %v5013_v49 = vunpack.i.h.bf16 %v5011_v41  ;;  %v5023_v19 = vunpack.i.h.bf16 %v5021_v37 }
 0xb99   : > { %v5044_v18 = vpack.i.bf16 %v4992_v38, %v3156_v46  ;;  %v5054_v58 = vpack.i.bf16 %v3158_v40, %v3157_v29  ;;  %v5016_v23 = vpop.permute.xlu1 %5015  ;;  %v5022_v53 = vunpack.i.l.bf16 %v5021_v37  ;;  %v5084_v46 = vpack.i.bf16 %v4972_v24, %v3192_v39 }
 0xb9a   : > { %v5017_v62 = vunpack.i.l.bf16 %v5016_v23  ;;  %v5018_v5 = vunpack.i.h.bf16 %v5016_v23  ;;  %v3206_v14 = vsel %vm3204_vm0, %v5012_v21, %v5013_v49 }
 0xb9b   : > { %5045 = vrot.lane.b32.xlu0 %v5044_v18, %s5161_s11  ;;  %5050 = vrot.lane.b32.xlu1 %v5049_v54, %s5161_s11  ;;  %v3218_v18 = vsel %vm3216_vm13, %v5022_v53, %v5023_v19  ;;  %v3223_v31 = vpop.permute.xlu0 %3222 }
 0xb9c   : > { %v3207_v13 = vsel %vm3204_vm0, %v5013_v49, %v5017_v62  ;;  %v3205_v8 = vsel %vm3204_vm0, %v5018_v5, %v5012_v21 }
 0xb9d   : > { %v5026_v43 = vpop.permute.xlu1 %5025  ;;  %v5089_v26 = vpack.i.bf16 %v3207_v13, %v3206_v14  ;;  %v5099_v25 = vpack.i.bf16 %v5017_v62, %v3205_v8 }
 0xb9e   : > { %v5027_v38 = vunpack.i.l.bf16 %v5026_v43  ;;  %v5028_v54 = vunpack.i.h.bf16 %v5026_v43 }
 0xb9f   : > { %5055 = vrot.lane.b32.xlu0 %v5054_v58, %s5161_s11  ;;  %5060 = vrot.lane.b32.xlu1 %v5059_v6, %s5161_s11  ;;  %v3227_v22 = vpop.permute.xlu0 %3226 }
 0xba0   : > { %v3219_v16 = vsel %vm3216_vm13, %v5023_v19, %v5027_v38  ;;  %v3217_v40 = vsel %vm3216_vm13, %v5028_v54, %v5022_v53 }
 0xba1   : > { %v5094_v44 = vpack.i.bf16 %v3219_v16, %v3218_v18  ;;  %v3225_v56 = vpop.permute.xlu1 %3224  ;;  %v5104_v29 = vpack.i.bf16 %v5027_v38, %v3217_v40 }
 0xba2   : > { %v3230_v17 = vsel %vm3228_vm11, %v3223_v31, %v3225_v56  ;;  %v3231_v58 = vsel %vm3228_vm11, %v3225_v56, %v3227_v22 }
 0xba3   : > { %5070 = vrot.lane.b32.xlu0 %v5069_v1, %s5161_s11  ;;  %5065 = vrot.lane.b32.xlu1 %v5064_v12, %s5161_s11 }
 0xba5   : > { %v3221_v6 = vpop.permute.xlu1 %3220 }
 0xba6   : > { %v3229_v23 = vsel %vm3228_vm11, %v3221_v6, %v3223_v31 }
 0xba7   : > { %5080 = vrot.lane.b32.xlu0 %v5079_v10, %s5161_s11  ;;  %5075 = vrot.lane.b32.xlu1 %v5074_v51, %s5161_s11 }
 0xbab   : > { %5090 = vrot.lane.b32.xlu0 %v5089_v26, %s5161_s11  ;;  %5085 = vrot.lane.b32.xlu1 %v5084_v46, %s5161_s11 }
 0xbaf   : > { %5100 = vrot.lane.b32.xlu0 %v5099_v25, %s5161_s11  ;;  %5095 = vrot.lane.b32.xlu1 %v5094_v44, %s5161_s11 }
 0xbb3   : > { %3306 = vrot.lane.b32.xlu0 %v3230_v17, %s5161_s11  ;;  %5105 = vrot.lane.b32.xlu1 %v5104_v29, %s5161_s11 }
 0xbb7   : > { %3304 = vrot.lane.b32.xlu0 %v3229_v23, %s5161_s11  ;;  %3308 = vrot.lane.b32.xlu1 %v3231_v58, %s5161_s11 }
 0xbbb   : > { %3237 = vperm.xlu0 %5109, %v6289_v36   ;;  %3310 = vrot.lane.b32.xlu1 %v3227_v22, %s5161_s11  ;;  %v5031_v36 = vpop.permute.xlu0 %5030 }
 0xbbc   : > { %v5032_v24 = vunpack.i.l.bf16 %v5031_v36 }
 0xbbf   : > { %5111 = vset.pattern.permute.xlu0 %v5149_v55  ;;  %706 = vperm.xlu1 %5110, %v5120_v60   ;;  %v5036_v27 = vpop.permute.xlu0 %5035  ;;  %v5033_v55 = vunpack.i.h.bf16 %v5031_v36 }
 0xbc0   : > { %2139 = vperm.xlu0 %5111, %v2136_v15   ;;  %v5038_v41 = vunpack.i.h.bf16 %v5036_v27  ;;  %v5037_v12 = vunpack.i.l.bf16 %v5036_v27 }
 0xbc2   : > { %v3315_v45 = vsel %vm3312_vm8, %v5033_v55, %v5038_v41 }
 0xbc3   : > { %1394 = vperm.xlu1 %5110, %v2136_v15  }
 0xbc4   : > { %5114 = vset.pattern.permute.xlu0 %v5131_v2 }
 0xbc7   : > { %5112 = vset.pattern.permute.xlu1 %v5150_v20  ;;  %v3313_v20 = vsel %vm3312_vm8, %v5037_v12, %v5032_v24 }
 0xbc8   : > { %3530 = vperm.xlu1 %5112, %v2136_v15  }
 0xbcc   : > { %5113 = vset.pattern.permute.xlu1 %v5131_v2  ;;  %v3314_v2 = vsel %vm3312_vm8, %v5032_v24, %v5033_v55 }
 0xc09   : > { %v5041_v48 = vpop.permute.xlu1 %5040 }
 0xc0a   : > { %v5043_v32 = vunpack.i.h.bf16 %v5041_v48  ;;  %v5042_v4 = vunpack.i.l.bf16 %v5041_v48 }
 0xc0c   : > { %v4166_v1 = vpack.c.bf16 %v5043_v32, %v5038_v41 }
 0xc0d   : > { %v5046_v42 = vpop.permute.xlu0 %5045  ;;  %v5051_v52 = vpop.permute.xlu1 %5050 }
 0xc0e   : > { %v5053_v62 = vunpack.i.h.bf16 %v5051_v52  ;;  %v5052_v43 = vunpack.i.l.bf16 %v5051_v52  ;;  %4167 = vmatprep.subr.bf16.mxu1 %v4166_v1  ;;  %v5048_v8 = vunpack.i.h.bf16 %v5046_v42  ;;  %v5047_v54 = vunpack.i.l.bf16 %v5046_v42 }
 0xc10   : > { %v3316_v49 = vsel %vm3312_vm8, %v5042_v4, %v5052_v43  ;;  %v3318_v21 = vsel %vm3312_vm8, %v5053_v62, %v5043_v32  ;;  %v3317_v10 = vsel %vm3312_vm8, %v5052_v43, %v5053_v62 }
 0xc11   : > { %v4152_v51 = vpack.c.bf16 %v3316_v49, %v3313_v20  ;;  %v4168_v37 = vpack.c.bf16 %v3318_v21, %v3315_v45  ;;  %v5056_v39 = vpop.permute.xlu0 %5055  ;;  %v5061_v5 = vpop.permute.xlu1 %5060  ;;  %v4150_v13 = vpack.c.bf16 %v3317_v10, %v3314_v2 }
 0xc12   : > { %v5058_v38 = vunpack.i.h.bf16 %v5056_v39  ;;  %v5057_v14 = vunpack.i.l.bf16 %v5056_v39  ;;  %v5063_v19 = vunpack.i.h.bf16 %v5061_v5  ;;  %v5062_v53 = vunpack.i.l.bf16 %v5061_v5 }
 0xc13   : > { %4151 = vmatprep.subr.bf16.mxu0 %v4150_v13  ;;  %4169 = vmatpush1.bf16.msra.mxu1 %v4168_v37 }
 0xc14   : > { %4153 = vmatpush1.bf16.msra.mxu0 %v4152_v51  ;;  %v3320_v46 = vsel %vm3312_vm8, %v5057_v14, %v5058_v38  ;;  %v3323_v26 = vsel %vm3312_vm8, %v5062_v53, %v5063_v19  ;;  %v3319_v40 = vsel %vm3312_vm8, %v5047_v54, %v5057_v14  ;;  %v3321_v31 = vsel %vm3312_vm8, %v5058_v38, %v5048_v8 }
 0xc15   : > { %v5071_v16 = vpop.permute.xlu0 %5070  ;;  %v5066_v18 = vpop.permute.xlu1 %5065  ;;  %v4154_v25 = vpack.c.bf16 %v3323_v26, %v3320_v46 }
 0xc16   : > { %v5068_v44 = vunpack.i.h.bf16 %v5066_v18  ;;  %v5067_v56 = vunpack.i.l.bf16 %v5066_v18  ;;  %v5073_v29 = vunpack.i.h.bf16 %v5071_v16  ;;  %v5072_v17 = vunpack.i.l.bf16 %v5071_v16 }
 0xc17   : > { %4155 = vmatprep.subr.bf16.mxu0 %v4154_v25 }
 0xc18   : > { %v4170_v6 = vpack.c.bf16 %v5068_v44, %v5048_v8  ;;  %v3322_v22 = vsel %vm3312_vm8, %v5067_v56, %v5062_v53  ;;  %v3324_v58 = vsel %vm3312_vm8, %v5063_v19, %v5068_v44  ;;  %v3326_v55 = vsel %vm3312_vm8, %v5072_v17, %v5073_v29 }
 0xc19   : > { %v4156_v23 = vpack.c.bf16 %v3322_v22, %v3319_v40  ;;  %v4172_v15 = vpack.c.bf16 %v3324_v58, %v3321_v31  ;;  %v5081_v60 = vpop.permute.xlu0 %5080  ;;  %v5076_v36 = vpop.permute.xlu1 %5075 }
 0xc1a   : > { %v5078_v27 = vunpack.i.h.bf16 %v5076_v36  ;;  %v5077_v48 = vunpack.i.l.bf16 %v5076_v36  ;;  %4171 = vmatprep.subr.bf16.mxu1 %v4170_v6  ;;  %v5083_v41 = vunpack.i.h.bf16 %v5081_v60  ;;  %v5082_v32 = vunpack.i.l.bf16 %v5081_v60  ;;  %v5121_v36 = vld [vmem:[#allocation2] sm:$0xff] }
 0xc1b   : > { %4157 = vmatpush1.bf16.msra.mxu0 %v4156_v23  ;;  %4173 = vmatpush1.bf16.msra.mxu1 %v4172_v15  ;;  %v3946_v23 = vld [vmem:[%s6484_s4 + $0x30] sm:$0xff] }
 0xc1c   : > { %v3329_v24 = vsel %vm3312_vm8, %v5077_v48, %v5078_v27  ;;  %v3325_v62 = vsel %vm3312_vm8, %v5082_v32, %v5072_v17  ;;  %v3327_v43 = vsel %vm3312_vm8, %v5073_v29, %v5083_v41 }
 0xc1d   : > { %v5091_v12 = vpop.permute.xlu0 %5090  ;;  %v5086_v1 = vpop.permute.xlu1 %5085  ;;  %v4158_v42 = vpack.c.bf16 %v3329_v24, %v3326_v55 }
 0xc1e   : > { %v5088_v52 = vunpack.i.h.bf16 %v5086_v1  ;;  %v5087_v4 = vunpack.i.l.bf16 %v5086_v1  ;;  %v5093_v20 = vunpack.i.h.bf16 %v5091_v12  ;;  %v5092_v2 = vunpack.i.l.bf16 %v5091_v12 }
 0xc1f   : > { %4159 = vmatprep.subr.bf16.mxu0 %v4158_v42 }
 0xc20   : > { %v4174_v45 = vpack.c.bf16 %v5088_v52, %v5083_v41  ;;  %v3328_v49 = vsel %vm3312_vm8, %v5087_v4, %v5077_v48  ;;  %v3330_v21 = vsel %vm3312_vm8, %v5078_v27, %v5088_v52  ;;  %v3332_v19 = vsel %vm3312_vm8, %v5092_v2, %v5093_v20 }
 0xc21   : > { %v4160_v10 = vpack.c.bf16 %v3328_v49, %v3325_v62  ;;  %v4176_v51 = vpack.c.bf16 %v3330_v21, %v3327_v43  ;;  %v5101_v37 = vpop.permute.xlu0 %5100  ;;  %v5096_v39 = vpop.permute.xlu1 %5095 }
 0xc22   : > { %v5098_v5 = vunpack.i.h.bf16 %v5096_v39  ;;  %v5097_v13 = vunpack.i.l.bf16 %v5096_v39  ;;  %4175 = vmatprep.subr.bf16.mxu1 %v4174_v45  ;;  %v5102_v38 = vunpack.i.l.bf16 %v5101_v37  ;;  %v5103_v14 = vunpack.i.h.bf16 %v5101_v37 }
 0xc23   : > { %4161 = vmatpush1.bf16.msra.mxu0 %v4160_v10  ;;  %4177 = vmatpush1.bf16.msra.mxu1 %v4176_v51 }
 0xc24   : > { %v3335_v53 = vsel %vm3312_vm8, %v5097_v13, %v5098_v5  ;;  %v3331_v18 = vsel %vm3312_vm8, %v5102_v38, %v5092_v2  ;;  %v3333_v25 = vsel %vm3312_vm8, %v5093_v20, %v5103_v14 }
 0xc25   : > { %v3307_v46 = vpop.permute.xlu0 %3306  ;;  %v5106_v26 = vpop.permute.xlu1 %5105  ;;  %v4162_v8 = vpack.c.bf16 %v3335_v53, %v3332_v19 }
 0xc26   : > { %v5108_v54 = vunpack.i.h.bf16 %v5106_v26  ;;  %v5107_v16 = vunpack.i.l.bf16 %v5106_v26 }
 0xc27   : > { %4163 = vmatprep.subr.bf16.mxu0 %v4162_v8 }
 0xc28   : > { %v4178_v44 = vpack.c.bf16 %v5108_v54, %v5103_v14  ;;  %v3334_v56 = vsel %vm3312_vm8, %v5107_v16, %v5097_v13  ;;  %v3336_v40 = vsel %vm3312_vm8, %v5098_v5, %v5108_v54  ;;  %v3949_v16 = vld [vmem:[%s6486_s6 + $0x10] sm:$0xff] }
 0xc29   : > { %v4164_v31 = vpack.c.bf16 %v3334_v56, %v3331_v18  ;;  %v4180_v29 = vpack.c.bf16 %v3336_v40, %v3333_v25  ;;  %v3309_v17 = vpop.permute.xlu1 %3308  ;;  %v3305_v22 = vpop.permute.xlu0 %3304  ;;  %v3687_v18 = vld [vmem:[%s6489_s9] sm:$0xf] }
 0xc2a   : > { %4179 = vmatprep.subr.bf16.mxu1 %v4178_v44  ;;  %v3338_v6 = vsel %vm3312_vm8, %v3307_v46, %v3309_v17  ;;  %v3337_v15 = vsel %vm3312_vm8, %v3305_v22, %v3307_v46  ;;  %3690 = vperm.xlu1 %5113, %v3687_v18  }
 0xc2b   : > { %4165 = vmatpush1.bf16.msra.mxu0 %v4164_v31  ;;  %4181 = vmatpush1.bf16.msra.mxu1 %v4180_v29 }
 0xc2c   : > { %3395 = vmatprep.subr.mxu0 %v3338_v6 }
 0xc2d   : > { %v3311_v58 = vpop.permute.xlu1 %3310 }
 0xc2e   : > { %v3339_v60 = vsel %vm3312_vm8, %v3309_v17, %v3311_v58  ;;  %3466 = vmatprep.subr.mxu1 %v3311_v58 }
 0xc2f   : > { %3396 = vmatpush1.msra.mxu0 %v3337_v15  ;;  %3467 = vmatpush1.msra.mxu1 %v3339_v60 }
 0xc30   : > { %3947 = vmatmul.mubr.msk.f32.vlgmr.msra.gmra.mrb[18].mxu0 %vm833_vm14, %v3946_v23  ;;  %3948 = vmatmul.mubr.msk.f32.vlgmr.msra.gmra.mrb[18].mxu1 %vm833_vm14, %v3946_v23  ;;  %vm3851_vm14 = vcmask 261124  }
 0xc31   : > { %3600 = vmatprep.mubr.f32.mxu0 %v5121_v36  ;;  %3671 = vmatprep.mubr.f32.mxu1 %v5121_v36 }
 0xc3a   : > { %v3238_v27 = vpop.permute.xlu0 %3237 }
 0xc3e   : > { %v707_v48 = vpop.permute.xlu1 %706 }
 0xc3f   : > { %v2140_v41 = vpop.permute.xlu0 %2139  ;;  %v904_v32 = vadd.f32 %v5790_v30, %v707_v48  ;;  %v906_v55 = vadd.f32 %v5792_v57, %v707_v48  ;;  %v975_v24 = vadd.f32 %v5786_v0, %v707_v48  ;;  %v977_v12 = vadd.f32 %v5788_v61, %v707_v48 }
 0xc40   : > { %v2212_v1 = vadd.f32 %v6166_v3, %v2140_v41  ;;  %v2214_v42 = vadd.f32 %v6170_v47, %v2140_v41  ;;  %v2283_v52 = vadd.f32 %v6168_v59, %v2140_v41  ;;  %v2285_v4 = vadd.f32 %v6172_v9, %v2140_v41 }
 0xc41   : > { %v979_v0 = vadd.f32 %v904_v32, %v5270_v28  ;;  %v980_v61 = vadd.f32 %v906_v55, %v5277_v33  ;;  %v981_v3 = vadd.f32 %v975_v24, %v5287_v35  ;;  %v982_v47 = vadd.f32 %v977_v12, %v5284_v34  ;;  %v3686_v32 = vld [vmem:[%s6488_s8] sm:$0xf] }
 0xc42   : > { %v1395_v62 = vpop.permute.xlu1 %1394  ;;  %v2287_v49 = vmax.f32 %v2212_v1, 0.0  ;;  %v2289_v21 = vmax.f32 %v2283_v52, 0.0 }
 0xc43   : > { %v1468_v43 = vadd.f32 %v5832_v50, %v1395_v62  ;;  %v1470_v20 = vadd.f32 %v5834_v11, %v1395_v62  ;;  %v1539_v30 = vadd.f32 %v5828_v63, %v1395_v62  ;;  %v1541_v57 = vadd.f32 %v5830_v7, %v1395_v62 }
 0xc44   : > { %v2288_v50 = vmax.f32 %v2214_v42, 0.0  ;;  %v2290_v11 = vmax.f32 %v2285_v4, 0.0 }
 0xc45   : > { %v1543_v59 = vmax.f32 %v1468_v43, 0.0  ;;  %v1544_v2 = vmax.f32 %v1470_v20, 0.0  ;;  %v1545_v9 = vmax.f32 %v1539_v30, 0.0  ;;  %v1546_v45 = vmax.f32 %v1541_v57, 0.0 }
 0xc47   : > { %v1547_v10 = vadd.f32 %v1543_v59, %v979_v0  ;;  %v1549_v63 = vadd.f32 %v1545_v9, %v981_v3  ;;  %v1548_v51 = vadd.f32 %v1544_v2, %v980_v61  ;;  %v1550_v7 = vadd.f32 %v1546_v45, %v982_v47  ;;  %v3531_v25 = vpop.permute.xlu1 %3530 }
 0xc49   : > { %v2291_v37 = vadd.f32 %v2287_v49, %v1547_v10  ;;  %v2293_v28 = vadd.f32 %v2289_v21, %v1549_v63  ;;  %v2292_v39 = vadd.f32 %v2288_v50, %v1548_v51  ;;  %v2294_v33 = vadd.f32 %v2290_v11, %v1550_v7 }
 0xca9   : > { %v3691_v55 = vpop.permute.xlu1 %3690 }
 0xd03   : > { %v3445_v5 = vpop.f32.mrb[18].mxu0  ;;  %v3516_v35 = vpop.f32.mrb[18].mxu1 }
 0xd04   : > { %v3446_v13 = vadd.f32 %v3445_v5, %v3238_v27  ;;  %v3517_v34 = vadd.f32 %v3516_v35, %v3238_v27  ;;  %v3447_v38 = vpop.f32.mrb[19].mxu0  ;;  %v3518_v14 = vpop.f32.mrb[19].mxu1 }
 0xd05   : > { %v3448_v19 = vadd.f32 %v3447_v38, %v3238_v27  ;;  %v3519_v53 = vadd.f32 %v3518_v14, %v3238_v27 }
 0xd06   : > { %v3521_v8 = vmax.f32 %v3446_v13, 0.0  ;;  %v3523_v54 = vmax.f32 %v3517_v34, 0.0 }
 0xd07   : > { %v3522_v46 = vmax.f32 %v3448_v19, 0.0  ;;  %v3524_v26 = vmax.f32 %v3519_v53, 0.0 }
 0xd09   : > { %3536 = vmatprep.subr.mxu0 %v3522_v46  ;;  %3607 = vmatprep.subr.mxu1 %v3524_v26 }
 0xd0a   : > { %3537 = vmatpush1.msra.mxu0 %v3521_v8  ;;  %3608 = vmatpush1.msra.mxu1 %v3523_v54 }
 0xd0b   : > { %3950 = vmatmul.mubr.msk.f32.vlgmr.msra.gmra.mrb[20].mxu0 %vm1397_vm10, %v3949_v16  ;;  %3951 = vmatmul.mubr.msk.f32.vlgmr.msra.gmra.mrb[20].mxu1 %vm1397_vm10, %v3949_v16 }
 0xd0c   : > { %3760 = vmatprep.mubr.f32.mxu0 %v5121_v36  ;;  %3831 = vmatprep.mubr.f32.mxu1 %v5121_v36 }
 0xdde   : > { %v3602_v44 = vpop.f32.mrb[20].mxu0  ;;  %v3673_v56 = vpop.f32.mrb[20].mxu1 }
 0xddf   : > { %v3603_v40 = vadd.f32 %v3602_v44, %v3531_v25  ;;  %v3674_v31 = vadd.f32 %v3673_v56, %v3531_v25  ;;  %v3604_v29 = vpop.f32.mrb[21].mxu0  ;;  %v3675_v17 = vpop.f32.mrb[21].mxu1 }
 0xde0   : > { %v3605_v6 = vadd.f32 %v3604_v29, %v3531_v25  ;;  %v3676_v22 = vadd.f32 %v3675_v17, %v3531_v25 }
 0xde1   : > { %v3678_v58 = vmax.f32 %v3603_v40, 0.0  ;;  %v3680_v23 = vmax.f32 %v3674_v31, 0.0 }
 0xde2   : > { %v3679_v15 = vmax.f32 %v3605_v6, 0.0  ;;  %v3681_v60 = vmax.f32 %v3676_v22, 0.0 }
 0xde3   : > { %v3682_v27 = vadd.f32 %v3678_v58, %v2291_v37  ;;  %v3684_v36 = vadd.f32 %v3680_v23, %v2293_v28 }
 0xde4   : > { %v3683_v48 = vadd.f32 %v3679_v15, %v2292_v39  ;;  %v3685_v41 = vadd.f32 %v3681_v60, %v2294_v33 }
 0xde6   : > { %3696 = vmatprep.subr.mxu0 %v3683_v48  ;;  %3767 = vmatprep.subr.mxu1 %v3685_v41 }
 0xde7   : > { %3697 = vmatpush1.msra.mxu0 %v3682_v27  ;;  %3768 = vmatpush1.msra.mxu1 %v3684_v36 }
 0xde8   : > { %3952 = vmatmul.mubr.msk.f32.vlgmr.msra.gmra.mrb[22].mxu0 %vm1397_vm10, %v3686_v32  ;;  %3953 = vmatmul.mubr.msk.f32.vlgmr.msra.gmra.mrb[22].mxu1 %vm1397_vm10, %v3686_v32  ;;  %vm6561_vm10 = vcmask 1043456  }
 0xde9   : > { %vm3852_vm9 = vmor %vm3851_vm14, %vm6561_vm10 }
 0xebb   : > { %v3762_v24 = vpop.f32.mrb[22].mxu0  ;;  %v3833_v12 = vpop.f32.mrb[22].mxu1 }
 0xebc   : > { %v3763_v1 = vadd.f32 %v3762_v24, %v3691_v55  ;;  %v3834_v42 = vadd.f32 %v3833_v12, %v3691_v55  ;;  %v3764_v52 = vpop.f32.mrb[23].mxu0  ;;  %v3835_v4 = vpop.f32.mrb[23].mxu1 }
 0xebd   : > { %v3765_v62 = vadd.f32 %v3764_v52, %v3691_v55  ;;  %v3836_v43 = vadd.f32 %v3835_v4, %v3691_v55 }
 0xebe   : > { %v3838_v20 = vmax.f32 %v3763_v1, 0.0  ;;  %v3840_v30 = vmax.f32 %v3834_v42, 0.0 }
 0xebf   : > { %v3839_v57 = vmax.f32 %v3765_v62, 0.0  ;;  %v3841_v0 = vmax.f32 %v3836_v43, 0.0 }
 0xec1   : > { %v3846_v61 = vcombine.low %v3838_v20, %v3839_v57  ;;  %v3847_v3 = vcombine.low %v3840_v30, %v3841_v0 }
 0xec3   : > { %3850 = vst [vmem:[%s359_s24] sm:$0xff] %v3846_v61  ;;  %3853 = vst.msk [vmem:[%s359_s24 + $0x8] sm:$0xff] %vm3852_vm9, %v3847_v3 }
 0xec4 PF: > { %s20_s13 = sadd.s32 1, %s5128_s13  }
 0xec5   : > { %p17_p4 = scmp.ge.s32.totalorder %s20_s13, 4  }
 0xec7   :  { %19 = sbr.rel (!%p17_p4) target bundleno = 1 (0x1), region = 98 }

</bundles_post_ra>
